<compile_context>
chip_gen: v7x
topology: tpu7x:2x2x1
jax: 0.10.0
libtpu: 0.0.40
codegen_flags: <defaults>
</compile_context>

<pallas_src>
import functools
import math

import numpy as np

import jax
import jax.numpy as jnp
from jax.experimental import pallas as pl
from jax.experimental.pallas import tpu as pltpu


PRIMITIVES = (
    'none',
    'max_pool_3x3',
    'avg_pool_3x3',
    'skip_connect',
    'sep_conv_3x3',
    'sep_conv_5x5',
    'dil_conv_3x3',
    'dil_conv_5x5',
)

BN_EPS = 1e-5

# Depthwise-conv geometry (kernel, dilation, padding) of the four conv branches.
_S1_GEOM = ((3, 1, 1), (5, 1, 2), (3, 2, 2), (5, 2, 4))   # sep3 dw1, sep5 dw1, dil3, dil5
_S2_GEOM = ((3, 1, 1), (5, 1, 2))                          # sep3 dw2, sep5 dw2
PAD1, PAD2, PADP = 4, 2, 1


def _tap_union(geoms, pad):
    taps = set()
    for (k, d, p) in geoms:
        for kh in range(k):
            for kw in range(k):
                taps.add((kh * d - p + pad, kw * d - p + pad))
    return tuple(sorted(taps))


TAPS1 = _tap_union(_S1_GEOM, PAD1)   # 41 (dh, dw) pairs shared by the 4 stage-1 branches
TAPS2 = _tap_union(_S2_GEOM, PAD2)   # 25 pairs shared by the 2 stage-2 branches


# ============================================================================
# In-kernel building blocks (shared by the fused edge kernels)
# ============================================================================

def _pool_partial(x, padP_ref, pool_scale, pool_shift, w_max, w_avg):
    """w_max*BN(maxpool3x3(x)) + w_avg*BN(avgpool3x3(x)), stride 1, pad 1.

    A global-min shift lets one zero-padded scratch serve both pools: shifted values are >= 0,
    so zero padding never wins the max, and the count_include_pad=False average is recovered by
    dividing by the in-kernel iota-derived valid count and adding the shift back.
    """
    b, H, W, C = x.shape
    xmin = jnp.min(x)
    padP_ref[...] = jnp.zeros_like(padP_ref)
    padP_ref[:, PADP:PADP + H, PADP:PADP + W, :] = x - xmin
    mx = jnp.zeros((b, H, W, C), jnp.float32)
    sm = jnp.zeros((b, H, W, C), jnp.float32)
    for dh in range(3):
        for dw in range(3):
            t = padP_ref[:, dh:dh + H, dw:dw + W, :]
            mx = jnp.maximum(mx, t)
            sm = sm + t
    ih = jax.lax.broadcasted_iota(jnp.int32, (b, H, W, C), 1)
    iw = jax.lax.broadcasted_iota(jnp.int32, (b, H, W, C), 2)
    cnt = ((jnp.minimum(ih + 1, H - 1) - jnp.maximum(ih - 1, 0) + 1) *
           (jnp.minimum(iw + 1, W - 1) - jnp.maximum(iw - 1, 0) + 1)).astype(jnp.float32)
    max_out = mx + xmin
    avg_out = sm / cnt + xmin
    ms = pool_scale[0].reshape(1, 1, 1, C)
    mb = pool_shift[0].reshape(1, 1, 1, C)
    vs = pool_scale[1].reshape(1, 1, 1, C)
    vb = pool_shift[1].reshape(1, 1, 1, C)
    return w_max * (max_out * ms + mb) + w_avg * (avg_out * vs + vb)


def _conv_stage1(x, padA_ref, dwA, pwA, bn_scale, bn_shift):
    """ReLU -> {sep3,sep5,dil3,dil5} first depthwise (lane-concatenated, 4C wide)
    -> block-diagonal 1x1 conv -> per-branch BatchNorm(affine=False).  Returns [b,H,W,4C]."""
    b, H, W, C = x.shape
    C4 = dwA.shape[-1]
    xr = jnp.maximum(x, 0.0)
    padA_ref[...] = jnp.zeros_like(padA_ref)
    padA_ref[:, PAD1:PAD1 + H, PAD1:PAD1 + W, :] = jnp.concatenate([xr] * (C4 // C), axis=-1)
    acc = jnp.zeros((b, H, W, C4), jnp.float32)
    for t, (dh, dw) in enumerate(TAPS1):
        acc = acc + padA_ref[:, dh:dh + H, dw:dw + W, :] * dwA[t].reshape(1, 1, 1, C4)
    y = jnp.dot(acc.reshape(b * H * W, C4).astype(pwA.dtype), pwA,
                preferred_element_type=jnp.float32)
    y = y * bn_scale + bn_shift
    return y.reshape(b, H, W, C4)


def _conv_stage2(h, padB_ref, dwB, pwB, bn_scale, bn_shift):
    """Second (depthwise -> 1x1 -> BN) block of the two SepConvs, 2C lanes wide."""
    b, H, W, C2 = h.shape
    padB_ref[...] = jnp.zeros_like(padB_ref)
    padB_ref[:, PAD2:PAD2 + H, PAD2:PAD2 + W, :] = h
    acc = jnp.zeros((b, H, W, C2), jnp.float32)
    for t, (dh, dw) in enumerate(TAPS2):
        acc = acc + padB_ref[:, dh:dh + H, dw:dw + W, :] * dwB[t].reshape(1, 1, 1, C2)
    y = jnp.dot(acc.reshape(b * H * W, C2).astype(pwB.dtype), pwB,
                preferred_element_type=jnp.float32)
    y = y * bn_scale + bn_shift
    return y.reshape(b, H, W, C2)


# ============================================================================
# Fused MixedOp kernels
# ============================================================================

def _mixed_op_s1_kernel(w8_ref, x_ref, dwA_ref, pwA_ref, bnA_s_ref, bnA_b_ref,
                        dwB_ref, pwB_ref, bnB_s_ref, bnB_b_ref,
                        pool_s_ref, pool_b_ref, o_ref,
                        padA_ref, padB_ref, padP_ref):
    """Whole stride-1 MixedOp (all non-Zero branches, BN + arch weights + sum) in one kernel."""
    x = x_ref[...]
    C = x.shape[-1]
    total = _pool_partial(x, padP_ref, pool_s_ref[...], pool_b_ref[...],
                          w8_ref[0, 1], w8_ref[0, 2])
    total = total + w8_ref[0, 3] * x                                   # skip_connect == Identity
    y1 = _conv_stage1(x, padA_ref, dwA_ref[...], pwA_ref[...],
                      bnA_s_ref[...], bnA_b_ref[...])
    # dil_conv_3x3 / dil_conv_5x5 finish after stage 1
    total = total + w8_ref[0, 6] * y1[..., 2 * C:3 * C] + w8_ref[0, 7] * y1[..., 3 * C:4 * C]
    # sep_conv_3x3 / sep_conv_5x5: second (ReLU -> dw -> 1x1 -> BN) block
    y2 = _conv_stage2(jnp.maximum(y1[..., :2 * C], 0.0), padB_ref, dwB_ref[...],
                      pwB_ref[...], bnB_s_ref[...], bnB_b_ref[...])
    total = total + w8_ref[0, 4] * y2[..., :C] + w8_ref[0, 5] * y2[..., C:2 * C]
    o_ref[...] = total


def _mixed_op_red1_kernel(w8_ref, x_ref, dwA_ref, pwA_ref, bnA_s_ref, bnA_b_ref,
                          pool_s_ref, pool_b_ref, y1_ref, part_ref, padA_ref, padP_ref):
    """Reduction edge, stage 1 at full resolution (pools + 4-branch depthwise + 1x1 + BN)."""
    x = x_ref[...]
    part_ref[...] = _pool_partial(x, padP_ref, pool_s_ref[...], pool_b_ref[...],
                                  w8_ref[0, 1], w8_ref[0, 2])
    y1_ref[...] = _conv_stage1(x, padA_ref, dwA_ref[...], pwA_ref[...],
                               bnA_s_ref[...], bnA_b_ref[...])


def _mixed_op_red2_kernel(w8_ref, y1d_ref, part_ref, x1_ref, x2_ref,
                          dwB_ref, pwB_ref, bnB_s_ref, bnB_b_ref,
                          frw_ref, fr_s_ref, fr_b_ref, o_ref, padB_ref):
    """Reduction edge, stage 2 on the decimated grid: FactorizedReduce skip + SepConv stage 2."""
    y1d = y1d_ref[...]
    b, Ho, Wo, C4 = y1d.shape
    C = C4 // 4
    total = part_ref[...]
    # skip_connect == FactorizedReduce: ReLU -> two stride-2 1x1 convs -> concat -> BN
    xcat = jnp.concatenate([jnp.maximum(x1_ref[...], 0.0),
                            jnp.maximum(x2_ref[...], 0.0)], axis=-1)
    fr = jnp.dot(xcat.reshape(b * Ho * Wo, 2 * C).astype(frw_ref.dtype), frw_ref[...],
                 preferred_element_type=jnp.float32)
    fr = (fr * fr_s_ref[...] + fr_b_ref[...]).reshape(b, Ho, Wo, C)
    total = total + w8_ref[0, 3] * fr
    total = total + w8_ref[0, 6] * y1d[..., 2 * C:3 * C] + w8_ref[0, 7] * y1d[..., 3 * C:4 * C]
    y2 = _conv_stage2(jnp.maximum(y1d[..., :2 * C], 0.0), padB_ref, dwB_ref[...],
                      pwB_ref[...], bnB_s_ref[...], bnB_b_ref[...])
    total = total + w8_ref[0, 4] * y2[..., :C] + w8_ref[0, 5] * y2[..., C:2 * C]
    o_ref[...] = total


def _smem_spec():
    return pl.BlockSpec((1, 8), lambda b: (0, 0), memory_space=pltpu.MemorySpace.SMEM)


def _wspec(a):
    nd = a.ndim
    return pl.BlockSpec(a.shape, lambda b, _nd=nd: (0,) * _nd)


def _mixed_op_s1_call(x, w8, pp):
    B, H, W, C = x.shape
    xspec = pl.BlockSpec((1, H, W, C), lambda b: (b, 0, 0, 0))
    args = (w8, x, pp['dwA'], pp['pwA'], pp['bnA_scale'], pp['bnA_shift'],
            pp['dwB'], pp['pwB'], pp['bnB_scale'], pp['bnB_shift'],
            pp['pool_scale'], pp['pool_shift'])
    return pl.pallas_call(
        _mixed_op_s1_kernel,
        out_shape=jax.ShapeDtypeStruct((B, H, W, C), jnp.float32),
        grid=(B,),
        in_specs=[_smem_spec(), xspec] + [_wspec(a) for a in args[2:]],
        out_specs=xspec,
        scratch_shapes=[
            pltpu.VMEM((1, H + 2 * PAD1, W + 2 * PAD1, 4 * C), jnp.float32),
            pltpu.VMEM((1, H + 2 * PAD2, W + 2 * PAD2, 2 * C), jnp.float32),
            pltpu.VMEM((1, H + 2 * PADP, W + 2 * PADP, C), jnp.float32),
        ],
        compiler_params=pltpu.CompilerParams(dimension_semantics=("parallel",)),
    )(*args)


def _mixed_op_reduce_call(x, w8, pp):
    B, H, W, C = x.shape
    Ho, Wo = H // 2, W // 2
    xspec = pl.BlockSpec((1, H, W, C), lambda b: (b, 0, 0, 0))

    args1 = (w8, x, pp['dwA'], pp['pwA'], pp['bnA_scale'], pp['bnA_shift'],
             pp['pool_scale'], pp['pool_shift'])
    y1, part = pl.pallas_call(
        _mixed_op_red1_kernel,
        out_shape=(jax.ShapeDtypeStruct((B, H, W, 4 * C), jnp.float32),
                   jax.ShapeDtypeStruct((B, H, W, C), jnp.float32)),
        grid=(B,),
        in_specs=[_smem_spec(), xspec] + [_wspec(a) for a in args1[2:]],
        out_specs=(pl.BlockSpec((1, H, W, 4 * C), lambda b: (b, 0, 0, 0)),
                   pl.BlockSpec((1, H, W, C), lambda b: (b, 0, 0, 0))),
        scratch_shapes=[
            pltpu.VMEM((1, H + 2 * PAD1, W + 2 * PAD1, 4 * C), jnp.float32),
            pltpu.VMEM((1, H + 2 * PADP, W + 2 * PADP, C), jnp.float32),
        ],
        compiler_params=pltpu.CompilerParams(dimension_semantics=("parallel",)),
    )(*args1)

    # The single spatial decimation stride 2 requires (exact rewrite of the strided ops).
    y1d, partd = y1[:, ::2, ::2, :], part[:, ::2, ::2, :]
    x1, x2 = x[:, ::2, ::2, :], x[:, 1::2, 1::2, :]

    ospec = pl.BlockSpec((1, Ho, Wo, C), lambda b: (b, 0, 0, 0))
    args2 = (w8, y1d, partd, x1, x2, pp['dwB'], pp['pwB'], pp['bnB_scale'], pp['bnB_shift'],
             pp['fr_w'], pp['fr_scale'], pp['fr_shift'])
    in_specs2 = ([_smem_spec(),
                  pl.BlockSpec((1, Ho, Wo, 4 * C), lambda b: (b, 0, 0, 0)),
                  ospec, ospec, ospec]
                 + [_wspec(a) for a in args2[5:]])
    return pl.pallas_call(
        _mixed_op_red2_kernel,
        out_shape=jax.ShapeDtypeStruct((B, Ho, Wo, C), jnp.float32),
        grid=(B,),
        in_specs=in_specs2,
        out_specs=ospec,
        scratch_shapes=[pltpu.VMEM((1, Ho + 2 * PAD2, Wo + 2 * PAD2, 2 * C), jnp.float32)],
        compiler_params=pltpu.CompilerParams(dimension_semantics=("parallel",)),
    )(*args2)


def mixed_op(x, w8, pp, stride):
    if stride == 1:
        return _mixed_op_s1_call(x, w8, pp)
    return _mixed_op_reduce_call(x, w8, pp)


# ============================================================================
# Preprocess: ReLUConvBN(1x1) / FactorizedReduce as one matmul kernel each
# ============================================================================

def _dense_kernel(x_ref, w_ref, scale_ref, shift_ref, o_ref, *, pre_relu):
    x = x_ref[...]
    if pre_relu:
        x = jnp.maximum(x, 0.0)
    y = jnp.dot(x.astype(w_ref.dtype), w_ref[...], preferred_element_type=jnp.float32)
    o_ref[...] = y * scale_ref[...] + shift_ref[...]


def dense(x, w, scale, shift, *, pre_relu=False):
    """y = (relu?(x) @ w) * scale + shift, M tiled on a 'parallel' grid, no accumulator scratch.

    K is kept as a single block (DARTS preprocess K <= a few hundred); for very large K a K-grid
    with an accumulator would be needed.
    """
    M, K = x.shape
    _, N = w.shape
    tm = M
    if M > 1024:
        for cand in (1024, 512, 256, 128):
            if M % cand == 0:
                tm = cand
                break
    return pl.pallas_call(
        functools.partial(_dense_kernel, pre_relu=pre_relu),
        out_shape=jax.ShapeDtypeStruct((M, N), jnp.float32),
        grid=(M // tm,),
        in_specs=[pl.BlockSpec((tm, K), lambda i: (i, 0)),
                  pl.BlockSpec((K, N), lambda i: (0, 0)),
                  pl.BlockSpec((1, N), lambda i: (0, 0)),
                  pl.BlockSpec((1, N), lambda i: (0, 0))],
        out_specs=pl.BlockSpec((tm, N), lambda i: (i, 0)),
        compiler_params=pltpu.CompilerParams(dimension_semantics=("parallel",)),
    )(x, w, scale, shift)


def relu_conv_bn_1x1(x, p):
    B, H, W, Cin = x.shape
    Cout = p['w'].shape[1]
    y = dense(x.reshape(B * H * W, Cin), p['w'], p['scale'], p['shift'], pre_relu=True)
    return y.reshape(B, H, W, Cout)


def factorized_reduce(x, p):
    """relu -> two stride-2 1x1 convs -> channel concat -> BN, as one packed matmul."""
    B, H, W, Cin = x.shape
    Cout = p['w'].shape[1]
    x1, x2 = x[:, ::2, ::2, :], x[:, 1::2, 1::2, :]
    Ho, Wo = x1.shape[1], x1.shape[2]
    xcat = jnp.concatenate([x1, x2], axis=-1).reshape(B * Ho * Wo, 2 * Cin)
    y = dense(xcat, p['w'], p['scale'], p['shift'], pre_relu=True)
    return y.reshape(B, Ho, Wo, Cout)


# ============================================================================
# Cell forward (matches Cell.forward(s0, s1, weights))
# ============================================================================

def cell_forward(s0, s1, weights, params, *, steps, multiplier, reduction, reduction_prev):
    # NCHW -> NHWC once; everything below is channel-last.
    s0 = jnp.transpose(s0, (0, 2, 3, 1))
    s1 = jnp.transpose(s1, (0, 2, 3, 1))

    if reduction_prev:
        s0 = factorized_reduce(s0, params['pre0'])
    else:
        s0 = relu_conv_bn_1x1(s0, params['pre0'])
    s1 = relu_conv_bn_1x1(s1, params['pre1'])

    states = [s0, s1]
    offset = 0
    for i in range(steps):
        s = None
        for j, h in enumerate(states):
            stride = 2 if (reduction and j < 2) else 1
            w8 = weights[offset + j].reshape(1, -1)
            contrib = mixed_op(h, w8, params['ops'][offset + j], stride)
            s = contrib if s is None else s + contrib
        offset += len(states)
        states.append(s)

    out = jnp.concatenate(states[-multiplier:], axis=-1)
    return jnp.transpose(out, (0, 3, 1, 2))                    # back to NCHW


# ============================================================================
# Deterministic synthetic parameters (packed once at init; zero per-call glue)
# ============================================================================

def _bn_fold(key, c):
    km, kv = jax.random.split(key)
    mean = 0.1 * np.asarray(jax.random.normal(km, (c,), jnp.float32))
    var = np.abs(1.0 + 0.1 * np.asarray(jax.random.normal(kv, (c,), jnp.float32)))
    scale = (1.0 / np.sqrt(var + BN_EPS)).astype(np.float32)
    return scale, (-mean * scale).astype(np.float32)


def _blockdiag(mats):
    ri = sum(m.shape[0] for m in mats)
    co = sum(m.shape[1] for m in mats)
    out = np.zeros((ri, co), np.float32)
    i = j = 0
    for m in mats:
        out[i:i + m.shape[0], j:j + m.shape[1]] = m
        i += m.shape[0]
        j += m.shape[1]
    return out


def _pack_dw(dws, geoms, taps, pad):
    c = dws[0].shape[-1]
    idx = {t: i for i, t in enumerate(taps)}
    out = np.zeros((len(taps), len(dws) * c), np.float32)
    for g, (w, (k, d, p)) in enumerate(zip(dws, geoms)):
        for kh in range(k):
            for kw in range(k):
                out[idx[(kh * d - p + pad, kw * d - p + pad)], g * c:(g + 1) * c] = w[kh, kw]
    return out


def _edge_params(key, c, stride):
    ks = jax.random.split(key, 24)

    def dw(k_, size):
        return np.asarray(jax.random.normal(k_, (size, size, c), jnp.float32)) / float(size)

    def pw(k_, ci, co):
        return np.asarray(jax.random.normal(k_, (ci, co), jnp.float32)) / math.sqrt(ci)

    dws1 = [dw(ks[0], 3), dw(ks[1], 5), dw(ks[2], 3), dw(ks[3], 5)]      # sep3, sep5, dil3, dil5
    dws2 = [dw(ks[4], 3), dw(ks[5], 5)]                                   # sep3, sep5 second dw
    pws1 = [pw(ks[6], c, c), pw(ks[7], c, c), pw(ks[8], c, c), pw(ks[9], c, c)]
    pws2 = [pw(ks[10], c, c), pw(ks[11], c, c)]
    bn1 = [_bn_fold(ks[12 + i], c) for i in range(4)]
    bn2 = [_bn_fold(ks[16 + i], c) for i in range(2)]
    bnp = [_bn_fold(ks[18 + i], c) for i in range(2)]                     # max-pool BN, avg-pool BN

    p = {
        'dwA': jnp.asarray(_pack_dw(dws1, _S1_GEOM, TAPS1, PAD1)),
        'pwA': jnp.asarray(_blockdiag(pws1), dtype=jnp.bfloat16),
        'bnA_scale': jnp.asarray(np.concatenate([s for s, _ in bn1]).reshape(1, 4 * c)),
        'bnA_shift': jnp.asarray(np.concatenate([b for _, b in bn1]).reshape(1, 4 * c)),
        'dwB': jnp.asarray(_pack_dw(dws2, _S2_GEOM, TAPS2, PAD2)),
        'pwB': jnp.asarray(_blockdiag(pws2), dtype=jnp.bfloat16),
        'bnB_scale': jnp.asarray(np.concatenate([s for s, _ in bn2]).reshape(1, 2 * c)),
        'bnB_shift': jnp.asarray(np.concatenate([b for _, b in bn2]).reshape(1, 2 * c)),
        'pool_scale': jnp.asarray(np.stack([bnp[0][0], bnp[1][0]])),
        'pool_shift': jnp.asarray(np.stack([bnp[0][1], bnp[1][1]])),
    }
    if stride == 2:
        w1 = pw(ks[20], c, c // 2)
        w2 = pw(ks[21], c, c // 2)
        frs, frb = _bn_fold(ks[22], c)
        p['fr_w'] = jnp.asarray(_blockdiag([w1, w2]), dtype=jnp.bfloat16)
        p['fr_scale'] = jnp.asarray(frs.reshape(1, c))
        p['fr_shift'] = jnp.asarray(frb.reshape(1, c))
    return p


def _relu_conv_bn_params(key, cin, cout):
    kw_, kb = jax.random.split(key)
    w = np.asarray(jax.random.normal(kw_, (cin, cout), jnp.float32)) / math.sqrt(cin)
    s, b = _bn_fold(kb, cout)
    return {'w': jnp.asarray(w, dtype=jnp.bfloat16),
            'scale': jnp.asarray(s.reshape(1, cout)),
            'shift': jnp.asarray(b.reshape(1, cout))}


def _fact_reduce_params(key, cin, cout):
    k1, k2, kb = jax.random.split(key, 3)
    w1 = np.asarray(jax.random.normal(k1, (cin, cout // 2), jnp.float32)) / math.sqrt(cin)
    w2 = np.asarray(jax.random.normal(k2, (cin, cout // 2), jnp.float32)) / math.sqrt(cin)
    s, b = _bn_fold(kb, cout)
    return {'w': jnp.asarray(_blockdiag([w1, w2]), dtype=jnp.bfloat16),
            'scale': jnp.asarray(s.reshape(1, cout)),
            'shift': jnp.asarray(b.reshape(1, cout))}


def init_cell_params(key, c_prev_prev, c_prev, c, steps, reduction, reduction_prev):
    kpre0, kpre1, kops = jax.random.split(key, 3)
    params = {}
    if reduction_prev:
        params['pre0'] = _fact_reduce_params(kpre0, c_prev_prev, c)
    else:
        params['pre0'] = _relu_conv_bn_params(kpre0, c_prev_prev, c)
    params['pre1'] = _relu_conv_bn_params(kpre1, c_prev, c)
    ops, idx = [], 0
    for i in range(steps):
        for j in range(2 + i):
            stride = 2 if (reduction and j < 2) else 1
            ops.append(_edge_params(jax.random.fold_in(kops, idx), c, stride))
            idx += 1
    params['ops'] = ops
    return params


# ============================================================================
# Main
# ============================================================================

if __name__ == "__main__":
    # Small, module-consistent config: a normal (non-reduction) DARTS search cell.
    STEPS, MULTIPLIER = 4, 4
    B, C, H, W = 2, 32, 8, 8
    C_PREV_PREV = C_PREV = MULTIPLIER * C          # 128 input channels from the previous cells
    REDUCTION, REDUCTION_PREV = False, False

    key = jax.random.PRNGKey(0)
    k0, k1, ka, kp = jax.random.split(key, 4)
    s0 = jax.random.normal(k0, (B, C_PREV_PREV, H, W), jnp.float32)
    s1 = jax.random.normal(k1, (B, C_PREV, H, W), jnp.float32)

    num_edges = sum(2 + i for i in range(STEPS))   # 14
    alphas = jax.random.normal(ka, (num_edges, len(PRIMITIVES)), jnp.float32)
    weights = jax.nn.softmax(alphas, axis=-1)      # as passed by Network.forward in DARTS

    params = init_cell_params(kp, C_PREV_PREV, C_PREV, C, STEPS, REDUCTION, REDUCTION_PREV)

    fwd = jax.jit(functools.partial(
        cell_forward, steps=STEPS, multiplier=MULTIPLIER,
        reduction=REDUCTION, reduction_prev=REDUCTION_PREV))

    out = jax.block_until_ready(fwd(s0, s1, weights, params))

    assert out.shape == (B, MULTIPLIER * C, H, W), out.shape
    assert bool(jnp.all(jnp.isfinite(out)))
    print("KERNEL_OK")
</pallas_src>

<mosaic_0001>
module attributes {stable_mosaic.version = 11 : i64} {
  func.func @_dense_kernel(%arg0: i32, %arg1: memref<128x128xf32, #tpu.memory_space<vmem>>, %arg2: memref<128x32xbf16, #tpu.memory_space<vmem>>, %arg3: memref<1x32xf32, #tpu.memory_space<vmem>>, %arg4: memref<1x32xf32, #tpu.memory_space<vmem>>, %arg5: memref<128x32xf32, #tpu.memory_space<vmem>>) attributes {dimension_semantics = [#tpu.dimension_semantics<parallel>], iteration_bounds = array<i64: 1>, scalar_prefetch = 0 : i64, scratch_operands = 0 : i64, tpu.core_type = #tpu.core_type<tc>, window_params = [{transform_indices = @transform_0, window_bounds = array<i64: 128, 128>}, {pipeline_mode = #tpu.pipeline_mode<synchronous>, transform_indices = @transform_1, window_bounds = array<i64: 128, 32>}, {pipeline_mode = #tpu.pipeline_mode<synchronous>, transform_indices = @transform_2, window_bounds = array<i64: 1, 32>}, {pipeline_mode = #tpu.pipeline_mode<synchronous>, transform_indices = @transform_3, window_bounds = array<i64: 1, 32>}, {transform_indices = @transform_4, window_bounds = array<i64: 128, 32>}]} {
    %c0 = arith.constant 0 : index
    %c0_0 = arith.constant 0 : index
    %0 = vector.load %arg1[%c0, %c0_0] : memref<128x128xf32, #tpu.memory_space<vmem>>, vector<128x128xf32>
    %cst = arith.constant 0.000000e+00 : f32
    %1 = vector.broadcast %cst : f32 to vector<128x128xf32>
    %2 = arith.maximumf %0, %1 : vector<128x128xf32>
    %3 = arith.truncf %2 : vector<128x128xf32> to vector<128x128xbf16>
    %c0_1 = arith.constant 0 : index
    %c0_2 = arith.constant 0 : index
    %4 = vector.load %arg2[%c0_1, %c0_2] : memref<128x32xbf16, #tpu.memory_space<vmem>>, vector<128x32xbf16>
    %cst_3 = arith.constant dense<0.000000e+00> : vector<128x32xf32>
    %5 = tpu.matmul %3, %4, %cst_3 {dimension_numbers = #tpu.dot_dimension_numbers<[1], [0], [0], [1], [0, 0, 1, 1], [], []>} : vector<128x128xbf16>, vector<128x32xbf16>, vector<128x32xf32> -> vector<128x32xf32>
    %c0_4 = arith.constant 0 : index
    %c0_5 = arith.constant 0 : index
    %6 = vector.load %arg3[%c0_4, %c0_5] : memref<1x32xf32, #tpu.memory_space<vmem>>, vector<1x32xf32>
    %7 = vector.broadcast %6 : vector<1x32xf32> to vector<128x32xf32>
    %8 = arith.mulf %5, %7 : vector<128x32xf32>
    %c0_6 = arith.constant 0 : index
    %c0_7 = arith.constant 0 : index
    %9 = vector.load %arg4[%c0_6, %c0_7] : memref<1x32xf32, #tpu.memory_space<vmem>>, vector<1x32xf32>
    %10 = vector.broadcast %9 : vector<1x32xf32> to vector<128x32xf32>
    %11 = arith.addf %8, %10 : vector<128x32xf32>
    %c0_8 = arith.constant 0 : index
    %c0_9 = arith.constant 0 : index
    %12 = vector.load %arg5[%c0_8, %c0_9] : memref<128x32xf32, #tpu.memory_space<vmem>>, vector<128x32xf32>
    tpu.vector_store %arg5[%c0_8, %c0_9], %11 {strides = array<i32>} : memref<128x32xf32, #tpu.memory_space<vmem>>, vector<128x32xf32>,
    return
  }
  func.func @transform_0(%arg0: i32) -> (i32, i32) {
    %c0_i32 = arith.constant 0 : i32
    %c0_i32_0 = arith.constant 0 : i32
    return %arg0, %c0_i32 : i32, i32
  }
  func.func @transform_1(%arg0: i32) -> (i32, i32) {
    %c0_i32 = arith.constant 0 : i32
    %c0_i32_0 = arith.constant 0 : i32
    %c0_i32_1 = arith.constant 0 : i32
    return %c0_i32, %c0_i32_0 : i32, i32
  }
  func.func @transform_2(%arg0: i32) -> (i32, i32) {
    %c0_i32 = arith.constant 0 : i32
    %c0_i32_0 = arith.constant 0 : i32
    %c0_i32_1 = arith.constant 0 : i32
    return %c0_i32, %c0_i32_0 : i32, i32
  }
  func.func @transform_3(%arg0: i32) -> (i32, i32) {
    %c0_i32 = arith.constant 0 : i32
    %c0_i32_0 = arith.constant 0 : i32
    %c0_i32_1 = arith.constant 0 : i32
    return %c0_i32, %c0_i32_0 : i32, i32
  }
  func.func @transform_4(%arg0: i32) -> (i32, i32) {
    %c0_i32 = arith.constant 0 : i32
    %c0_i32_0 = arith.constant 0 : i32
    return %arg0, %c0_i32 : i32, i32
  }
}

module attributes {stable_mosaic.version = 11 : i64} {
  func.func @_mixed_op_s1_kernel(%arg0: i32, %arg1: memref<1x8xf32, #tpu.memory_space<smem>>, %arg2: memref<1x8x8x32xf32, #tpu.memory_space<vmem>>, %arg3: memref<41x128xf32, #tpu.memory_space<vmem>>, %arg4: memref<128x128xbf16, #tpu.memory_space<vmem>>, %arg5: memref<1x128xf32, #tpu.memory_space<vmem>>, %arg6: memref<1x128xf32, #tpu.memory_space<vmem>>, %arg7: memref<25x64xf32, #tpu.memory_space<vmem>>, %arg8: memref<64x64xbf16, #tpu.memory_space<vmem>>, %arg9: memref<1x64xf32, #tpu.memory_space<vmem>>, %arg10: memref<1x64xf32, #tpu.memory_space<vmem>>, %arg11: memref<2x32xf32, #tpu.memory_space<vmem>>, %arg12: memref<2x32xf32, #tpu.memory_space<vmem>>, %arg13: memref<1x8x8x32xf32, #tpu.memory_space<vmem>>, %arg14: memref<1x16x16x128xf32, #tpu.memory_space<vmem>>, %arg15: memref<1x12x12x64xf32, #tpu.memory_space<vmem>>, %arg16: memref<1x10x10x32xf32, #tpu.memory_space<vmem>>) attributes {dimension_semantics = [#tpu.dimension_semantics<parallel>], iteration_bounds = array<i64: 2>, scalar_prefetch = 0 : i64, scratch_operands = 3 : i64, tpu.core_type = #tpu.core_type<tc>, window_params = [{transform_indices = @transform_0, window_bounds = array<i64: 1, 8>}, {transform_indices = @transform_1, window_bounds = array<i64: 1, 8, 8, 32>}, {pipeline_mode = #tpu.pipeline_mode<synchronous>, transform_indices = @transform_2, window_bounds = array<i64: 41, 128>}, {pipeline_mode = #tpu.pipeline_mode<synchronous>, transform_indices = @transform_3, window_bounds = array<i64: 128, 128>}, {pipeline_mode = #tpu.pipeline_mode<synchronous>, transform_indices = @transform_4, window_bounds = array<i64: 1, 128>}, {pipeline_mode = #tpu.pipeline_mode<synchronous>, transform_indices = @transform_5, window_bounds = array<i64: 1, 128>}, {pipeline_mode = #tpu.pipeline_mode<synchronous>, transform_indices = @transform_6, window_bounds = array<i64: 25, 64>}, {pipeline_mode = #tpu.pipeline_mode<synchronous>, transform_indices = @transform_7, window_bounds = array<i64: 64, 64>}, {pipeline_mode = #tpu.pipeline_mode<synchronous>, transform_indices = @transform_8, window_bounds = array<i64: 1, 64>}, {pipeline_mode = #tpu.pipeline_mode<synchronous>, transform_indices = @transform_9, window_bounds = array<i64: 1, 64>}, {pipeline_mode = #tpu.pipeline_mode<synchronous>, transform_indices = @transform_10, window_bounds = array<i64: 2, 32>}, {pipeline_mode = #tpu.pipeline_mode<synchronous>, transform_indices = @transform_11, window_bounds = array<i64: 2, 32>}, {transform_indices = @transform_12, window_bounds = array<i64: 1, 8, 8, 32>}]} {
    %c0 = arith.constant 0 : index
    %c0_0 = arith.constant 0 : index
    %c0_1 = arith.constant 0 : index
    %c0_2 = arith.constant 0 : index
    %0 = vector.load %arg2[%c0, %c0_0, %c0_1, %c0_2] : memref<1x8x8x32xf32, #tpu.memory_space<vmem>>, vector<1x8x8x32xf32>
    %c0_3 = arith.constant 0 : index
    %c0_4 = arith.constant 0 : index
    %1 = vector.load %arg11[%c0_3, %c0_4] : memref<2x32xf32, #tpu.memory_space<vmem>>, vector<2x32xf32>
    %c0_5 = arith.constant 0 : index
    %c0_6 = arith.constant 0 : index
    %2 = vector.load %arg12[%c0_5, %c0_6] : memref<2x32xf32, #tpu.memory_space<vmem>>, vector<2x32xf32>
    %c0_7 = arith.constant 0 : index
    %c1 = arith.constant 1 : index
    %3 = memref.load %arg1[%c0_7, %c1] : memref<1x8xf32, #tpu.memory_space<smem>>
    %c0_8 = arith.constant 0 : index
    %c2 = arith.constant 2 : index
    %4 = memref.load %arg1[%c0_8, %c2] : memref<1x8xf32, #tpu.memory_space<smem>>
    %5 = vector.shape_cast %0 : vector<1x8x8x32xf32> to vector<1x1x8x8x32xf32>
    %cst = arith.constant dense<0x7F800000> : vector<1xf32>
    %6 = vector.multi_reduction <minimumf>, %5, %cst [1, 2, 3, 4] : vector<1x1x8x8x32xf32> to vector<1xf32>
    %7 = vector.shape_cast %6 : vector<1xf32> to vector<1x1x1x1x1xf32>
    %8 = vector.extract %7[0, 0, 0, 0, 0] : f32 from vector<1x1x1x1x1xf32>
    %cst_9 = arith.constant 0.000000e+00 : f32
    %9 = vector.broadcast %cst_9 : f32 to vector<1x10x10x32xf32>
    %c0_10 = arith.constant 0 : index
    %c0_11 = arith.constant 0 : index
    %c0_12 = arith.constant 0 : index
    %c0_13 = arith.constant 0 : index
    %10 = vector.load %arg16[%c0_10, %c0_11, %c0_12, %c0_13] : memref<1x10x10x32xf32, #tpu.memory_space<vmem>>, vector<1x10x10x32xf32>
    tpu.vector_store %arg16[%c0_10, %c0_11, %c0_12, %c0_13], %9 {strides = array<i32>} : memref<1x10x10x32xf32, #tpu.memory_space<vmem>>, vector<1x10x10x32xf32>,
    %11 = vector.broadcast %8 : f32 to vector<1x8x8x32xf32>
    %12 = arith.subf %0, %11 : vector<1x8x8x32xf32>
    %c0_14 = arith.constant 0 : index
    %c1_15 = arith.constant 1 : index
    %c1_16 = arith.constant 1 : index
    %c0_17 = arith.constant 0 : index
    %13 = vector.load %arg16[%c0_14, %c1_15, %c1_16, %c0_17] : memref<1x10x10x32xf32, #tpu.memory_space<vmem>>, vector<1x8x8x32xf32>
    tpu.vector_store %arg16[%c0_14, %c1_15, %c1_16, %c0_17], %12 {strides = array<i32>} : memref<1x10x10x32xf32, #tpu.memory_space<vmem>>, vector<1x8x8x32xf32>,
    %cst_18 = arith.constant 0.000000e+00 : f32
    %14 = vector.broadcast %cst_18 : f32 to vector<1x8x8x32xf32>
    %cst_19 = arith.constant 0.000000e+00 : f32
    %15 = vector.broadcast %cst_19 : f32 to vector<1x8x8x32xf32>
    %c0_20 = arith.constant 0 : index
    %c0_21 = arith.constant 0 : index
    %c0_22 = arith.constant 0 : index
    %c0_23 = arith.constant 0 : index
    %16 = vector.load %arg16[%c0_20, %c0_21, %c0_22, %c0_23] : memref<1x10x10x32xf32, #tpu.memory_space<vmem>>, vector<1x8x8x32xf32>
    %17 = arith.maximumf %14, %16 : vector<1x8x8x32xf32>
    %18 = arith.addf %15, %16 : vector<1x8x8x32xf32>
    %c0_24 = arith.constant 0 : index
    %c0_25 = arith.constant 0 : index
    %c1_26 = arith.constant 1 : index
    %c0_27 = arith.constant 0 : index
    %19 = vector.load %arg16[%c0_24, %c0_25, %c1_26, %c0_27] : memref<1x10x10x32xf32, #tpu.memory_space<vmem>>, vector<1x8x8x32xf32>
    %20 = arith.maximumf %17, %19 : vector<1x8x8x32xf32>
    %21 = arith.addf %18, %19 : vector<1x8x8x32xf32>
    %c0_28 = arith.constant 0 : index
    %c0_29 = arith.constant 0 : index
    %c2_30 = arith.constant 2 : index
    %c0_31 = arith.constant 0 : index
    %22 = vector.load %arg16[%c0_28, %c0_29, %c2_30, %c0_31] : memref<1x10x10x32xf32, #tpu.memory_space<vmem>>, vector<1x8x8x32xf32>
    %23 = arith.maximumf %20, %22 : vector<1x8x8x32xf32>
    %24 = arith.addf %21, %22 : vector<1x8x8x32xf32>
    %c0_32 = arith.constant 0 : index
    %c1_33 = arith.constant 1 : index
    %c0_34 = arith.constant 0 : index
    %c0_35 = arith.constant 0 : index
    %25 = vector.load %arg16[%c0_32, %c1_33, %c0_34, %c0_35] : memref<1x10x10x32xf32, #tpu.memory_space<vmem>>, vector<1x8x8x32xf32>
    %26 = arith.maximumf %23, %25 : vector<1x8x8x32xf32>
    %27 = arith.addf %24, %25 : vector<1x8x8x32xf32>
    %c0_36 = arith.constant 0 : index
    %c1_37 = arith.constant 1 : index
    %c1_38 = arith.constant 1 : index
    %c0_39 = arith.constant 0 : index
    %28 = vector.load %arg16[%c0_36, %c1_37, %c1_38, %c0_39] : memref<1x10x10x32xf32, #tpu.memory_space<vmem>>, vector<1x8x8x32xf32>
    %29 = arith.maximumf %26, %28 : vector<1x8x8x32xf32>
    %30 = arith.addf %27, %28 : vector<1x8x8x32xf32>
    %c0_40 = arith.constant 0 : index
    %c1_41 = arith.constant 1 : index
    %c2_42 = arith.constant 2 : index
    %c0_43 = arith.constant 0 : index
    %31 = vector.load %arg16[%c0_40, %c1_41, %c2_42, %c0_43] : memref<1x10x10x32xf32, #tpu.memory_space<vmem>>, vector<1x8x8x32xf32>
    %32 = arith.maximumf %29, %31 : vector<1x8x8x32xf32>
    %33 = arith.addf %30, %31 : vector<1x8x8x32xf32>
    %c0_44 = arith.constant 0 : index
    %c2_45 = arith.constant 2 : index
    %c0_46 = arith.constant 0 : index
    %c0_47 = arith.constant 0 : index
    %34 = vector.load %arg16[%c0_44, %c2_45, %c0_46, %c0_47] : memref<1x10x10x32xf32, #tpu.memory_space<vmem>>, vector<1x8x8x32xf32>
    %35 = arith.maximumf %32, %34 : vector<1x8x8x32xf32>
    %36 = arith.addf %33, %34 : vector<1x8x8x32xf32>
    %c0_48 = arith.constant 0 : index
    %c2_49 = arith.constant 2 : index
    %c1_50 = arith.constant 1 : index
    %c0_51 = arith.constant 0 : index
    %37 = vector.load %arg16[%c0_48, %c2_49, %c1_50, %c0_51] : memref<1x10x10x32xf32, #tpu.memory_space<vmem>>, vector<1x8x8x32xf32>
    %38 = arith.maximumf %35, %37 : vector<1x8x8x32xf32>
    %39 = arith.addf %36, %37 : vector<1x8x8x32xf32>
    %c0_52 = arith.constant 0 : index
    %c2_53 = arith.constant 2 : index
    %c2_54 = arith.constant 2 : index
    %c0_55 = arith.constant 0 : index
    %40 = vector.load %arg16[%c0_52, %c2_53, %c2_54, %c0_55] : memref<1x10x10x32xf32, #tpu.memory_space<vmem>>, vector<1x8x8x32xf32>
    %41 = arith.maximumf %38, %40 : vector<1x8x8x32xf32>
    %42 = arith.addf %39, %40 : vector<1x8x8x32xf32>
    %43 = tpu.iota {dimensions = array<i32: 1>} : vector<1x8x8x32xi32>
    %44 = tpu.iota {dimensions = array<i32: 2>} : vector<1x8x8x32xi32>
    %c1_i32 = arith.constant 1 : i32
    %45 = vector.broadcast %c1_i32 : i32 to vector<1x8x8x32xi32>
    %46 = arith.addi %43, %45 : vector<1x8x8x32xi32>
    %c7_i32 = arith.constant 7 : i32
    %47 = vector.broadcast %c7_i32 : i32 to vector<1x8x8x32xi32>
    %48 = arith.minsi %46, %47 : vector<1x8x8x32xi32>
    %c1_i32_56 = arith.constant 1 : i32
    %49 = vector.broadcast %c1_i32_56 : i32 to vector<1x8x8x32xi32>
    %50 = arith.subi %43, %49 : vector<1x8x8x32xi32>
    %c0_i32 = arith.constant 0 : i32
    %51 = vector.broadcast %c0_i32 : i32 to vector<1x8x8x32xi32>
    %52 = arith.maxsi %50, %51 : vector<1x8x8x32xi32>
    %53 = arith.subi %48, %52 : vector<1x8x8x32xi32>
    %c1_i32_57 = arith.constant 1 : i32
    %54 = vector.broadcast %c1_i32_57 : i32 to vector<1x8x8x32xi32>
    %55 = arith.addi %53, %54 : vector<1x8x8x32xi32>
    %c1_i32_58 = arith.constant 1 : i32
    %56 = vector.broadcast %c1_i32_58 : i32 to vector<1x8x8x32xi32>
    %57 = arith.addi %44, %56 : vector<1x8x8x32xi32>
    %c7_i32_59 = arith.constant 7 : i32
    %58 = vector.broadcast %c7_i32_59 : i32 to vector<1x8x8x32xi32>
    %59 = arith.minsi %57, %58 : vector<1x8x8x32xi32>
    %c1_i32_60 = arith.constant 1 : i32
    %60 = vector.broadcast %c1_i32_60 : i32 to vector<1x8x8x32xi32>
    %61 = arith.subi %44, %60 : vector<1x8x8x32xi32>
    %c0_i32_61 = arith.constant 0 : i32
    %62 = vector.broadcast %c0_i32_61 : i32 to vector<1x8x8x32xi32>
    %63 = arith.maxsi %61, %62 : vector<1x8x8x32xi32>
    %64 = arith.subi %59, %63 : vector<1x8x8x32xi32>
    %c1_i32_62 = arith.constant 1 : i32
    %65 = vector.broadcast %c1_i32_62 : i32 to vector<1x8x8x32xi32>
    %66 = arith.addi %64, %65 : vector<1x8x8x32xi32>
    %67 = arith.muli %55, %66 : vector<1x8x8x32xi32>
    %68 = arith.sitofp %67 : vector<1x8x8x32xi32> to vector<1x8x8x32xf32>
    %69 = vector.broadcast %8 : f32 to vector<1x8x8x32xf32>
    %70 = arith.addf %41, %69 : vector<1x8x8x32xf32>
    %71 = arith.divf %42, %68 : vector<1x8x8x32xf32>
    %72 = vector.broadcast %8 : f32 to vector<1x8x8x32xf32>
    %73 = arith.addf %71, %72 : vector<1x8x8x32xf32>
    %74 = vector.extract_strided_slice %1 {offsets = [0, 0], sizes = [1, 32], strides = [1, 1]} : vector<2x32xf32> to vector<1x32xf32>
    %75 = vector.shape_cast %74 : vector<1x32xf32> to vector<32xf32>
    %76 = vector.shape_cast %75 : vector<32xf32> to vector<1x1x1x32xf32>
    %77 = vector.extract_strided_slice %2 {offsets = [0, 0], sizes = [1, 32], strides = [1, 1]} : vector<2x32xf32> to vector<1x32xf32>
    %78 = vector.shape_cast %77 : vector<1x32xf32> to vector<32xf32>
    %79 = vector.shape_cast %78 : vector<32xf32> to vector<1x1x1x32xf32>
    %80 = vector.extract_strided_slice %1 {offsets = [1, 0], sizes = [1, 32], strides = [1, 1]} : vector<2x32xf32> to vector<1x32xf32>
    %81 = vector.shape_cast %80 : vector<1x32xf32> to vector<32xf32>
    %82 = vector.shape_cast %81 : vector<32xf32> to vector<1x1x1x32xf32>
    %83 = vector.extract_strided_slice %2 {offsets = [1, 0], sizes = [1, 32], strides = [1, 1]} : vector<2x32xf32> to vector<1x32xf32>
    %84 = vector.shape_cast %83 : vector<1x32xf32> to vector<32xf32>
    %85 = vector.shape_cast %84 : vector<32xf32> to vector<1x1x1x32xf32>
    %86 = vector.broadcast %76 : vector<1x1x1x32xf32> to vector<1x8x8x32xf32>
    %87 = arith.mulf %70, %86 : vector<1x8x8x32xf32>
    %88 = vector.broadcast %79 : vector<1x1x1x32xf32> to vector<1x8x8x32xf32>
    %89 = arith.addf %87, %88 : vector<1x8x8x32xf32>
    %90 = vector.broadcast %3 : f32 to vector<1x8x8x32xf32>
    %91 = arith.mulf %90, %89 : vector<1x8x8x32xf32>
    %92 = vector.broadcast %82 : vector<1x1x1x32xf32> to vector<1x8x8x32xf32>
    %93 = arith.mulf %73, %92 : vector<1x8x8x32xf32>
    %94 = vector.broadcast %85 : vector<1x1x1x32xf32> to vector<1x8x8x32xf32>
    %95 = arith.addf %93, %94 : vector<1x8x8x32xf32>
    %96 = vector.broadcast %4 : f32 to vector<1x8x8x32xf32>
    %97 = arith.mulf %96, %95 : vector<1x8x8x32xf32>
    %98 = arith.addf %91, %97 : vector<1x8x8x32xf32>
    %c0_63 = arith.constant 0 : index
    %c3 = arith.constant 3 : index
    %99 = memref.load %arg1[%c0_63, %c3] : memref<1x8xf32, #tpu.memory_space<smem>>
    %100 = vector.broadcast %99 : f32 to vector<1x8x8x32xf32>
    %101 = arith.mulf %100, %0 : vector<1x8x8x32xf32>
    %102 = arith.addf %98, %101 : vector<1x8x8x32xf32>
    %c0_64 = arith.constant 0 : index
    %c0_65 = arith.constant 0 : index
    %103 = vector.load %arg3[%c0_64, %c0_65] : memref<41x128xf32, #tpu.memory_space<vmem>>, vector<41x128xf32>
    %c0_66 = arith.constant 0 : index
    %c0_67 = arith.constant 0 : index
    %104 = vector.load %arg4[%c0_66, %c0_67] : memref<128x128xbf16, #tpu.memory_space<vmem>>, vector<128x128xbf16>
    %c0_68 = arith.constant 0 : index
    %c0_69 = arith.constant 0 : index
    %105 = vector.load %arg5[%c0_68, %c0_69] : memref<1x128xf32, #tpu.memory_space<vmem>>, vector<1x128xf32>
    %c0_70 = arith.constant 0 : index
    %c0_71 = arith.constant 0 : index
    %106 = vector.load %arg6[%c0_70, %c0_71] : memref<1x128xf32, #tpu.memory_space<vmem>>, vector<1x128xf32>
    %cst_72 = arith.constant 0.000000e+00 : f32
    %107 = vector.broadcast %cst_72 : f32 to vector<1x8x8x32xf32>
    %108 = arith.maximumf %0, %107 : vector<1x8x8x32xf32>
    %cst_73 = arith.constant 0.000000e+00 : f32
    %109 = vector.broadcast %cst_73 : f32 to vector<1x16x16x128xf32>
    %c0_74 = arith.constant 0 : index
    %c0_75 = arith.constant 0 : index
    %c0_76 = arith.constant 0 : index
    %c0_77 = arith.constant 0 : index
    %110 = vector.load %arg14[%c0_74, %c0_75, %c0_76, %c0_77] : memref<1x16x16x128xf32, #tpu.memory_space<vmem>>, vector<1x16x16x128xf32>
    tpu.vector_store %arg14[%c0_74, %c0_75, %c0_76, %c0_77], %109 {strides = array<i32>} : memref<1x16x16x128xf32, #tpu.memory_space<vmem>>, vector<1x16x16x128xf32>,
    %111 = tpu.concatenate %108, %108, %108, %108 in 3 : vector<1x8x8x32xf32>, vector<1x8x8x32xf32>, vector<1x8x8x32xf32>, vector<1x8x8x32xf32> -> vector<1x8x8x128xf32>
    %c0_78 = arith.constant 0 : index
    %c4 = arith.constant 4 : index
    %c4_79 = arith.constant 4 : index
    %c0_80 = arith.constant 0 : index
    %112 = vector.load %arg14[%c0_78, %c4, %c4_79, %c0_80] : memref<1x16x16x128xf32, #tpu.memory_space<vmem>>, vector<1x8x8x128xf32>
    tpu.vector_store %arg14[%c0_78, %c4, %c4_79, %c0_80], %111 {strides = array<i32>} : memref<1x16x16x128xf32, #tpu.memory_space<vmem>>, vector<1x8x8x128xf32>,
    %cst_81 = arith.constant 0.000000e+00 : f32
    %113 = vector.broadcast %cst_81 : f32 to vector<1x8x8x128xf32>
    %c0_82 = arith.constant 0 : index
    %c0_83 = arith.constant 0 : index
    %c0_84 = arith.constant 0 : index
    %c0_85 = arith.constant 0 : index
    %114 = vector.load %arg14[%c0_82, %c0_83, %c0_84, %c0_85] : memref<1x16x16x128xf32, #tpu.memory_space<vmem>>, vector<1x8x8x128xf32>
    %115 = vector.extract_strided_slice %103 {offsets = [0, 0], sizes = [1, 128], strides = [1, 1]} : vector<41x128xf32> to vector<1x128xf32>
    %116 = vector.shape_cast %115 : vector<1x128xf32> to vector<128xf32>
    %117 = vector.shape_cast %116 : vector<128xf32> to vector<1x1x1x128xf32>
    %118 = vector.broadcast %117 : vector<1x1x1x128xf32> to vector<1x8x8x128xf32>
    %119 = arith.mulf %114, %118 : vector<1x8x8x128xf32>
    %120 = arith.addf %113, %119 : vector<1x8x8x128xf32>
    %c0_86 = arith.constant 0 : index
    %c0_87 = arith.constant 0 : index
    %c2_88 = arith.constant 2 : index
    %c0_89 = arith.constant 0 : index
    %121 = vector.load %arg14[%c0_86, %c0_87, %c2_88, %c0_89] : memref<1x16x16x128xf32, #tpu.memory_space<vmem>>, vector<1x8x8x128xf32>
    %122 = vector.extract_strided_slice %103 {offsets = [1, 0], sizes = [1, 128], strides = [1, 1]} : vector<41x128xf32> to vector<1x128xf32>
    %123 = vector.shape_cast %122 : vector<1x128xf32> to vector<128xf32>
    %124 = vector.shape_cast %123 : vector<128xf32> to vector<1x1x1x128xf32>
    %125 = vector.broadcast %124 : vector<1x1x1x128xf32> to vector<1x8x8x128xf32>
    %126 = arith.mulf %121, %125 : vector<1x8x8x128xf32>
    %127 = arith.addf %120, %126 : vector<1x8x8x128xf32>
    %c0_90 = arith.constant 0 : index
    %c0_91 = arith.constant 0 : index
    %c4_92 = arith.constant 4 : index
    %c0_93 = arith.constant 0 : index
    %128 = vector.load %arg14[%c0_90, %c0_91, %c4_92, %c0_93] : memref<1x16x16x128xf32, #tpu.memory_space<vmem>>, vector<1x8x8x128xf32>
    %129 = vector.extract_strided_slice %103 {offsets = [2, 0], sizes = [1, 128], strides = [1, 1]} : vector<41x128xf32> to vector<1x128xf32>
    %130 = vector.shape_cast %129 : vector<1x128xf32> to vector<128xf32>
    %131 = vector.shape_cast %130 : vector<128xf32> to vector<1x1x1x128xf32>
    %132 = vector.broadcast %131 : vector<1x1x1x128xf32> to vector<1x8x8x128xf32>
    %133 = arith.mulf %128, %132 : vector<1x8x8x128xf32>
    %134 = arith.addf %127, %133 : vector<1x8x8x128xf32>
    %c0_94 = arith.constant 0 : index
    %c0_95 = arith.constant 0 : index
    %c6 = arith.constant 6 : index
    %c0_96 = arith.constant 0 : index
    %135 = vector.load %arg14[%c0_94, %c0_95, %c6, %c0_96] : memref<1x16x16x128xf32, #tpu.memory_space<vmem>>, vector<1x8x8x128xf32>
    %136 = vector.extract_strided_slice %103 {offsets = [3, 0], sizes = [1, 128], strides = [1, 1]} : vector<41x128xf32> to vector<1x128xf32>
    %137 = vector.shape_cast %136 : vector<1x128xf32> to vector<128xf32>
    %138 = vector.shape_cast %137 : vector<128xf32> to vector<1x1x1x128xf32>
    %139 = vector.broadcast %138 : vector<1x1x1x128xf32> to vector<1x8x8x128xf32>
    %140 = arith.mulf %135, %139 : vector<1x8x8x128xf32>
    %141 = arith.addf %134, %140 : vector<1x8x8x128xf32>
    %c0_97 = arith.constant 0 : index
    %c0_98 = arith.constant 0 : index
    %c8 = arith.constant 8 : index
    %c0_99 = arith.constant 0 : index
    %142 = vector.load %arg14[%c0_97, %c0_98, %c8, %c0_99] : memref<1x16x16x128xf32, #tpu.memory_space<vmem>>, vector<1x8x8x128xf32>
    %143 = vector.extract_strided_slice %103 {offsets = [4, 0], sizes = [1, 128], strides = [1, 1]} : vector<41x128xf32> to vector<1x128xf32>
    %144 = vector.shape_cast %143 : vector<1x128xf32> to vector<128xf32>
    %145 = vector.shape_cast %144 : vector<128xf32> to vector<1x1x1x128xf32>
    %146 = vector.broadcast %145 : vector<1x1x1x128xf32> to vector<1x8x8x128xf32>
    %147 = arith.mulf %142, %146 : vector<1x8x8x128xf32>
    %148 = arith.addf %141, %147 : vector<1x8x8x128xf32>
    %c0_100 = arith.constant 0 : index
    %c2_101 = arith.constant 2 : index
    %c0_102 = arith.constant 0 : index
    %c0_103 = arith.constant 0 : index
    %149 = vector.load %arg14[%c0_100, %c2_101, %c0_102, %c0_103] : memref<1x16x16x128xf32, #tpu.memory_space<vmem>>, vector<1x8x8x128xf32>
    %150 = vector.extract_strided_slice %103 {offsets = [5, 0], sizes = [1, 128], strides = [1, 1]} : vector<41x128xf32> to vector<1x128xf32>
    %151 = vector.shape_cast %150 : vector<1x128xf32> to vector<128xf32>
    %152 = vector.shape_cast %151 : vector<128xf32> to vector<1x1x1x128xf32>
    %153 = vector.broadcast %152 : vector<1x1x1x128xf32> to vector<1x8x8x128xf32>
    %154 = arith.mulf %149, %153 : vector<1x8x8x128xf32>
    %155 = arith.addf %148, %154 : vector<1x8x8x128xf32>
    %c0_104 = arith.constant 0 : index
    %c2_105 = arith.constant 2 : index
    %c2_106 = arith.constant 2 : index
    %c0_107 = arith.constant 0 : index
    %156 = vector.load %arg14[%c0_104, %c2_105, %c2_106, %c0_107] : memref<1x16x16x128xf32, #tpu.memory_space<vmem>>, vector<1x8x8x128xf32>
    %157 = vector.extract_strided_slice %103 {offsets = [6, 0], sizes = [1, 128], strides = [1, 1]} : vector<41x128xf32> to vector<1x128xf32>
    %158 = vector.shape_cast %157 : vector<1x128xf32> to vector<128xf32>
    %159 = vector.shape_cast %158 : vector<128xf32> to vector<1x1x1x128xf32>
    %160 = vector.broadcast %159 : vector<1x1x1x128xf32> to vector<1x8x8x128xf32>
    %161 = arith.mulf %156, %160 : vector<1x8x8x128xf32>
    %162 = arith.addf %155, %161 : vector<1x8x8x128xf32>
    %c0_108 = arith.constant 0 : index
    %c2_109 = arith.constant 2 : index
    %c3_110 = arith.constant 3 : index
    %c0_111 = arith.constant 0 : index
    %163 = vector.load %arg14[%c0_108, %c2_109, %c3_110, %c0_111] : memref<1x16x16x128xf32, #tpu.memory_space<vmem>>, vector<1x8x8x128xf32>
    %164 = vector.extract_strided_slice %103 {offsets = [7, 0], sizes = [1, 128], strides = [1, 1]} : vector<41x128xf32> to vector<1x128xf32>
    %165 = vector.shape_cast %164 : vector<1x128xf32> to vector<128xf32>
    %166 = vector.shape_cast %165 : vector<128xf32> to vector<1x1x1x128xf32>
    %167 = vector.broadcast %166 : vector<1x1x1x128xf32> to vector<1x8x8x128xf32>
    %168 = arith.mulf %163, %167 : vector<1x8x8x128xf32>
    %169 = arith.addf %162, %168 : vector<1x8x8x128xf32>
    %c0_112 = arith.constant 0 : index
    %c2_113 = arith.constant 2 : index
    %c4_114 = arith.constant 4 : index
    %c0_115 = arith.constant 0 : index
    %170 = vector.load %arg14[%c0_112, %c2_113, %c4_114, %c0_115] : memref<1x16x16x128xf32, #tpu.memory_space<vmem>>, vector<1x8x8x128xf32>
    %171 = vector.extract_strided_slice %103 {offsets = [8, 0], sizes = [1, 128], strides = [1, 1]} : vector<41x128xf32> to vector<1x128xf32>
    %172 = vector.shape_cast %171 : vector<1x128xf32> to vector<128xf32>
    %173 = vector.shape_cast %172 : vector<128xf32> to vector<1x1x1x128xf32>
    %174 = vector.broadcast %173 : vector<1x1x1x128xf32> to vector<1x8x8x128xf32>
    %175 = arith.mulf %170, %174 : vector<1x8x8x128xf32>
    %176 = arith.addf %169, %175 : vector<1x8x8x128xf32>
    %c0_116 = arith.constant 0 : index
    %c2_117 = arith.constant 2 : index
    %c5 = arith.constant 5 : index
    %c0_118 = arith.constant 0 : index
    %177 = vector.load %arg14[%c0_116, %c2_117, %c5, %c0_118] : memref<1x16x16x128xf32, #tpu.memory_space<vmem>>, vector<1x8x8x128xf32>
    %178 = vector.extract_strided_slice %103 {offsets = [9, 0], sizes = [1, 128], strides = [1, 1]} : vector<41x128xf32> to vector<1x128xf32>
    %179 = vector.shape_cast %178 : vector<1x128xf32> to vector<128xf32>
    %180 = vector.shape_cast %179 : vector<128xf32> to vector<1x1x1x128xf32>
    %181 = vector.broadcast %180 : vector<1x1x1x128xf32> to vector<1x8x8x128xf32>
    %182 = arith.mulf %177, %181 : vector<1x8x8x128xf32>
    %183 = arith.addf %176, %182 : vector<1x8x8x128xf32>
    %c0_119 = arith.constant 0 : index
    %c2_120 = arith.constant 2 : index
    %c6_121 = arith.constant 6 : index
    %c0_122 = arith.constant 0 : index
    %184 = vector.load %arg14[%c0_119, %c2_120, %c6_121, %c0_122] : memref<1x16x16x128xf32, #tpu.memory_space<vmem>>, vector<1x8x8x128xf32>
    %185 = vector.extract_strided_slice %103 {offsets = [10, 0], sizes = [1, 128], strides = [1, 1]} : vector<41x128xf32> to vector<1x128xf32>
    %186 = vector.shape_cast %185 : vector<1x128xf32> to vector<128xf32>
    %187 = vector.shape_cast %186 : vector<128xf32> to vector<1x1x1x128xf32>
    %188 = vector.broadcast %187 : vector<1x1x1x128xf32> to vector<1x8x8x128xf32>
    %189 = arith.mulf %184, %188 : vector<1x8x8x128xf32>
    %190 = arith.addf %183, %189 : vector<1x8x8x128xf32>
    %c0_123 = arith.constant 0 : index
    %c2_124 = arith.constant 2 : index
    %c8_125 = arith.constant 8 : index
    %c0_126 = arith.constant 0 : index
    %191 = vector.load %arg14[%c0_123, %c2_124, %c8_125, %c0_126] : memref<1x16x16x128xf32, #tpu.memory_space<vmem>>, vector<1x8x8x128xf32>
    %192 = vector.extract_strided_slice %103 {offsets = [11, 0], sizes = [1, 128], strides = [1, 1]} : vector<41x128xf32> to vector<1x128xf32>
    %193 = vector.shape_cast %192 : vector<1x128xf32> to vector<128xf32>
    %194 = vector.shape_cast %193 : vector<128xf32> to vector<1x1x1x128xf32>
    %195 = vector.broadcast %194 : vector<1x1x1x128xf32> to vector<1x8x8x128xf32>
    %196 = arith.mulf %191, %195 : vector<1x8x8x128xf32>
    %197 = arith.addf %190, %196 : vector<1x8x8x128xf32>
    %c0_127 = arith.constant 0 : index
    %c3_128 = arith.constant 3 : index
    %c2_129 = arith.constant 2 : index
    %c0_130 = arith.constant 0 : index
    %198 = vector.load %arg14[%c0_127, %c3_128, %c2_129, %c0_130] : memref<1x16x16x128xf32, #tpu.memory_space<vmem>>, vector<1x8x8x128xf32>
    %199 = vector.extract_strided_slice %103 {offsets = [12, 0], sizes = [1, 128], strides = [1, 1]} : vector<41x128xf32> to vector<1x128xf32>
    %200 = vector.shape_cast %199 : vector<1x128xf32> to vector<128xf32>
    %201 = vector.shape_cast %200 : vector<128xf32> to vector<1x1x1x128xf32>
    %202 = vector.broadcast %201 : vector<1x1x1x128xf32> to vector<1x8x8x128xf32>
    %203 = arith.mulf %198, %202 : vector<1x8x8x128xf32>
    %204 = arith.addf %197, %203 : vector<1x8x8x128xf32>
    %c0_131 = arith.constant 0 : index
    %c3_132 = arith.constant 3 : index
    %c3_133 = arith.constant 3 : index
    %c0_134 = arith.constant 0 : index
    %205 = vector.load %arg14[%c0_131, %c3_132, %c3_133, %c0_134] : memref<1x16x16x128xf32, #tpu.memory_space<vmem>>, vector<1x8x8x128xf32>
    %206 = vector.extract_strided_slice %103 {offsets = [13, 0], sizes = [1, 128], strides = [1, 1]} : vector<41x128xf32> to vector<1x128xf32>
    %207 = vector.shape_cast %206 : vector<1x128xf32> to vector<128xf32>
    %208 = vector.shape_cast %207 : vector<128xf32> to vector<1x1x1x128xf32>
    %209 = vector.broadcast %208 : vector<1x1x1x128xf32> to vector<1x8x8x128xf32>
    %210 = arith.mulf %205, %209 : vector<1x8x8x128xf32>
    %211 = arith.addf %204, %210 : vector<1x8x8x128xf32>
    %c0_135 = arith.constant 0 : index
    %c3_136 = arith.constant 3 : index
    %c4_137 = arith.constant 4 : index
    %c0_138 = arith.constant 0 : index
    %212 = vector.load %arg14[%c0_135, %c3_136, %c4_137, %c0_138] : memref<1x16x16x128xf32, #tpu.memory_space<vmem>>, vector<1x8x8x128xf32>
    %213 = vector.extract_strided_slice %103 {offsets = [14, 0], sizes = [1, 128], strides = [1, 1]} : vector<41x128xf32> to vector<1x128xf32>
    %214 = vector.shape_cast %213 : vector<1x128xf32> to vector<128xf32>
    %215 = vector.shape_cast %214 : vector<128xf32> to vector<1x1x1x128xf32>
    %216 = vector.broadcast %215 : vector<1x1x1x128xf32> to vector<1x8x8x128xf32>
    %217 = arith.mulf %212, %216 : vector<1x8x8x128xf32>
    %218 = arith.addf %211, %217 : vector<1x8x8x128xf32>
    %c0_139 = arith.constant 0 : index
    %c3_140 = arith.constant 3 : index
    %c5_141 = arith.constant 5 : index
    %c0_142 = arith.constant 0 : index
    %219 = vector.load %arg14[%c0_139, %c3_140, %c5_141, %c0_142] : memref<1x16x16x128xf32, #tpu.memory_space<vmem>>, vector<1x8x8x128xf32>
    %220 = vector.extract_strided_slice %103 {offsets = [15, 0], sizes = [1, 128], strides = [1, 1]} : vector<41x128xf32> to vector<1x128xf32>
    %221 = vector.shape_cast %220 : vector<1x128xf32> to vector<128xf32>
    %222 = vector.shape_cast %221 : vector<128xf32> to vector<1x1x1x128xf32>
    %223 = vector.broadcast %222 : vector<1x1x1x128xf32> to vector<1x8x8x128xf32>
    %224 = arith.mulf %219, %223 : vector<1x8x8x128xf32>
    %225 = arith.addf %218, %224 : vector<1x8x8x128xf32>
    %c0_143 = arith.constant 0 : index
    %c3_144 = arith.constant 3 : index
    %c6_145 = arith.constant 6 : index
    %c0_146 = arith.constant 0 : index
    %226 = vector.load %arg14[%c0_143, %c3_144, %c6_145, %c0_146] : memref<1x16x16x128xf32, #tpu.memory_space<vmem>>, vector<1x8x8x128xf32>
    %227 = vector.extract_strided_slice %103 {offsets = [16, 0], sizes = [1, 128], strides = [1, 1]} : vector<41x128xf32> to vector<1x128xf32>
    %228 = vector.shape_cast %227 : vector<1x128xf32> to vector<128xf32>
    %229 = vector.shape_cast %228 : vector<128xf32> to vector<1x1x1x128xf32>
    %230 = vector.broadcast %229 : vector<1x1x1x128xf32> to vector<1x8x8x128xf32>
    %231 = arith.mulf %226, %230 : vector<1x8x8x128xf32>
    %232 = arith.addf %225, %231 : vector<1x8x8x128xf32>
    %c0_147 = arith.constant 0 : index
    %c4_148 = arith.constant 4 : index
    %c0_149 = arith.constant 0 : index
    %c0_150 = arith.constant 0 : index
    %233 = vector.load %arg14[%c0_147, %c4_148, %c0_149, %c0_150] : memref<1x16x16x128xf32, #tpu.memory_space<vmem>>, vector<1x8x8x128xf32>
    %234 = vector.extract_strided_slice %103 {offsets = [17, 0], sizes = [1, 128], strides = [1, 1]} : vector<41x128xf32> to vector<1x128xf32>
    %235 = vector.shape_cast %234 : vector<1x128xf32> to vector<128xf32>
    %236 = vector.shape_cast %235 : vector<128xf32> to vector<1x1x1x128xf32>
    %237 = vector.broadcast %236 : vector<1x1x1x128xf32> to vector<1x8x8x128xf32>
    %238 = arith.mulf %233, %237 : vector<1x8x8x128xf32>
    %239 = arith.addf %232, %238 : vector<1x8x8x128xf32>
    %c0_151 = arith.constant 0 : index
    %c4_152 = arith.constant 4 : index
    %c2_153 = arith.constant 2 : index
    %c0_154 = arith.constant 0 : index
    %240 = vector.load %arg14[%c0_151, %c4_152, %c2_153, %c0_154] : memref<1x16x16x128xf32, #tpu.memory_space<vmem>>, vector<1x8x8x128xf32>
    %241 = vector.extract_strided_slice %103 {offsets = [18, 0], sizes = [1, 128], strides = [1, 1]} : vector<41x128xf32> to vector<1x128xf32>
    %242 = vector.shape_cast %241 : vector<1x128xf32> to vector<128xf32>
    %243 = vector.shape_cast %242 : vector<128xf32> to vector<1x1x1x128xf32>
    %244 = vector.broadcast %243 : vector<1x1x1x128xf32> to vector<1x8x8x128xf32>
    %245 = arith.mulf %240, %244 : vector<1x8x8x128xf32>
    %246 = arith.addf %239, %245 : vector<1x8x8x128xf32>
    %c0_155 = arith.constant 0 : index
    %c4_156 = arith.constant 4 : index
    %c3_157 = arith.constant 3 : index
    %c0_158 = arith.constant 0 : index
    %247 = vector.load %arg14[%c0_155, %c4_156, %c3_157, %c0_158] : memref<1x16x16x128xf32, #tpu.memory_space<vmem>>, vector<1x8x8x128xf32>
    %248 = vector.extract_strided_slice %103 {offsets = [19, 0], sizes = [1, 128], strides = [1, 1]} : vector<41x128xf32> to vector<1x128xf32>
    %249 = vector.shape_cast %248 : vector<1x128xf32> to vector<128xf32>
    %250 = vector.shape_cast %249 : vector<128xf32> to vector<1x1x1x128xf32>
    %251 = vector.broadcast %250 : vector<1x1x1x128xf32> to vector<1x8x8x128xf32>
    %252 = arith.mulf %247, %251 : vector<1x8x8x128xf32>
    %253 = arith.addf %246, %252 : vector<1x8x8x128xf32>
    %c0_159 = arith.constant 0 : index
    %c4_160 = arith.constant 4 : index
    %c4_161 = arith.constant 4 : index
    %c0_162 = arith.constant 0 : index
    %254 = vector.load %arg14[%c0_159, %c4_160, %c4_161, %c0_162] : memref<1x16x16x128xf32, #tpu.memory_space<vmem>>, vector<1x8x8x128xf32>
    %255 = vector.extract_strided_slice %103 {offsets = [20, 0], sizes = [1, 128], strides = [1, 1]} : vector<41x128xf32> to vector<1x128xf32>
    %256 = vector.shape_cast %255 : vector<1x128xf32> to vector<128xf32>
    %257 = vector.shape_cast %256 : vector<128xf32> to vector<1x1x1x128xf32>
    %258 = vector.broadcast %257 : vector<1x1x1x128xf32> to vector<1x8x8x128xf32>
    %259 = arith.mulf %254, %258 : vector<1x8x8x128xf32>
    %260 = arith.addf %253, %259 : vector<1x8x8x128xf32>
    %c0_163 = arith.constant 0 : index
    %c4_164 = arith.constant 4 : index
    %c5_165 = arith.constant 5 : index
    %c0_166 = arith.constant 0 : index
    %261 = vector.load %arg14[%c0_163, %c4_164, %c5_165, %c0_166] : memref<1x16x16x128xf32, #tpu.memory_space<vmem>>, vector<1x8x8x128xf32>
    %262 = vector.extract_strided_slice %103 {offsets = [21, 0], sizes = [1, 128], strides = [1, 1]} : vector<41x128xf32> to vector<1x128xf32>
    %263 = vector.shape_cast %262 : vector<1x128xf32> to vector<128xf32>
    %264 = vector.shape_cast %263 : vector<128xf32> to vector<1x1x1x128xf32>
    %265 = vector.broadcast %264 : vector<1x1x1x128xf32> to vector<1x8x8x128xf32>
    %266 = arith.mulf %261, %265 : vector<1x8x8x128xf32>
    %267 = arith.addf %260, %266 : vector<1x8x8x128xf32>
    %c0_167 = arith.constant 0 : index
    %c4_168 = arith.constant 4 : index
    %c6_169 = arith.constant 6 : index
    %c0_170 = arith.constant 0 : index
    %268 = vector.load %arg14[%c0_167, %c4_168, %c6_169, %c0_170] : memref<1x16x16x128xf32, #tpu.memory_space<vmem>>, vector<1x8x8x128xf32>
    %269 = vector.extract_strided_slice %103 {offsets = [22, 0], sizes = [1, 128], strides = [1, 1]} : vector<41x128xf32> to vector<1x128xf32>
    %270 = vector.shape_cast %269 : vector<1x128xf32> to vector<128xf32>
    %271 = vector.shape_cast %270 : vector<128xf32> to vector<1x1x1x128xf32>
    %272 = vector.broadcast %271 : vector<1x1x1x128xf32> to vector<1x8x8x128xf32>
    %273 = arith.mulf %268, %272 : vector<1x8x8x128xf32>
    %274 = arith.addf %267, %273 : vector<1x8x8x128xf32>
    %c0_171 = arith.constant 0 : index
    %c4_172 = arith.constant 4 : index
    %c8_173 = arith.constant 8 : index
    %c0_174 = arith.constant 0 : index
    %275 = vector.load %arg14[%c0_171, %c4_172, %c8_173, %c0_174] : memref<1x16x16x128xf32, #tpu.memory_space<vmem>>, vector<1x8x8x128xf32>
    %276 = vector.extract_strided_slice %103 {offsets = [23, 0], sizes = [1, 128], strides = [1, 1]} : vector<41x128xf32> to vector<1x128xf32>
    %277 = vector.shape_cast %276 : vector<1x128xf32> to vector<128xf32>
    %278 = vector.shape_cast %277 : vector<128xf32> to vector<1x1x1x128xf32>
    %279 = vector.broadcast %278 : vector<1x1x1x128xf32> to vector<1x8x8x128xf32>
    %280 = arith.mulf %275, %279 : vector<1x8x8x128xf32>
    %281 = arith.addf %274, %280 : vector<1x8x8x128xf32>
    %c0_175 = arith.constant 0 : index
    %c5_176 = arith.constant 5 : index
    %c2_177 = arith.constant 2 : index
    %c0_178 = arith.constant 0 : index
    %282 = vector.load %arg14[%c0_175, %c5_176, %c2_177, %c0_178] : memref<1x16x16x128xf32, #tpu.memory_space<vmem>>, vector<1x8x8x128xf32>
    %283 = vector.extract_strided_slice %103 {offsets = [24, 0], sizes = [1, 128], strides = [1, 1]} : vector<41x128xf32> to vector<1x128xf32>
    %284 = vector.shape_cast %283 : vector<1x128xf32> to vector<128xf32>
    %285 = vector.shape_cast %284 : vector<128xf32> to vector<1x1x1x128xf32>
    %286 = vector.broadcast %285 : vector<1x1x1x128xf32> to vector<1x8x8x128xf32>
    %287 = arith.mulf %282, %286 : vector<1x8x8x128xf32>
    %288 = arith.addf %281, %287 : vector<1x8x8x128xf32>
    %c0_179 = arith.constant 0 : index
    %c5_180 = arith.constant 5 : index
    %c3_181 = arith.constant 3 : index
    %c0_182 = arith.constant 0 : index
    %289 = vector.load %arg14[%c0_179, %c5_180, %c3_181, %c0_182] : memref<1x16x16x128xf32, #tpu.memory_space<vmem>>, vector<1x8x8x128xf32>
    %290 = vector.extract_strided_slice %103 {offsets = [25, 0], sizes = [1, 128], strides = [1, 1]} : vector<41x128xf32> to vector<1x128xf32>
    %291 = vector.shape_cast %290 : vector<1x128xf32> to vector<128xf32>
    %292 = vector.shape_cast %291 : vector<128xf32> to vector<1x1x1x128xf32>
    %293 = vector.broadcast %292 : vector<1x1x1x128xf32> to vector<1x8x8x128xf32>
    %294 = arith.mulf %289, %293 : vector<1x8x8x128xf32>
    %295 = arith.addf %288, %294 : vector<1x8x8x128xf32>
    %c0_183 = arith.constant 0 : index
    %c5_184 = arith.constant 5 : index
    %c4_185 = arith.constant 4 : index
    %c0_186 = arith.constant 0 : index
    %296 = vector.load %arg14[%c0_183, %c5_184, %c4_185, %c0_186] : memref<1x16x16x128xf32, #tpu.memory_space<vmem>>, vector<1x8x8x128xf32>
    %297 = vector.extract_strided_slice %103 {offsets = [26, 0], sizes = [1, 128], strides = [1, 1]} : vector<41x128xf32> to vector<1x128xf32>
    %298 = vector.shape_cast %297 : vector<1x128xf32> to vector<128xf32>
    %299 = vector.shape_cast %298 : vector<128xf32> to vector<1x1x1x128xf32>
    %300 = vector.broadcast %299 : vector<1x1x1x128xf32> to vector<1x8x8x128xf32>
    %301 = arith.mulf %296, %300 : vector<1x8x8x128xf32>
    %302 = arith.addf %295, %301 : vector<1x8x8x128xf32>
    %c0_187 = arith.constant 0 : index
    %c5_188 = arith.constant 5 : index
    %c5_189 = arith.constant 5 : index
    %c0_190 = arith.constant 0 : index
    %303 = vector.load %arg14[%c0_187, %c5_188, %c5_189, %c0_190] : memref<1x16x16x128xf32, #tpu.memory_space<vmem>>, vector<1x8x8x128xf32>
    %304 = vector.extract_strided_slice %103 {offsets = [27, 0], sizes = [1, 128], strides = [1, 1]} : vector<41x128xf32> to vector<1x128xf32>
    %305 = vector.shape_cast %304 : vector<1x128xf32> to vector<128xf32>
    %306 = vector.shape_cast %305 : vector<128xf32> to vector<1x1x1x128xf32>
    %307 = vector.broadcast %306 : vector<1x1x1x128xf32> to vector<1x8x8x128xf32>
    %308 = arith.mulf %303, %307 : vector<1x8x8x128xf32>
    %309 = arith.addf %302, %308 : vector<1x8x8x128xf32>
    %c0_191 = arith.constant 0 : index
    %c5_192 = arith.constant 5 : index
    %c6_193 = arith.constant 6 : index
    %c0_194 = arith.constant 0 : index
    %310 = vector.load %arg14[%c0_191, %c5_192, %c6_193, %c0_194] : memref<1x16x16x128xf32, #tpu.memory_space<vmem>>, vector<1x8x8x128xf32>
    %311 = vector.extract_strided_slice %103 {offsets = [28, 0], sizes = [1, 128], strides = [1, 1]} : vector<41x128xf32> to vector<1x128xf32>
    %312 = vector.shape_cast %311 : vector<1x128xf32> to vector<128xf32>
    %313 = vector.shape_cast %312 : vector<128xf32> to vector<1x1x1x128xf32>
    %314 = vector.broadcast %313 : vector<1x1x1x128xf32> to vector<1x8x8x128xf32>
    %315 = arith.mulf %310, %314 : vector<1x8x8x128xf32>
    %316 = arith.addf %309, %315 : vector<1x8x8x128xf32>
    %c0_195 = arith.constant 0 : index
    %c6_196 = arith.constant 6 : index
    %c0_197 = arith.constant 0 : index
    %c0_198 = arith.constant 0 : index
    %317 = vector.load %arg14[%c0_195, %c6_196, %c0_197, %c0_198] : memref<1x16x16x128xf32, #tpu.memory_space<vmem>>, vector<1x8x8x128xf32>
    %318 = vector.extract_strided_slice %103 {offsets = [29, 0], sizes = [1, 128], strides = [1, 1]} : vector<41x128xf32> to vector<1x128xf32>
    %319 = vector.shape_cast %318 : vector<1x128xf32> to vector<128xf32>
    %320 = vector.shape_cast %319 : vector<128xf32> to vector<1x1x1x128xf32>
    %321 = vector.broadcast %320 : vector<1x1x1x128xf32> to vector<1x8x8x128xf32>
    %322 = arith.mulf %317, %321 : vector<1x8x8x128xf32>
    %323 = arith.addf %316, %322 : vector<1x8x8x128xf32>
    %c0_199 = arith.constant 0 : index
    %c6_200 = arith.constant 6 : index
    %c2_201 = arith.constant 2 : index
    %c0_202 = arith.constant 0 : index
    %324 = vector.load %arg14[%c0_199, %c6_200, %c2_201, %c0_202] : memref<1x16x16x128xf32, #tpu.memory_space<vmem>>, vector<1x8x8x128xf32>
    %325 = vector.extract_strided_slice %103 {offsets = [30, 0], sizes = [1, 128], strides = [1, 1]} : vector<41x128xf32> to vector<1x128xf32>
    %326 = vector.shape_cast %325 : vector<1x128xf32> to vector<128xf32>
    %327 = vector.shape_cast %326 : vector<128xf32> to vector<1x1x1x128xf32>
    %328 = vector.broadcast %327 : vector<1x1x1x128xf32> to vector<1x8x8x128xf32>
    %329 = arith.mulf %324, %328 : vector<1x8x8x128xf32>
    %330 = arith.addf %323, %329 : vector<1x8x8x128xf32>
    %c0_203 = arith.constant 0 : index
    %c6_204 = arith.constant 6 : index
    %c3_205 = arith.constant 3 : index
    %c0_206 = arith.constant 0 : index
    %331 = vector.load %arg14[%c0_203, %c6_204, %c3_205, %c0_206] : memref<1x16x16x128xf32, #tpu.memory_space<vmem>>, vector<1x8x8x128xf32>
    %332 = vector.extract_strided_slice %103 {offsets = [31, 0], sizes = [1, 128], strides = [1, 1]} : vector<41x128xf32> to vector<1x128xf32>
    %333 = vector.shape_cast %332 : vector<1x128xf32> to vector<128xf32>
    %334 = vector.shape_cast %333 : vector<128xf32> to vector<1x1x1x128xf32>
    %335 = vector.broadcast %334 : vector<1x1x1x128xf32> to vector<1x8x8x128xf32>
    %336 = arith.mulf %331, %335 : vector<1x8x8x128xf32>
    %337 = arith.addf %330, %336 : vector<1x8x8x128xf32>
    %c0_207 = arith.constant 0 : index
    %c6_208 = arith.constant 6 : index
    %c4_209 = arith.constant 4 : index
    %c0_210 = arith.constant 0 : index
    %338 = vector.load %arg14[%c0_207, %c6_208, %c4_209, %c0_210] : memref<1x16x16x128xf32, #tpu.memory_space<vmem>>, vector<1x8x8x128xf32>
    %339 = vector.extract_strided_slice %103 {offsets = [32, 0], sizes = [1, 128], strides = [1, 1]} : vector<41x128xf32> to vector<1x128xf32>
    %340 = vector.shape_cast %339 : vector<1x128xf32> to vector<128xf32>
    %341 = vector.shape_cast %340 : vector<128xf32> to vector<1x1x1x128xf32>
    %342 = vector.broadcast %341 : vector<1x1x1x128xf32> to vector<1x8x8x128xf32>
    %343 = arith.mulf %338, %342 : vector<1x8x8x128xf32>
    %344 = arith.addf %337, %343 : vector<1x8x8x128xf32>
    %c0_211 = arith.constant 0 : index
    %c6_212 = arith.constant 6 : index
    %c5_213 = arith.constant 5 : index
    %c0_214 = arith.constant 0 : index
    %345 = vector.load %arg14[%c0_211, %c6_212, %c5_213, %c0_214] : memref<1x16x16x128xf32, #tpu.memory_space<vmem>>, vector<1x8x8x128xf32>
    %346 = vector.extract_strided_slice %103 {offsets = [33, 0], sizes = [1, 128], strides = [1, 1]} : vector<41x128xf32> to vector<1x128xf32>
    %347 = vector.shape_cast %346 : vector<1x128xf32> to vector<128xf32>
    %348 = vector.shape_cast %347 : vector<128xf32> to vector<1x1x1x128xf32>
    %349 = vector.broadcast %348 : vector<1x1x1x128xf32> to vector<1x8x8x128xf32>
    %350 = arith.mulf %345, %349 : vector<1x8x8x128xf32>
    %351 = arith.addf %344, %350 : vector<1x8x8x128xf32>
    %c0_215 = arith.constant 0 : index
    %c6_216 = arith.constant 6 : index
    %c6_217 = arith.constant 6 : index
    %c0_218 = arith.constant 0 : index
    %352 = vector.load %arg14[%c0_215, %c6_216, %c6_217, %c0_218] : memref<1x16x16x128xf32, #tpu.memory_space<vmem>>, vector<1x8x8x128xf32>
    %353 = vector.extract_strided_slice %103 {offsets = [34, 0], sizes = [1, 128], strides = [1, 1]} : vector<41x128xf32> to vector<1x128xf32>
    %354 = vector.shape_cast %353 : vector<1x128xf32> to vector<128xf32>
    %355 = vector.shape_cast %354 : vector<128xf32> to vector<1x1x1x128xf32>
    %356 = vector.broadcast %355 : vector<1x1x1x128xf32> to vector<1x8x8x128xf32>
    %357 = arith.mulf %352, %356 : vector<1x8x8x128xf32>
    %358 = arith.addf %351, %357 : vector<1x8x8x128xf32>
    %c0_219 = arith.constant 0 : index
    %c6_220 = arith.constant 6 : index
    %c8_221 = arith.constant 8 : index
    %c0_222 = arith.constant 0 : index
    %359 = vector.load %arg14[%c0_219, %c6_220, %c8_221, %c0_222] : memref<1x16x16x128xf32, #tpu.memory_space<vmem>>, vector<1x8x8x128xf32>
    %360 = vector.extract_strided_slice %103 {offsets = [35, 0], sizes = [1, 128], strides = [1, 1]} : vector<41x128xf32> to vector<1x128xf32>
    %361 = vector.shape_cast %360 : vector<1x128xf32> to vector<128xf32>
    %362 = vector.shape_cast %361 : vector<128xf32> to vector<1x1x1x128xf32>
    %363 = vector.broadcast %362 : vector<1x1x1x128xf32> to vector<1x8x8x128xf32>
    %364 = arith.mulf %359, %363 : vector<1x8x8x128xf32>
    %365 = arith.addf %358, %364 : vector<1x8x8x128xf32>
    %c0_223 = arith.constant 0 : index
    %c8_224 = arith.constant 8 : index
    %c0_225 = arith.constant 0 : index
    %c0_226 = arith.constant 0 : index
    %366 = vector.load %arg14[%c0_223, %c8_224, %c0_225, %c0_226] : memref<1x16x16x128xf32, #tpu.memory_space<vmem>>, vector<1x8x8x128xf32>
    %367 = vector.extract_strided_slice %103 {offsets = [36, 0], sizes = [1, 128], strides = [1, 1]} : vector<41x128xf32> to vector<1x128xf32>
    %368 = vector.shape_cast %367 : vector<1x128xf32> to vector<128xf32>
    %369 = vector.shape_cast %368 : vector<128xf32> to vector<1x1x1x128xf32>
    %370 = vector.broadcast %369 : vector<1x1x1x128xf32> to vector<1x8x8x128xf32>
    %371 = arith.mulf %366, %370 : vector<1x8x8x128xf32>
    %372 = arith.addf %365, %371 : vector<1x8x8x128xf32>
    %c0_227 = arith.constant 0 : index
    %c8_228 = arith.constant 8 : index
    %c2_229 = arith.constant 2 : index
    %c0_230 = arith.constant 0 : index
    %373 = vector.load %arg14[%c0_227, %c8_228, %c2_229, %c0_230] : memref<1x16x16x128xf32, #tpu.memory_space<vmem>>, vector<1x8x8x128xf32>
    %374 = vector.extract_strided_slice %103 {offsets = [37, 0], sizes = [1, 128], strides = [1, 1]} : vector<41x128xf32> to vector<1x128xf32>
    %375 = vector.shape_cast %374 : vector<1x128xf32> to vector<128xf32>
    %376 = vector.shape_cast %375 : vector<128xf32> to vector<1x1x1x128xf32>
    %377 = vector.broadcast %376 : vector<1x1x1x128xf32> to vector<1x8x8x128xf32>
    %378 = arith.mulf %373, %377 : vector<1x8x8x128xf32>
    %379 = arith.addf %372, %378 : vector<1x8x8x128xf32>
    %c0_231 = arith.constant 0 : index
    %c8_232 = arith.constant 8 : index
    %c4_233 = arith.constant 4 : index
    %c0_234 = arith.constant 0 : index
    %380 = vector.load %arg14[%c0_231, %c8_232, %c4_233, %c0_234] : memref<1x16x16x128xf32, #tpu.memory_space<vmem>>, vector<1x8x8x128xf32>
    %381 = vector.extract_strided_slice %103 {offsets = [38, 0], sizes = [1, 128], strides = [1, 1]} : vector<41x128xf32> to vector<1x128xf32>
    %382 = vector.shape_cast %381 : vector<1x128xf32> to vector<128xf32>
    %383 = vector.shape_cast %382 : vector<128xf32> to vector<1x1x1x128xf32>
    %384 = vector.broadcast %383 : vector<1x1x1x128xf32> to vector<1x8x8x128xf32>
    %385 = arith.mulf %380, %384 : vector<1x8x8x128xf32>
    %386 = arith.addf %379, %385 : vector<1x8x8x128xf32>
    %c0_235 = arith.constant 0 : index
    %c8_236 = arith.constant 8 : index
    %c6_237 = arith.constant 6 : index
    %c0_238 = arith.constant 0 : index
    %387 = vector.load %arg14[%c0_235, %c8_236, %c6_237, %c0_238] : memref<1x16x16x128xf32, #tpu.memory_space<vmem>>, vector<1x8x8x128xf32>
    %388 = vector.extract_strided_slice %103 {offsets = [39, 0], sizes = [1, 128], strides = [1, 1]} : vector<41x128xf32> to vector<1x128xf32>
    %389 = vector.shape_cast %388 : vector<1x128xf32> to vector<128xf32>
    %390 = vector.shape_cast %389 : vector<128xf32> to vector<1x1x1x128xf32>
    %391 = vector.broadcast %390 : vector<1x1x1x128xf32> to vector<1x8x8x128xf32>
    %392 = arith.mulf %387, %391 : vector<1x8x8x128xf32>
    %393 = arith.addf %386, %392 : vector<1x8x8x128xf32>
    %c0_239 = arith.constant 0 : index
    %c8_240 = arith.constant 8 : index
    %c8_241 = arith.constant 8 : index
    %c0_242 = arith.constant 0 : index
    %394 = vector.load %arg14[%c0_239, %c8_240, %c8_241, %c0_242] : memref<1x16x16x128xf32, #tpu.memory_space<vmem>>, vector<1x8x8x128xf32>
    %395 = vector.extract_strided_slice %103 {offsets = [40, 0], sizes = [1, 128], strides = [1, 1]} : vector<41x128xf32> to vector<1x128xf32>
    %396 = vector.shape_cast %395 : vector<1x128xf32> to vector<128xf32>
    %397 = vector.shape_cast %396 : vector<128xf32> to vector<1x1x1x128xf32>
    %398 = vector.broadcast %397 : vector<1x1x1x128xf32> to vector<1x8x8x128xf32>
    %399 = arith.mulf %394, %398 : vector<1x8x8x128xf32>
    %400 = arith.addf %393, %399 : vector<1x8x8x128xf32>
    %401 = vector.shape_cast %400 : vector<1x8x8x128xf32> to vector<64x128xf32>
    %402 = arith.truncf %401 : vector<64x128xf32> to vector<64x128xbf16>
    %cst_243 = arith.constant dense<0.000000e+00> : vector<64x128xf32>
    %403 = tpu.matmul %402, %104, %cst_243 {dimension_numbers = #tpu.dot_dimension_numbers<[1], [0], [0], [1], [0, 0, 1, 1], [], []>} : vector<64x128xbf16>, vector<128x128xbf16>, vector<64x128xf32> -> vector<64x128xf32>
    %404 = vector.broadcast %105 : vector<1x128xf32> to vector<64x128xf32>
    %405 = arith.mulf %403, %404 : vector<64x128xf32>
    %406 = vector.broadcast %106 : vector<1x128xf32> to vector<64x128xf32>
    %407 = arith.addf %405, %406 : vector<64x128xf32>
    %408 = vector.shape_cast %407 : vector<64x128xf32> to vector<1x8x8x128xf32>
    %c0_244 = arith.constant 0 : index
    %c6_245 = arith.constant 6 : index
    %409 = memref.load %arg1[%c0_244, %c6_245] : memref<1x8xf32, #tpu.memory_space<smem>>
    %410 = vector.extract_strided_slice %408 {offsets = [0, 0, 0, 64], sizes = [1, 8, 8, 32], strides = [1, 1, 1, 1]} : vector<1x8x8x128xf32> to vector<1x8x8x32xf32>
    %411 = vector.broadcast %409 : f32 to vector<1x8x8x32xf32>
    %412 = arith.mulf %411, %410 : vector<1x8x8x32xf32>
    %413 = arith.addf %102, %412 : vector<1x8x8x32xf32>
    %c0_246 = arith.constant 0 : index
    %c7 = arith.constant 7 : index
    %414 = memref.load %arg1[%c0_246, %c7] : memref<1x8xf32, #tpu.memory_space<smem>>
    %415 = vector.extract_strided_slice %408 {offsets = [0, 0, 0, 96], sizes = [1, 8, 8, 32], strides = [1, 1, 1, 1]} : vector<1x8x8x128xf32> to vector<1x8x8x32xf32>
    %416 = vector.broadcast %414 : f32 to vector<1x8x8x32xf32>
    %417 = arith.mulf %416, %415 : vector<1x8x8x32xf32>
    %418 = arith.addf %413, %417 : vector<1x8x8x32xf32>
    %419 = vector.extract_strided_slice %408 {offsets = [0, 0, 0, 0], sizes = [1, 8, 8, 64], strides = [1, 1, 1, 1]} : vector<1x8x8x128xf32> to vector<1x8x8x64xf32>
    %cst_247 = arith.constant 0.000000e+00 : f32
    %420 = vector.broadcast %cst_247 : f32 to vector<1x8x8x64xf32>
    %421 = arith.maximumf %419, %420 : vector<1x8x8x64xf32>
    %c0_248 = arith.constant 0 : index
    %c0_249 = arith.constant 0 : index
    %422 = vector.load %arg7[%c0_248, %c0_249] : memref<25x64xf32, #tpu.memory_space<vmem>>, vector<25x64xf32>
    %c0_250 = arith.constant 0 : index
    %c0_251 = arith.constant 0 : index
    %423 = vector.load %arg8[%c0_250, %c0_251] : memref<64x64xbf16, #tpu.memory_space<vmem>>, vector<64x64xbf16>
    %c0_252 = arith.constant 0 : index
    %c0_253 = arith.constant 0 : index
    %424 = vector.load %arg9[%c0_252, %c0_253] : memref<1x64xf32, #tpu.memory_space<vmem>>, vector<1x64xf32>
    %c0_254 = arith.constant 0 : index
    %c0_255 = arith.constant 0 : index
    %425 = vector.load %arg10[%c0_254, %c0_255] : memref<1x64xf32, #tpu.memory_space<vmem>>, vector<1x64xf32>
    %cst_256 = arith.constant 0.000000e+00 : f32
    %426 = vector.broadcast %cst_256 : f32 to vector<1x12x12x64xf32>
    %c0_257 = arith.constant 0 : index
    %c0_258 = arith.constant 0 : index
    %c0_259 = arith.constant 0 : index
    %c0_260 = arith.constant 0 : index
    %427 = vector.load %arg15[%c0_257, %c0_258, %c0_259, %c0_260] : memref<1x12x12x64xf32, #tpu.memory_space<vmem>>, vector<1x12x12x64xf32>
    tpu.vector_store %arg15[%c0_257, %c0_258, %c0_259, %c0_260], %426 {strides = array<i32>} : memref<1x12x12x64xf32, #tpu.memory_space<vmem>>, vector<1x12x12x64xf32>,
    %c0_261 = arith.constant 0 : index
    %c2_262 = arith.constant 2 : index
    %c2_263 = arith.constant 2 : index
    %c0_264 = arith.constant 0 : index
    %428 = vector.load %arg15[%c0_261, %c2_262, %c2_263, %c0_264] : memref<1x12x12x64xf32, #tpu.memory_space<vmem>>, vector<1x8x8x64xf32>
    tpu.vector_store %arg15[%c0_261, %c2_262, %c2_263, %c0_264], %421 {strides = array<i32>} : memref<1x12x12x64xf32, #tpu.memory_space<vmem>>, vector<1x8x8x64xf32>,
    %cst_265 = arith.constant 0.000000e+00 : f32
    %429 = vector.broadcast %cst_265 : f32 to vector<1x8x8x64xf32>
    %c0_266 = arith.constant 0 : index
    %c0_267 = arith.constant 0 : index
    %c0_268 = arith.constant 0 : index
    %c0_269 = arith.constant 0 : index
    %430 = vector.load %arg15[%c0_266, %c0_267, %c0_268, %c0_269] : memref<1x12x12x64xf32, #tpu.memory_space<vmem>>, vector<1x8x8x64xf32>
    %431 = vector.extract_strided_slice %422 {offsets = [0, 0], sizes = [1, 64], strides = [1, 1]} : vector<25x64xf32> to vector<1x64xf32>
    %432 = vector.shape_cast %431 : vector<1x64xf32> to vector<64xf32>
    %433 = vector.shape_cast %432 : vector<64xf32> to vector<1x1x1x64xf32>
    %434 = vector.broadcast %433 : vector<1x1x1x64xf32> to vector<1x8x8x64xf32>
    %435 = arith.mulf %430, %434 : vector<1x8x8x64xf32>
    %436 = arith.addf %429, %435 : vector<1x8x8x64xf32>
    %c0_270 = arith.constant 0 : index
    %c0_271 = arith.constant 0 : index
    %c1_272 = arith.constant 1 : index
    %c0_273 = arith.constant 0 : index
    %437 = vector.load %arg15[%c0_270, %c0_271, %c1_272, %c0_273] : memref<1x12x12x64xf32, #tpu.memory_space<vmem>>, vector<1x8x8x64xf32>
    %438 = vector.extract_strided_slice %422 {offsets = [1, 0], sizes = [1, 64], strides = [1, 1]} : vector<25x64xf32> to vector<1x64xf32>
    %439 = vector.shape_cast %438 : vector<1x64xf32> to vector<64xf32>
    %440 = vector.shape_cast %439 : vector<64xf32> to vector<1x1x1x64xf32>
    %441 = vector.broadcast %440 : vector<1x1x1x64xf32> to vector<1x8x8x64xf32>
    %442 = arith.mulf %437, %441 : vector<1x8x8x64xf32>
    %443 = arith.addf %436, %442 : vector<1x8x8x64xf32>
    %c0_274 = arith.constant 0 : index
    %c0_275 = arith.constant 0 : index
    %c2_276 = arith.constant 2 : index
    %c0_277 = arith.constant 0 : index
    %444 = vector.load %arg15[%c0_274, %c0_275, %c2_276, %c0_277] : memref<1x12x12x64xf32, #tpu.memory_space<vmem>>, vector<1x8x8x64xf32>
    %445 = vector.extract_strided_slice %422 {offsets = [2, 0], sizes = [1, 64], strides = [1, 1]} : vector<25x64xf32> to vector<1x64xf32>
    %446 = vector.shape_cast %445 : vector<1x64xf32> to vector<64xf32>
    %447 = vector.shape_cast %446 : vector<64xf32> to vector<1x1x1x64xf32>
    %448 = vector.broadcast %447 : vector<1x1x1x64xf32> to vector<1x8x8x64xf32>
    %449 = arith.mulf %444, %448 : vector<1x8x8x64xf32>
    %450 = arith.addf %443, %449 : vector<1x8x8x64xf32>
    %c0_278 = arith.constant 0 : index
    %c0_279 = arith.constant 0 : index
    %c3_280 = arith.constant 3 : index
    %c0_281 = arith.constant 0 : index
    %451 = vector.load %arg15[%c0_278, %c0_279, %c3_280, %c0_281] : memref<1x12x12x64xf32, #tpu.memory_space<vmem>>, vector<1x8x8x64xf32>
    %452 = vector.extract_strided_slice %422 {offsets = [3, 0], sizes = [1, 64], strides = [1, 1]} : vector<25x64xf32> to vector<1x64xf32>
    %453 = vector.shape_cast %452 : vector<1x64xf32> to vector<64xf32>
    %454 = vector.shape_cast %453 : vector<64xf32> to vector<1x1x1x64xf32>
    %455 = vector.broadcast %454 : vector<1x1x1x64xf32> to vector<1x8x8x64xf32>
    %456 = arith.mulf %451, %455 : vector<1x8x8x64xf32>
    %457 = arith.addf %450, %456 : vector<1x8x8x64xf32>
    %c0_282 = arith.constant 0 : index
    %c0_283 = arith.constant 0 : index
    %c4_284 = arith.constant 4 : index
    %c0_285 = arith.constant 0 : index
    %458 = vector.load %arg15[%c0_282, %c0_283, %c4_284, %c0_285] : memref<1x12x12x64xf32, #tpu.memory_space<vmem>>, vector<1x8x8x64xf32>
    %459 = vector.extract_strided_slice %422 {offsets = [4, 0], sizes = [1, 64], strides = [1, 1]} : vector<25x64xf32> to vector<1x64xf32>
    %460 = vector.shape_cast %459 : vector<1x64xf32> to vector<64xf32>
    %461 = vector.shape_cast %460 : vector<64xf32> to vector<1x1x1x64xf32>
    %462 = vector.broadcast %461 : vector<1x1x1x64xf32> to vector<1x8x8x64xf32>
    %463 = arith.mulf %458, %462 : vector<1x8x8x64xf32>
    %464 = arith.addf %457, %463 : vector<1x8x8x64xf32>
    %c0_286 = arith.constant 0 : index
    %c1_287 = arith.constant 1 : index
    %c0_288 = arith.constant 0 : index
    %c0_289 = arith.constant 0 : index
    %465 = vector.load %arg15[%c0_286, %c1_287, %c0_288, %c0_289] : memref<1x12x12x64xf32, #tpu.memory_space<vmem>>, vector<1x8x8x64xf32>
    %466 = vector.extract_strided_slice %422 {offsets = [5, 0], sizes = [1, 64], strides = [1, 1]} : vector<25x64xf32> to vector<1x64xf32>
    %467 = vector.shape_cast %466 : vector<1x64xf32> to vector<64xf32>
    %468 = vector.shape_cast %467 : vector<64xf32> to vector<1x1x1x64xf32>
    %469 = vector.broadcast %468 : vector<1x1x1x64xf32> to vector<1x8x8x64xf32>
    %470 = arith.mulf %465, %469 : vector<1x8x8x64xf32>
    %471 = arith.addf %464, %470 : vector<1x8x8x64xf32>
    %c0_290 = arith.constant 0 : index
    %c1_291 = arith.constant 1 : index
    %c1_292 = arith.constant 1 : index
    %c0_293 = arith.constant 0 : index
    %472 = vector.load %arg15[%c0_290, %c1_291, %c1_292, %c0_293] : memref<1x12x12x64xf32, #tpu.memory_space<vmem>>, vector<1x8x8x64xf32>
    %473 = vector.extract_strided_slice %422 {offsets = [6, 0], sizes = [1, 64], strides = [1, 1]} : vector<25x64xf32> to vector<1x64xf32>
    %474 = vector.shape_cast %473 : vector<1x64xf32> to vector<64xf32>
    %475 = vector.shape_cast %474 : vector<64xf32> to vector<1x1x1x64xf32>
    %476 = vector.broadcast %475 : vector<1x1x1x64xf32> to vector<1x8x8x64xf32>
    %477 = arith.mulf %472, %476 : vector<1x8x8x64xf32>
    %478 = arith.addf %471, %477 : vector<1x8x8x64xf32>
    %c0_294 = arith.constant 0 : index
    %c1_295 = arith.constant 1 : index
    %c2_296 = arith.constant 2 : index
    %c0_297 = arith.constant 0 : index
    %479 = vector.load %arg15[%c0_294, %c1_295, %c2_296, %c0_297] : memref<1x12x12x64xf32, #tpu.memory_space<vmem>>, vector<1x8x8x64xf32>
    %480 = vector.extract_strided_slice %422 {offsets = [7, 0], sizes = [1, 64], strides = [1, 1]} : vector<25x64xf32> to vector<1x64xf32>
    %481 = vector.shape_cast %480 : vector<1x64xf32> to vector<64xf32>
    %482 = vector.shape_cast %481 : vector<64xf32> to vector<1x1x1x64xf32>
    %483 = vector.broadcast %482 : vector<1x1x1x64xf32> to vector<1x8x8x64xf32>
    %484 = arith.mulf %479, %483 : vector<1x8x8x64xf32>
    %485 = arith.addf %478, %484 : vector<1x8x8x64xf32>
    %c0_298 = arith.constant 0 : index
    %c1_299 = arith.constant 1 : index
    %c3_300 = arith.constant 3 : index
    %c0_301 = arith.constant 0 : index
    %486 = vector.load %arg15[%c0_298, %c1_299, %c3_300, %c0_301] : memref<1x12x12x64xf32, #tpu.memory_space<vmem>>, vector<1x8x8x64xf32>
    %487 = vector.extract_strided_slice %422 {offsets = [8, 0], sizes = [1, 64], strides = [1, 1]} : vector<25x64xf32> to vector<1x64xf32>
    %488 = vector.shape_cast %487 : vector<1x64xf32> to vector<64xf32>
    %489 = vector.shape_cast %488 : vector<64xf32> to vector<1x1x1x64xf32>
    %490 = vector.broadcast %489 : vector<1x1x1x64xf32> to vector<1x8x8x64xf32>
    %491 = arith.mulf %486, %490 : vector<1x8x8x64xf32>
    %492 = arith.addf %485, %491 : vector<1x8x8x64xf32>
    %c0_302 = arith.constant 0 : index
    %c1_303 = arith.constant 1 : index
    %c4_304 = arith.constant 4 : index
    %c0_305 = arith.constant 0 : index
    %493 = vector.load %arg15[%c0_302, %c1_303, %c4_304, %c0_305] : memref<1x12x12x64xf32, #tpu.memory_space<vmem>>, vector<1x8x8x64xf32>
    %494 = vector.extract_strided_slice %422 {offsets = [9, 0], sizes = [1, 64], strides = [1, 1]} : vector<25x64xf32> to vector<1x64xf32>
    %495 = vector.shape_cast %494 : vector<1x64xf32> to vector<64xf32>
    %496 = vector.shape_cast %495 : vector<64xf32> to vector<1x1x1x64xf32>
    %497 = vector.broadcast %496 : vector<1x1x1x64xf32> to vector<1x8x8x64xf32>
    %498 = arith.mulf %493, %497 : vector<1x8x8x64xf32>
    %499 = arith.addf %492, %498 : vector<1x8x8x64xf32>
    %c0_306 = arith.constant 0 : index
    %c2_307 = arith.constant 2 : index
    %c0_308 = arith.constant 0 : index
    %c0_309 = arith.constant 0 : index
    %500 = vector.load %arg15[%c0_306, %c2_307, %c0_308, %c0_309] : memref<1x12x12x64xf32, #tpu.memory_space<vmem>>, vector<1x8x8x64xf32>
    %501 = vector.extract_strided_slice %422 {offsets = [10, 0], sizes = [1, 64], strides = [1, 1]} : vector<25x64xf32> to vector<1x64xf32>
    %502 = vector.shape_cast %501 : vector<1x64xf32> to vector<64xf32>
    %503 = vector.shape_cast %502 : vector<64xf32> to vector<1x1x1x64xf32>
    %504 = vector.broadcast %503 : vector<1x1x1x64xf32> to vector<1x8x8x64xf32>
    %505 = arith.mulf %500, %504 : vector<1x8x8x64xf32>
    %506 = arith.addf %499, %505 : vector<1x8x8x64xf32>
    %c0_310 = arith.constant 0 : index
    %c2_311 = arith.constant 2 : index
    %c1_312 = arith.constant 1 : index
    %c0_313 = arith.constant 0 : index
    %507 = vector.load %arg15[%c0_310, %c2_311, %c1_312, %c0_313] : memref<1x12x12x64xf32, #tpu.memory_space<vmem>>, vector<1x8x8x64xf32>
    %508 = vector.extract_strided_slice %422 {offsets = [11, 0], sizes = [1, 64], strides = [1, 1]} : vector<25x64xf32> to vector<1x64xf32>
    %509 = vector.shape_cast %508 : vector<1x64xf32> to vector<64xf32>
    %510 = vector.shape_cast %509 : vector<64xf32> to vector<1x1x1x64xf32>
    %511 = vector.broadcast %510 : vector<1x1x1x64xf32> to vector<1x8x8x64xf32>
    %512 = arith.mulf %507, %511 : vector<1x8x8x64xf32>
    %513 = arith.addf %506, %512 : vector<1x8x8x64xf32>
    %c0_314 = arith.constant 0 : index
    %c2_315 = arith.constant 2 : index
    %c2_316 = arith.constant 2 : index
    %c0_317 = arith.constant 0 : index
    %514 = vector.load %arg15[%c0_314, %c2_315, %c2_316, %c0_317] : memref<1x12x12x64xf32, #tpu.memory_space<vmem>>, vector<1x8x8x64xf32>
    %515 = vector.extract_strided_slice %422 {offsets = [12, 0], sizes = [1, 64], strides = [1, 1]} : vector<25x64xf32> to vector<1x64xf32>
    %516 = vector.shape_cast %515 : vector<1x64xf32> to vector<64xf32>
    %517 = vector.shape_cast %516 : vector<64xf32> to vector<1x1x1x64xf32>
    %518 = vector.broadcast %517 : vector<1x1x1x64xf32> to vector<1x8x8x64xf32>
    %519 = arith.mulf %514, %518 : vector<1x8x8x64xf32>
    %520 = arith.addf %513, %519 : vector<1x8x8x64xf32>
    %c0_318 = arith.constant 0 : index
    %c2_319 = arith.constant 2 : index
    %c3_320 = arith.constant 3 : index
    %c0_321 = arith.constant 0 : index
    %521 = vector.load %arg15[%c0_318, %c2_319, %c3_320, %c0_321] : memref<1x12x12x64xf32, #tpu.memory_space<vmem>>, vector<1x8x8x64xf32>
    %522 = vector.extract_strided_slice %422 {offsets = [13, 0], sizes = [1, 64], strides = [1, 1]} : vector<25x64xf32> to vector<1x64xf32>
    %523 = vector.shape_cast %522 : vector<1x64xf32> to vector<64xf32>
    %524 = vector.shape_cast %523 : vector<64xf32> to vector<1x1x1x64xf32>
    %525 = vector.broadcast %524 : vector<1x1x1x64xf32> to vector<1x8x8x64xf32>
    %526 = arith.mulf %521, %525 : vector<1x8x8x64xf32>
    %527 = arith.addf %520, %526 : vector<1x8x8x64xf32>
    %c0_322 = arith.constant 0 : index
    %c2_323 = arith.constant 2 : index
    %c4_324 = arith.constant 4 : index
    %c0_325 = arith.constant 0 : index
    %528 = vector.load %arg15[%c0_322, %c2_323, %c4_324, %c0_325] : memref<1x12x12x64xf32, #tpu.memory_space<vmem>>, vector<1x8x8x64xf32>
    %529 = vector.extract_strided_slice %422 {offsets = [14, 0], sizes = [1, 64], strides = [1, 1]} : vector<25x64xf32> to vector<1x64xf32>
    %530 = vector.shape_cast %529 : vector<1x64xf32> to vector<64xf32>
    %531 = vector.shape_cast %530 : vector<64xf32> to vector<1x1x1x64xf32>
    %532 = vector.broadcast %531 : vector<1x1x1x64xf32> to vector<1x8x8x64xf32>
    %533 = arith.mulf %528, %532 : vector<1x8x8x64xf32>
    %534 = arith.addf %527, %533 : vector<1x8x8x64xf32>
    %c0_326 = arith.constant 0 : index
    %c3_327 = arith.constant 3 : index
    %c0_328 = arith.constant 0 : index
    %c0_329 = arith.constant 0 : index
    %535 = vector.load %arg15[%c0_326, %c3_327, %c0_328, %c0_329] : memref<1x12x12x64xf32, #tpu.memory_space<vmem>>, vector<1x8x8x64xf32>
    %536 = vector.extract_strided_slice %422 {offsets = [15, 0], sizes = [1, 64], strides = [1, 1]} : vector<25x64xf32> to vector<1x64xf32>
    %537 = vector.shape_cast %536 : vector<1x64xf32> to vector<64xf32>
    %538 = vector.shape_cast %537 : vector<64xf32> to vector<1x1x1x64xf32>
    %539 = vector.broadcast %538 : vector<1x1x1x64xf32> to vector<1x8x8x64xf32>
    %540 = arith.mulf %535, %539 : vector<1x8x8x64xf32>
    %541 = arith.addf %534, %540 : vector<1x8x8x64xf32>
    %c0_330 = arith.constant 0 : index
    %c3_331 = arith.constant 3 : index
    %c1_332 = arith.constant 1 : index
    %c0_333 = arith.constant 0 : index
    %542 = vector.load %arg15[%c0_330, %c3_331, %c1_332, %c0_333] : memref<1x12x12x64xf32, #tpu.memory_space<vmem>>, vector<1x8x8x64xf32>
    %543 = vector.extract_strided_slice %422 {offsets = [16, 0], sizes = [1, 64], strides = [1, 1]} : vector<25x64xf32> to vector<1x64xf32>
    %544 = vector.shape_cast %543 : vector<1x64xf32> to vector<64xf32>
    %545 = vector.shape_cast %544 : vector<64xf32> to vector<1x1x1x64xf32>
    %546 = vector.broadcast %545 : vector<1x1x1x64xf32> to vector<1x8x8x64xf32>
    %547 = arith.mulf %542, %546 : vector<1x8x8x64xf32>
    %548 = arith.addf %541, %547 : vector<1x8x8x64xf32>
    %c0_334 = arith.constant 0 : index
    %c3_335 = arith.constant 3 : index
    %c2_336 = arith.constant 2 : index
    %c0_337 = arith.constant 0 : index
    %549 = vector.load %arg15[%c0_334, %c3_335, %c2_336, %c0_337] : memref<1x12x12x64xf32, #tpu.memory_space<vmem>>, vector<1x8x8x64xf32>
    %550 = vector.extract_strided_slice %422 {offsets = [17, 0], sizes = [1, 64], strides = [1, 1]} : vector<25x64xf32> to vector<1x64xf32>
    %551 = vector.shape_cast %550 : vector<1x64xf32> to vector<64xf32>
    %552 = vector.shape_cast %551 : vector<64xf32> to vector<1x1x1x64xf32>
    %553 = vector.broadcast %552 : vector<1x1x1x64xf32> to vector<1x8x8x64xf32>
    %554 = arith.mulf %549, %553 : vector<1x8x8x64xf32>
    %555 = arith.addf %548, %554 : vector<1x8x8x64xf32>
    %c0_338 = arith.constant 0 : index
    %c3_339 = arith.constant 3 : index
    %c3_340 = arith.constant 3 : index
    %c0_341 = arith.constant 0 : index
    %556 = vector.load %arg15[%c0_338, %c3_339, %c3_340, %c0_341] : memref<1x12x12x64xf32, #tpu.memory_space<vmem>>, vector<1x8x8x64xf32>
    %557 = vector.extract_strided_slice %422 {offsets = [18, 0], sizes = [1, 64], strides = [1, 1]} : vector<25x64xf32> to vector<1x64xf32>
    %558 = vector.shape_cast %557 : vector<1x64xf32> to vector<64xf32>
    %559 = vector.shape_cast %558 : vector<64xf32> to vector<1x1x1x64xf32>
    %560 = vector.broadcast %559 : vector<1x1x1x64xf32> to vector<1x8x8x64xf32>
    %561 = arith.mulf %556, %560 : vector<1x8x8x64xf32>
    %562 = arith.addf %555, %561 : vector<1x8x8x64xf32>
    %c0_342 = arith.constant 0 : index
    %c3_343 = arith.constant 3 : index
    %c4_344 = arith.constant 4 : index
    %c0_345 = arith.constant 0 : index
    %563 = vector.load %arg15[%c0_342, %c3_343, %c4_344, %c0_345] : memref<1x12x12x64xf32, #tpu.memory_space<vmem>>, vector<1x8x8x64xf32>
    %564 = vector.extract_strided_slice %422 {offsets = [19, 0], sizes = [1, 64], strides = [1, 1]} : vector<25x64xf32> to vector<1x64xf32>
    %565 = vector.shape_cast %564 : vector<1x64xf32> to vector<64xf32>
    %566 = vector.shape_cast %565 : vector<64xf32> to vector<1x1x1x64xf32>
    %567 = vector.broadcast %566 : vector<1x1x1x64xf32> to vector<1x8x8x64xf32>
    %568 = arith.mulf %563, %567 : vector<1x8x8x64xf32>
    %569 = arith.addf %562, %568 : vector<1x8x8x64xf32>
    %c0_346 = arith.constant 0 : index
    %c4_347 = arith.constant 4 : index
    %c0_348 = arith.constant 0 : index
    %c0_349 = arith.constant 0 : index
    %570 = vector.load %arg15[%c0_346, %c4_347, %c0_348, %c0_349] : memref<1x12x12x64xf32, #tpu.memory_space<vmem>>, vector<1x8x8x64xf32>
    %571 = vector.extract_strided_slice %422 {offsets = [20, 0], sizes = [1, 64], strides = [1, 1]} : vector<25x64xf32> to vector<1x64xf32>
    %572 = vector.shape_cast %571 : vector<1x64xf32> to vector<64xf32>
    %573 = vector.shape_cast %572 : vector<64xf32> to vector<1x1x1x64xf32>
    %574 = vector.broadcast %573 : vector<1x1x1x64xf32> to vector<1x8x8x64xf32>
    %575 = arith.mulf %570, %574 : vector<1x8x8x64xf32>
    %576 = arith.addf %569, %575 : vector<1x8x8x64xf32>
    %c0_350 = arith.constant 0 : index
    %c4_351 = arith.constant 4 : index
    %c1_352 = arith.constant 1 : index
    %c0_353 = arith.constant 0 : index
    %577 = vector.load %arg15[%c0_350, %c4_351, %c1_352, %c0_353] : memref<1x12x12x64xf32, #tpu.memory_space<vmem>>, vector<1x8x8x64xf32>
    %578 = vector.extract_strided_slice %422 {offsets = [21, 0], sizes = [1, 64], strides = [1, 1]} : vector<25x64xf32> to vector<1x64xf32>
    %579 = vector.shape_cast %578 : vector<1x64xf32> to vector<64xf32>
    %580 = vector.shape_cast %579 : vector<64xf32> to vector<1x1x1x64xf32>
    %581 = vector.broadcast %580 : vector<1x1x1x64xf32> to vector<1x8x8x64xf32>
    %582 = arith.mulf %577, %581 : vector<1x8x8x64xf32>
    %583 = arith.addf %576, %582 : vector<1x8x8x64xf32>
    %c0_354 = arith.constant 0 : index
    %c4_355 = arith.constant 4 : index
    %c2_356 = arith.constant 2 : index
    %c0_357 = arith.constant 0 : index
    %584 = vector.load %arg15[%c0_354, %c4_355, %c2_356, %c0_357] : memref<1x12x12x64xf32, #tpu.memory_space<vmem>>, vector<1x8x8x64xf32>
    %585 = vector.extract_strided_slice %422 {offsets = [22, 0], sizes = [1, 64], strides = [1, 1]} : vector<25x64xf32> to vector<1x64xf32>
    %586 = vector.shape_cast %585 : vector<1x64xf32> to vector<64xf32>
    %587 = vector.shape_cast %586 : vector<64xf32> to vector<1x1x1x64xf32>
    %588 = vector.broadcast %587 : vector<1x1x1x64xf32> to vector<1x8x8x64xf32>
    %589 = arith.mulf %584, %588 : vector<1x8x8x64xf32>
    %590 = arith.addf %583, %589 : vector<1x8x8x64xf32>
    %c0_358 = arith.constant 0 : index
    %c4_359 = arith.constant 4 : index
    %c3_360 = arith.constant 3 : index
    %c0_361 = arith.constant 0 : index
    %591 = vector.load %arg15[%c0_358, %c4_359, %c3_360, %c0_361] : memref<1x12x12x64xf32, #tpu.memory_space<vmem>>, vector<1x8x8x64xf32>
    %592 = vector.extract_strided_slice %422 {offsets = [23, 0], sizes = [1, 64], strides = [1, 1]} : vector<25x64xf32> to vector<1x64xf32>
    %593 = vector.shape_cast %592 : vector<1x64xf32> to vector<64xf32>
    %594 = vector.shape_cast %593 : vector<64xf32> to vector<1x1x1x64xf32>
    %595 = vector.broadcast %594 : vector<1x1x1x64xf32> to vector<1x8x8x64xf32>
    %596 = arith.mulf %591, %595 : vector<1x8x8x64xf32>
    %597 = arith.addf %590, %596 : vector<1x8x8x64xf32>
    %c0_362 = arith.constant 0 : index
    %c4_363 = arith.constant 4 : index
    %c4_364 = arith.constant 4 : index
    %c0_365 = arith.constant 0 : index
    %598 = vector.load %arg15[%c0_362, %c4_363, %c4_364, %c0_365] : memref<1x12x12x64xf32, #tpu.memory_space<vmem>>, vector<1x8x8x64xf32>
    %599 = vector.extract_strided_slice %422 {offsets = [24, 0], sizes = [1, 64], strides = [1, 1]} : vector<25x64xf32> to vector<1x64xf32>
    %600 = vector.shape_cast %599 : vector<1x64xf32> to vector<64xf32>
    %601 = vector.shape_cast %600 : vector<64xf32> to vector<1x1x1x64xf32>
    %602 = vector.broadcast %601 : vector<1x1x1x64xf32> to vector<1x8x8x64xf32>
    %603 = arith.mulf %598, %602 : vector<1x8x8x64xf32>
    %604 = arith.addf %597, %603 : vector<1x8x8x64xf32>
    %605 = vector.shape_cast %604 : vector<1x8x8x64xf32> to vector<64x64xf32>
    %606 = arith.truncf %605 : vector<64x64xf32> to vector<64x64xbf16>
    %cst_366 = arith.constant dense<0.000000e+00> : vector<64x64xf32>
    %607 = tpu.matmul %606, %423, %cst_366 {dimension_numbers = #tpu.dot_dimension_numbers<[1], [0], [0], [1], [0, 0, 1, 1], [], []>} : vector<64x64xbf16>, vector<64x64xbf16>, vector<64x64xf32> -> vector<64x64xf32>
    %608 = vector.broadcast %424 : vector<1x64xf32> to vector<64x64xf32>
    %609 = arith.mulf %607, %608 : vector<64x64xf32>
    %610 = vector.broadcast %425 : vector<1x64xf32> to vector<64x64xf32>
    %611 = arith.addf %609, %610 : vector<64x64xf32>
    %612 = vector.shape_cast %611 : vector<64x64xf32> to vector<1x8x8x64xf32>
    %c0_367 = arith.constant 0 : index
    %c4_368 = arith.constant 4 : index
    %613 = memref.load %arg1[%c0_367, %c4_368] : memref<1x8xf32, #tpu.memory_space<smem>>
    %614 = vector.extract_strided_slice %612 {offsets = [0, 0, 0, 0], sizes = [1, 8, 8, 32], strides = [1, 1, 1, 1]} : vector<1x8x8x64xf32> to vector<1x8x8x32xf32>
    %615 = vector.broadcast %613 : f32 to vector<1x8x8x32xf32>
    %616 = arith.mulf %615, %614 : vector<1x8x8x32xf32>
    %617 = arith.addf %418, %616 : vector<1x8x8x32xf32>
    %c0_369 = arith.constant 0 : index
    %c5_370 = arith.constant 5 : index
    %618 = memref.load %arg1[%c0_369, %c5_370] : memref<1x8xf32, #tpu.memory_space<smem>>
    %619 = vector.extract_strided_slice %612 {offsets = [0, 0, 0, 32], sizes = [1, 8, 8, 32], strides = [1, 1, 1, 1]} : vector<1x8x8x64xf32> to vector<1x8x8x32xf32>
    %620 = vector.broadcast %618 : f32 to vector<1x8x8x32xf32>
    %621 = arith.mulf %620, %619 : vector<1x8x8x32xf32>
    %622 = arith.addf %617, %621 : vector<1x8x8x32xf32>
    %c0_371 = arith.constant 0 : index
    %c0_372 = arith.constant 0 : index
    %c0_373 = arith.constant 0 : index
    %c0_374 = arith.constant 0 : index
    %623 = vector.load %arg13[%c0_371, %c0_372, %c0_373, %c0_374] : memref<1x8x8x32xf32, #tpu.memory_space<vmem>>, vector<1x8x8x32xf32>
    tpu.vector_store %arg13[%c0_371, %c0_372, %c0_373, %c0_374], %622 {strides = array<i32>} : memref<1x8x8x32xf32, #tpu.memory_space<vmem>>, vector<1x8x8x32xf32>,
    return
  }
  func.func @transform_0(%arg0: i32) -> (i32, i32) {
    %c0_i32 = arith.constant 0 : i32
    %c0_i32_0 = arith.constant 0 : i32
    %c0_i32_1 = arith.constant 0 : i32
    return %c0_i32, %c0_i32_0 : i32, i32
  }
  func.func @transform_1(%arg0: i32) -> (i32, i32, i32, i32) {
    %c0_i32 = arith.constant 0 : i32
    %c0_i32_0 = arith.constant 0 : i32
    %c0_i32_1 = arith.constant 0 : i32
    %c0_i32_2 = arith.constant 0 : i32
    return %arg0, %c0_i32, %c0_i32_0, %c0_i32_1 : i32, i32, i32, i32
  }
  func.func @transform_2(%arg0: i32) -> (i32, i32) {
    %c0_i32 = arith.constant 0 : i32
    %c0_i32_0 = arith.constant 0 : i32
    %c0_i32_1 = arith.constant 0 : i32
    return %c0_i32, %c0_i32_0 : i32, i32
  }
  func.func @transform_3(%arg0: i32) -> (i32, i32) {
    %c0_i32 = arith.constant 0 : i32
    %c0_i32_0 = arith.constant 0 : i32
    %c0_i32_1 = arith.constant 0 : i32
    return %c0_i32, %c0_i32_0 : i32, i32
  }
  func.func @transform_4(%arg0: i32) -> (i32, i32) {
    %c0_i32 = arith.constant 0 : i32
    %c0_i32_0 = arith.constant 0 : i32
    %c0_i32_1 = arith.constant 0 : i32
    return %c0_i32, %c0_i32_0 : i32, i32
  }
  func.func @transform_5(%arg0: i32) -> (i32, i32) {
    %c0_i32 = arith.constant 0 : i32
    %c0_i32_0 = arith.constant 0 : i32
    %c0_i32_1 = arith.constant 0 : i32
    return %c0_i32, %c0_i32_0 : i32, i32
  }
  func.func @transform_6(%arg0: i32) -> (i32, i32) {
    %c0_i32 = arith.constant 0 : i32
    %c0_i32_0 = arith.constant 0 : i32
    %c0_i32_1 = arith.constant 0 : i32
    return %c0_i32, %c0_i32_0 : i32, i32
  }
  func.func @transform_7(%arg0: i32) -> (i32, i32) {
    %c0_i32 = arith.constant 0 : i32
    %c0_i32_0 = arith.constant 0 : i32
    %c0_i32_1 = arith.constant 0 : i32
    return %c0_i32, %c0_i32_0 : i32, i32
  }
  func.func @transform_8(%arg0: i32) -> (i32, i32) {
    %c0_i32 = arith.constant 0 : i32
    %c0_i32_0 = arith.constant 0 : i32
    %c0_i32_1 = arith.constant 0 : i32
    return %c0_i32, %c0_i32_0 : i32, i32
  }
  func.func @transform_9(%arg0: i32) -> (i32, i32) {
    %c0_i32 = arith.constant 0 : i32
    %c0_i32_0 = arith.constant 0 : i32
    %c0_i32_1 = arith.constant 0 : i32
    return %c0_i32, %c0_i32_0 : i32, i32
  }
  func.func @transform_10(%arg0: i32) -> (i32, i32) {
    %c0_i32 = arith.constant 0 : i32
    %c0_i32_0 = arith.constant 0 : i32
    %c0_i32_1 = arith.constant 0 : i32
    return %c0_i32, %c0_i32_0 : i32, i32
  }
  func.func @transform_11(%arg0: i32) -> (i32, i32) {
    %c0_i32 = arith.constant 0 : i32
    %c0_i32_0 = arith.constant 0 : i32
    %c0_i32_1 = arith.constant 0 : i32
    return %c0_i32, %c0_i32_0 : i32, i32
  }
  func.func @transform_12(%arg0: i32) -> (i32, i32, i32, i32) {
    %c0_i32 = arith.constant 0 : i32
    %c0_i32_0 = arith.constant 0 : i32
    %c0_i32_1 = arith.constant 0 : i32
    %c0_i32_2 = arith.constant 0 : i32
    return %arg0, %c0_i32, %c0_i32_0, %c0_i32_1 : i32, i32, i32, i32
  }
}

</mosaic_0001>

<bundles_post_ra>
// kernel: cell_forward.16
= control target key start
LH: loop header
LB: loop body
LE: loop exit
PB: predicated region body
PF: predicated region fallthrough
CT: control target
= control target key end

     0   :  { %vm265_vm0 = vcmask 261120   ;;  %s535_s1 = inlined_call_operand.vmem [shape: bf16[128,32], index: 1, kind: input, shape index: {}]   ;;  %s536_s0 = inlined_call_operand.vmem [shape: f32[128,128], index: 0, kind: input, shape index: {}]   ;;  %s537_s2 = inlined_call_operand.vmem [shape: f32[1,32], index: 2, kind: input, shape index: {}]   ;;  %s538_s3 = inlined_call_operand.vmem [shape: f32[1,32], index: 3, kind: input, shape index: {}]   ;;  %s539_s4 = inlined_call_operand.vmem [shape: f32[128,32], index: 4, kind: output, shape index: {}]  }
   0x1   :  { %v360_v0 = vld [vmem:[%s535_s1] sm:$0xff]   ;;  %v361_v1 = vld [vmem:[%s535_s1 + $0x8] sm:$0xff]   ;;  %v362_v2 = vld [vmem:[%s535_s1 + $0x10] sm:$0xff]  }
   0x2   :  { %312 = vmatprep.subr.bf16.mxu0 %v360_v0  ;;  %344 = vmatprep.subr.bf16.mxu1 %v360_v0  ;;  %v363_v3 = vld [vmem:[%s535_s1 + $0x18] sm:$0xff]   ;;  %v18_v4 = vld [vmem:[%s536_s0] sm:$0xff]  ;;  %v19_v5 = vld [vmem:[%s536_s0 + $0x8] sm:$0xff] }
   0x3   :  { %313 = vmatpush3.bf16.msra.mxu0 %v360_v0  ;;  %352 = vmatpush3.bf16.msra.mxu1 %v360_v0  ;;  %v26_v6 = vld [vmem:[%s536_s0 + $0x40] sm:$0xff]  ;;  %v34_v7 = vmax.f32 %v18_v4, 0.0  ;;  %v35_v8 = vmax.f32 %v19_v5, 0.0  ;;  %v27_v9 = vld [vmem:[%s536_s0 + $0x48] sm:$0xff]  ;;  %v366_v16 = vld [vmem:[%s535_s1 + $0x30] sm:$0xff]  }
   0x4   :  { %314 = vmatprep.subr.bf16.mxu0 %v361_v1  ;;  %345 = vmatprep.subr.bf16.mxu1 %v361_v1  ;;  %v42_v10 = vmax.f32 %v26_v6, 0.0  ;;  %v43_v11 = vmax.f32 %v27_v9, 0.0  ;;  %v364_v13 = vld [vmem:[%s535_s1 + $0x20] sm:$0xff]   ;;  %v365_v15 = vld [vmem:[%s535_s1 + $0x28] sm:$0xff]   ;;  %v367_v17 = vld [vmem:[%s535_s1 + $0x38] sm:$0xff]  }
   0x5   :  { %v50_v12 = vpack.c.bf16 %v35_v8, %v34_v7  ;;  %v20_v18 = vld [vmem:[%s536_s0 + $0x10] sm:$0xff]  ;;  %v21_v19 = vld [vmem:[%s536_s0 + $0x18] sm:$0xff]  ;;  %v22_v22 = vld [vmem:[%s536_s0 + $0x20] sm:$0xff] }
   0x6   :  { %v54_v14 = vpack.c.bf16 %v43_v11, %v42_v10  ;;  %v28_v20 = vld [vmem:[%s536_s0 + $0x50] sm:$0xff]  ;;  %v29_v21 = vld [vmem:[%s536_s0 + $0x58] sm:$0xff]  ;;  %v23_v23 = vld [vmem:[%s536_s0 + $0x28] sm:$0xff]  ;;  %v36_v26 = vmax.f32 %v20_v18, 0.0  ;;  %v37_v27 = vmax.f32 %v21_v19, 0.0  ;;  %v38_v30 = vmax.f32 %v22_v22, 0.0 }
   0x7   :  { %315 = vmatpush3.bf16.msra.mxu0 %v361_v1  ;;  %353 = vmatpush3.bf16.msra.mxu1 %v361_v1  ;;  %v30_v24 = vld [vmem:[%s536_s0 + $0x60] sm:$0xff]  ;;  %v31_v25 = vld [vmem:[%s536_s0 + $0x68] sm:$0xff]  ;;  %v44_v28 = vmax.f32 %v28_v20, 0.0  ;;  %v45_v29 = vmax.f32 %v29_v21, 0.0  ;;  %v39_v31 = vmax.f32 %v23_v23, 0.0  ;;  %v24_v36 = vld [vmem:[%s536_s0 + $0x30] sm:$0xff] }
   0x8   :  { %316 = vmatprep.subr.bf16.mxu0 %v362_v2  ;;  %346 = vmatprep.subr.bf16.mxu1 %v362_v2  ;;  %v46_v32 = vmax.f32 %v30_v24, 0.0  ;;  %v47_v33 = vmax.f32 %v31_v25, 0.0  ;;  %v51_v34 = vpack.c.bf16 %v37_v27, %v36_v26  ;;  %v25_v39 = vld [vmem:[%s536_s0 + $0x38] sm:$0xff]  ;;  %v32_v40 = vld [vmem:[%s536_s0 + $0x70] sm:$0xff]  ;;  %v40_v42 = vmax.f32 %v24_v36, 0.0 }
   0x9   :  { %328 = vmatprep.mubr.bf16.mxu0 %v50_v12  ;;  %336 = vmatprep.mubr.bf16.mxu1 %v54_v14  ;;  %v55_v35 = vpack.c.bf16 %v45_v29, %v44_v28  ;;  %v52_v37 = vpack.c.bf16 %v39_v31, %v38_v30  ;;  %v33_v41 = vld [vmem:[%s536_s0 + $0x78] sm:$0xff]  ;;  %v41_v43 = vmax.f32 %v25_v39, 0.0  ;;  %v48_v44 = vmax.f32 %v32_v40, 0.0  ;;  %v294_v48 = vld [vmem:[%s537_s2] ss:$0 sm:$0xff] }
   0xa   :  { %v56_v38 = vpack.c.bf16 %v47_v33, %v46_v32  ;;  %v49_v45 = vmax.f32 %v33_v41, 0.0  ;;  %v295_v50 = vld [vmem:[%s538_s3] ss:$0 sm:$0xff] }
   0xb   :  { %317 = vmatpush3.bf16.msra.mxu0 %v362_v2  ;;  %354 = vmatpush3.bf16.msra.mxu1 %v362_v2  ;;  %v53_v46 = vpack.c.bf16 %v41_v43, %v40_v42 }
   0xc   :  { %318 = vmatprep.subr.bf16.mxu0 %v363_v3  ;;  %347 = vmatprep.subr.bf16.mxu1 %v363_v3  ;;  %v57_v47 = vpack.c.bf16 %v49_v45, %v48_v44 }
   0xf   :  { %319 = vmatpush3.bf16.msra.mxu0 %v363_v3  ;;  %355 = vmatpush3.bf16.msra.mxu1 %v363_v3 }
  0x10   :  { %320 = vmatprep.subr.bf16.mxu0 %v364_v13  ;;  %348 = vmatprep.subr.bf16.mxu1 %v364_v13 }
  0x13   :  { %321 = vmatpush3.bf16.msra.mxu0 %v364_v13  ;;  %356 = vmatpush3.bf16.msra.mxu1 %v364_v13 }
  0x14   :  { %322 = vmatprep.subr.bf16.mxu0 %v365_v15  ;;  %349 = vmatprep.subr.bf16.mxu1 %v365_v15 }
  0x17   :  { %323 = vmatpush3.bf16.msra.mxu0 %v365_v15  ;;  %357 = vmatpush3.bf16.msra.mxu1 %v365_v15 }
  0x18   :  { %324 = vmatprep.subr.bf16.mxu0 %v366_v16  ;;  %350 = vmatprep.subr.bf16.mxu1 %v366_v16 }
  0x1b   :  { %325 = vmatpush3.bf16.msra.mxu0 %v366_v16  ;;  %358 = vmatpush3.bf16.msra.mxu1 %v366_v16 }
  0x1c   :  { %326 = vmatprep.subr.bf16.mxu0 %v367_v17  ;;  %351 = vmatprep.subr.bf16.mxu1 %v367_v17 }
  0x1f   :  { %327 = vmatpush3.bf16.msra.mxu0 %v367_v17  ;;  %359 = vmatpush3.bf16.msra.mxu1 %v367_v17 }
  0x22   :  { %329 = vmatmul.mubr.bf16.vlgmr.msra.gmra.mrb[0].mxu0 %v51_v34  ;;  %337 = vmatmul.mubr.bf16.vlgmr.msra.gmra.mrb[0].mxu1 %v55_v35 }
  0x23   :  { %332 = vmatprep.mubr.bf16.mxu0 %v52_v37  ;;  %340 = vmatprep.mubr.bf16.mxu1 %v56_v38 }
  0x2a   :  { %333 = vmatmul.mubr.bf16.gmra.mrb[4].mxu0 %v53_v46  ;;  %341 = vmatmul.mubr.bf16.gmra.mrb[4].mxu1 %v57_v47 }
  0xf5   :  { %v330_v49 = vpop.f32.mrb[0].mxu0  ;;  %v338_v51 = vpop.f32.mrb[0].mxu1 }
  0xf6   :  { %v228_v52 = vmul.f32 %v330_v49, %v294_v48  ;;  %v236_v53 = vmul.f32 %v338_v51, %v294_v48  ;;  %v156_v54 = vpop.f32.mrb[1].mxu0  ;;  %v188_v55 = vpop.f32.mrb[1].mxu1 }
  0xf7   :  { %v226_v56 = vmul.f32 %v294_v48, %v156_v54  ;;  %v234_v57 = vmul.f32 %v294_v48, %v188_v55  ;;  %v331_v58 = vpop.f32.mrb[2].mxu0  ;;  %v339_v59 = vpop.f32.mrb[2].mxu1 }
  0xf8   :  { %v251_v60 = vadd.f32 %v295_v50, %v228_v52  ;;  %v259_v61 = vadd.f32 %v295_v50, %v236_v53  ;;  %v229_v62 = vmul.f32 %v331_v58, %v294_v48  ;;  %v237_v63 = vmul.f32 %v339_v59, %v294_v48  ;;  %v159_v0 = vpop.f32.mrb[3].mxu0  ;;  %v191_v1 = vpop.f32.mrb[3].mxu1 }
  0xf9   :  { %v249_v2 = vadd.f32 %v295_v50, %v226_v56  ;;  %v257_v3 = vadd.f32 %v295_v50, %v234_v57  ;;  %v227_v4 = vmul.f32 %v294_v48, %v159_v0  ;;  %v235_v5 = vmul.f32 %v294_v48, %v191_v1 }
  0xfa   :  { %268 = vst.msk [vmem:[%s539_s4 + $0x10] sm:$0xff] %vm265_vm0, %v251_v60  ;;  %276 = vst.msk [vmem:[%s539_s4 + $0x50] sm:$0xff] %vm265_vm0, %v259_v61  ;;  %v252_v6 = vadd.f32 %v295_v50, %v229_v62  ;;  %v260_v7 = vadd.f32 %v295_v50, %v237_v63 }
  0xfb   :  { %266 = vst.msk [vmem:[%s539_s4] sm:$0xff] %vm265_vm0, %v249_v2  ;;  %274 = vst.msk [vmem:[%s539_s4 + $0x40] sm:$0xff] %vm265_vm0, %v257_v3  ;;  %v250_v8 = vadd.f32 %v295_v50, %v227_v4  ;;  %v258_v9 = vadd.f32 %v295_v50, %v235_v5 }
  0xfc   :  { %269 = vst.msk [vmem:[%s539_s4 + $0x18] sm:$0xff] %vm265_vm0, %v252_v6  ;;  %277 = vst.msk [vmem:[%s539_s4 + $0x58] sm:$0xff] %vm265_vm0, %v260_v7 }
  0xfd   :  { %267 = vst.msk [vmem:[%s539_s4 + $0x8] sm:$0xff] %vm265_vm0, %v250_v8  ;;  %275 = vst.msk [vmem:[%s539_s4 + $0x48] sm:$0xff] %vm265_vm0, %v258_v9  ;;  %v334_v10 = vpop.f32.mrb[4].mxu0  ;;  %v342_v11 = vpop.f32.mrb[4].mxu1 }
  0xfe   :  { %v232_v12 = vmul.f32 %v334_v10, %v294_v48  ;;  %v240_v13 = vmul.f32 %v342_v11, %v294_v48  ;;  %v172_v14 = vpop.f32.mrb[5].mxu0  ;;  %v204_v15 = vpop.f32.mrb[5].mxu1 }
  0xff   :  { %v230_v16 = vmul.f32 %v294_v48, %v172_v14  ;;  %v238_v17 = vmul.f32 %v294_v48, %v204_v15  ;;  %v335_v18 = vpop.f32.mrb[6].mxu0  ;;  %v343_v19 = vpop.f32.mrb[6].mxu1 }
 0x100   :  { %v255_v20 = vadd.f32 %v295_v50, %v232_v12  ;;  %v263_v21 = vadd.f32 %v295_v50, %v240_v13  ;;  %v233_v22 = vmul.f32 %v335_v18, %v294_v48  ;;  %v241_v23 = vmul.f32 %v343_v19, %v294_v48  ;;  %v175_v24 = vpop.f32.mrb[7].mxu0  ;;  %v207_v25 = vpop.f32.mrb[7].mxu1 }
 0x101   :  { %v253_v26 = vadd.f32 %v295_v50, %v230_v16  ;;  %v261_v27 = vadd.f32 %v295_v50, %v238_v17  ;;  %v231_v28 = vmul.f32 %v294_v48, %v175_v24  ;;  %v239_v29 = vmul.f32 %v294_v48, %v207_v25 }
 0x102   :  { %272 = vst.msk [vmem:[%s539_s4 + $0x30] sm:$0xff] %vm265_vm0, %v255_v20  ;;  %280 = vst.msk [vmem:[%s539_s4 + $0x70] sm:$0xff] %vm265_vm0, %v263_v21  ;;  %v256_v30 = vadd.f32 %v295_v50, %v233_v22  ;;  %v264_v31 = vadd.f32 %v295_v50, %v241_v23 }
 0x103   :  { %270 = vst.msk [vmem:[%s539_s4 + $0x20] sm:$0xff] %vm265_vm0, %v253_v26  ;;  %278 = vst.msk [vmem:[%s539_s4 + $0x60] sm:$0xff] %vm265_vm0, %v261_v27  ;;  %v254_v32 = vadd.f32 %v295_v50, %v231_v28  ;;  %v262_v33 = vadd.f32 %v295_v50, %v239_v29 }
 0x104   :  { %273 = vst.msk [vmem:[%s539_s4 + $0x38] sm:$0xff] %vm265_vm0, %v256_v30  ;;  %281 = vst.msk [vmem:[%s539_s4 + $0x78] sm:$0xff] %vm265_vm0, %v264_v31 }
 0x105   :  { %271 = vst.msk [vmem:[%s539_s4 + $0x28] sm:$0xff] %vm265_vm0, %v254_v32  ;;  %279 = vst.msk [vmem:[%s539_s4 + $0x68] sm:$0xff] %vm265_vm0, %v262_v33 }

// kernel: cell_forward.18
= control target key start
LH: loop header
LB: loop body
LE: loop exit
PB: predicated region body
PF: predicated region fallthrough
CT: control target
= control target key end

     0   :  { %17 = vsyncpa [#allocation6], 0  ;;  %s3726_s21 = smov 0   ;;  %s5977_s0 = inlined_call_operand.vmem [shape: f32[1,8], index: 0, kind: input, shape index: {}]   ;;  %s5978_s1 = inlined_call_operand.vmem [shape: f32[2,8,8,32], index: 1, kind: input, shape index: {}]   ;;  %s5979_s2 = inlined_call_operand.vmem [shape: f32[41,128], index: 2, kind: input, shape index: {}]   ;;  %s5980_s3 = inlined_call_operand.vmem [shape: bf16[128,128], index: 3, kind: input, shape index: {}]   ;;  %s5981_s4 = inlined_call_operand.vmem [shape: f32[1,128], index: 4, kind: input, shape index: {}]   ;;  %s5982_s5 = inlined_call_operand.vmem [shape: f32[1,128], index: 5, kind: input, shape index: {}]   ;;  %s5983_s6 = inlined_call_operand.vmem [shape: f32[25,64], index: 6, kind: input, shape index: {}]   ;;  %s5984_s7 = inlined_call_operand.vmem [shape: bf16[64,64], index: 7, kind: input, shape index: {}]   ;;  %s5985_s8 = inlined_call_operand.vmem [shape: f32[1,64], index: 8, kind: input, shape index: {}]   ;;  %s5986_s9 = inlined_call_operand.vmem [shape: f32[1,64], index: 9, kind: input, shape index: {}]   ;;  %s5987_s10 = inlined_call_operand.vmem [shape: f32[2,32], index: 10, kind: input, shape index: {}]   ;;  %s5988_s11 = inlined_call_operand.vmem [shape: f32[2,32], index: 11, kind: input, shape index: {}]   ;;  %s5989_s12 = inlined_call_operand.vmem [shape: f32[2,8,8,32], index: 12, kind: output, shape index: {}]  }
   0x1 LB: > { %s3732_s22 = sadd.s32 4294967295, %s3654_s21   ;;  %p3468_p0 = scmp.ge.s32.totalorder %s3654_s21, 1  ;;  %s3654_s21 = sphi %s3726_s21, %s23_s21  }
   0x2   : > { %p311_p1 = scmp.lt.s32.totalorder %s3654_s21, 3  ;;  %s324_s25 = sshll.u32 %s5977_s0, 4  ;;  %s325_s25 = int_to_ptr.vmem [resolvable:$true] %s324_s25 }
   0x3   : > { %p3581_p3 = scmp.eq.s32.totalorder %s3732_s22, 0  ;;  %s3629_s27 = scalar_lea.vmem %s325_s25, 16 }
   0x4   : > { %p3739_p2 = pnand %p3468_p0, %p311_p1  ;;  %p3630_p6 = scmp.ne.s32.totalorder %s325_s25, %s3629_s27 }
   0x5   : > { %p3637_p10 = scmp.lt.s32.totalorder %s325_s25, %s325_s25  ;;  %p3638_p11 = scmp.lt.s32.totalorder %s3629_s27, %s3629_s27 }
   0x6   : > { %p3577_p4 = pneg %p3739_p2 }
   0x7   : > { %p3639_p12 = por %p3638_p11, %p3637_p10 }
   0x8   : > { %p3578_p5 = pnand %p3581_p3, %p3577_p4 }
   0xa   : > { %p3631_p7 = pneg %p3578_p5 }
   0xc   : > { %p3632_p8 = pnand %p3631_p7, %p3630_p6 }
   0xe   : > { %p3633_p9 = pneg %p3632_p8 }
  0x10   : > { %p3640_p13 = pnand %p3639_p12, %p3633_p9 }
  0x12   : > { %3643 = shalt.err (!%p3640_p13)
}
  0x13   : > { %s3656_s28 = smov [#allocation5]   ;;  %375 = sbr.rel (%p3739_p2) target bundleno = 991 (0x3df), region = 68 }
  0x14   : > { %3580 = dma.vmem_to_smem (!%p3578_p5), %s325_s25, 16, %s3656_s28, [#allocation6]  }
  0x1a   : > { %3649 = dma.done.wait (%p3581_p3), [#allocation6], 16  }
  0x1b   : > { %3651 = vsyncadd (%p3581_p3), [#allocation6], 4294967280 }
  0x1c   : > { %381 = sfence }
  0x1d   : > { %p418_p0 = scmp.lt.s32.totalorder %s3732_s22, 1  ;;  %vm441_vm0 = vcmask 261120   ;;  %vm1006_vm1 = vcmask 523264   ;;  %v3657_v0 = vmov 0.0   ;;  %s3658_s15 = smov 32   ;;  %v3596_v17 = vld [vmem:[%s5980_s3] sm:$0xff]   ;;  %v722_v21 = vlaneseq }
  0x1e   : > { %892 = vst [vmem:[#allocation2 + $0x30] sm:$0xff] %v3657_v0  ;;  %893 = vst [vmem:[#allocation2 + $0x38] sm:$0xff] %v3657_v0  ;;  %s3659_s16 = smov 64   ;;  %s3660_s17 = smov 96   ;;  %v3597_v18 = vld [vmem:[%s5980_s3 + $0x8] sm:$0xff]   ;;  %3531 = vmatprep.subr.bf16.mxu0 %v3596_v17  ;;  %v3598_v19 = vld [vmem:[%s5980_s3 + $0x10] sm:$0xff]  }
  0x1f   : > { %896 = vst [vmem:[#allocation2 + $0x50] sm:$0xff] %v3657_v0  ;;  %897 = vst [vmem:[#allocation2 + $0x58] sm:$0xff] %v3657_v0  ;;  %s6291_s22 = smov (!%p418_p0, %s3732_s22), 1  ;;  %3532 = vmatpush3.bf16.msra.mxu0 %v3596_v17  ;;  %v3599_v20 = vld [vmem:[%s5980_s3 + $0x18] sm:$0xff]   ;;  %v3600_v22 = vld [vmem:[%s5980_s3 + $0x20] sm:$0xff]   ;;  %v3877_v23 = vshrl.u32 %v722_v21, 7 }
  0x20   : > { %898 = vst [vmem:[#allocation2 + $0x60] sm:$0xff] %v3657_v0  ;;  %899 = vst [vmem:[#allocation2 + $0x68] sm:$0xff] %v3657_v0  ;;  %s3509_s29 = sshll.u32 %s6291_s22, 6  ;;  %3533 = vmatprep.subr.bf16.mxu0 %v3597_v18  ;;  %v854_v26 = vld [vmem:[%s5979_s2] sm:$0xff]  ;;  %v3601_v45 = vld [vmem:[%s5980_s3 + $0x28] sm:$0xff]   ;;  %vm1015_vm2 = vcmask 785408  }
  0x21   : > { %900 = vst [vmem:[#allocation2 + $0x70] sm:$0xff] %v3657_v0  ;;  %466 = vst.msk [vmem:[#allocation4] sm:$0xff] %vm441_vm0, %v3657_v0  ;;  %s3788_s14 = scalar_lea.vmem %s5978_s1, %s3509_s29  ;;  %v3880_v24 = vsub.s32 0, %v3877_v23  ;;  %v3883_v25 = vsub.s32 1, %v3877_v23  ;;  %v3895_v29 = vsub.s32 2, %v3877_v23  ;;  %v3904_v33 = vsub.s32 3, %v3877_v23 }
  0x22   : > { %469 = vst.msk [vmem:[#allocation4 + $0x10] sm:$0xff] %vm441_vm0, %v3657_v0  ;;  %471 = vst.msk [vmem:[#allocation4 + $0x20] sm:$0xff] %vm441_vm0, %v3657_v0  ;;  %v431_v1 = vld [vmem:[%s3788_s14 + $0x10] sm:$0xff]  ;;  %v429_v2 = vld [vmem:[%s3788_s14] sm:$0xff]  ;;  %v3911_v37 = vsub.s32 4, %v3877_v23  ;;  %v3919_v42 = vsub.s32 5, %v3877_v23 }
  0x23   : > { %473 = vst.msk [vmem:[#allocation4 + $0x30] sm:$0xff] %vm441_vm0, %v3657_v0  ;;  %475 = vst.msk [vmem:[#allocation4 + $0x40] sm:$0xff] %vm441_vm0, %v3657_v0  ;;  %v432_v3 = vld [vmem:[%s3788_s14 + $0x18] sm:$0xff]  ;;  %v3793_v4 = vmax.f32 %v431_v1, 0.0  ;;  %v3795_v5 = vmax.f32 %v429_v2, 0.0  ;;  %v430_v6 = vld [vmem:[%s3788_s14 + $0x8] sm:$0xff]  ;;  %3534 = vmatpush3.bf16.msra.mxu0 %v3597_v18  ;;  %v3889_v27 = vrot.slane %v854_v26, %v3880_v24  ;;  %v3892_v28 = vrot.slane %v854_v26, %v3883_v25 }
  0x24   : > { %477 = vst.msk [vmem:[#allocation4 + $0x50] sm:$0xff] %vm441_vm0, %v3657_v0  ;;  %479 = vst.msk [vmem:[#allocation4 + $0x60] sm:$0xff] %vm441_vm0, %v3657_v0  ;;  %v3802_v7 = vmax.f32 %v432_v3, 0.0  ;;  %v3804_v8 = vmax.f32 %v430_v6, 0.0  ;;  %v434_v9 = vld [vmem:[%s3788_s14 + $0x28] sm:$0xff]  ;;  %v433_v10 = vld [vmem:[%s3788_s14 + $0x20] sm:$0xff]  ;;  %3535 = vmatprep.subr.bf16.mxu0 %v3598_v19  ;;  %v3901_v32 = vrot.slane %v854_v26, %v3895_v29  ;;  %v3908_v36 = vrot.slane %v854_v26, %v3904_v33 }
  0x25   : > { %481 = vst.msk [vmem:[#allocation4 + $0x70] sm:$0xff] %vm441_vm0, %v3657_v0  ;;  %483 = vst.msk [vmem:[#allocation4 + $0x80] sm:$0xff] %vm441_vm0, %v3657_v0  ;;  %930 = vrot.lane.b32.xlu1 %v3793_v4, %s3658_s15  ;;  %926 = vrot.lane.b32.xlu0 %v3795_v5, %s3658_s15  ;;  %v3828_v11 = vmax.f32 %v434_v9, 0.0  ;;  %v3830_v12 = vmax.f32 %v433_v10, 0.0  ;;  %v435_v13 = vld [vmem:[%s3788_s14 + $0x30] sm:$0xff]  ;;  %v436_v15 = vld [vmem:[%s3788_s14 + $0x38] sm:$0xff]  ;;  %v3916_v41 = vrot.slane %v854_v26, %v3911_v37 }
  0x26   : > { %485 = vst.msk [vmem:[#allocation4 + $0x90] sm:$0xff] %vm441_vm0, %v3657_v0  ;;  %886 = vst [vmem:[#allocation2] sm:$0xff] %v3657_v0  ;;  %v3845_v14 = vmax.f32 %v435_v13, 0.0  ;;  %v3852_v16 = vmax.f32 %v436_v15, 0.0  ;;  %v3898_v31 = vmul.f32 0.0, %v3889_v27  ;;  %v3602_v46 = vld [vmem:[%s5980_s3 + $0x30] sm:$0xff]   ;;  %v3932_v48 = vrot.slane %v854_v26, %v3919_v42 }
  0x27   : > { %887 = vst [vmem:[#allocation2 + $0x8] sm:$0xff] %v3657_v0  ;;  %888 = vst [vmem:[#allocation2 + $0x10] sm:$0xff] %v3657_v0  ;;  %3536 = vmatpush3.bf16.msra.mxu0 %v3598_v19  ;;  %v3929_v47 = vmul.f32 0.0, %v3916_v41  ;;  %v3935_v49 = vsub.s32 6, %v3877_v23  ;;  %v3603_v51 = vld [vmem:[%s5980_s3 + $0x38] sm:$0xff]   ;;  %v3944_v53 = vsub.s32 7, %v3877_v23 }
  0x28   : > { %889 = vst [vmem:[#allocation2 + $0x18] sm:$0xff] %v3657_v0  ;;  %890 = vst [vmem:[#allocation2 + $0x20] sm:$0xff] %v3657_v0  ;;  %3537 = vmatprep.subr.bf16.mxu0 %v3599_v20  ;;  %v1186_v56 = vmul.f32 0.0, %v3932_v48  ;;  %v855_v63 = vld [vmem:[%s5979_s2 + $0x8] sm:$0xff]  ;;  %vm2454_vm3 = vcmask 519168   ;;  %s3492_s25 = sld [smem:[#allocation5 + $0x6]] }
  0x29   : > { %891 = vst [vmem:[#allocation2 + $0x28] sm:$0xff] %v3657_v0  ;;  %894 = vst [vmem:[#allocation2 + $0x40] sm:$0xff] %v3657_v0  ;;  %932 = vrot.lane.b32.xlu1 %v3802_v7, %s3658_s15  ;;  %928 = vrot.lane.b32.xlu0 %v3804_v8, %s3658_s15  ;;  %v3941_v52 = vrot.slane %v854_v26, %v3935_v49  ;;  %v3950_v59 = vrot.slane %v854_v26, %v3944_v53  ;;  %s3493_s26 = sld [smem:[#allocation5 + $0x7]]  ;;  %vm467_vm4 = vcmask 254976   ;;  %s3477_s30 = sld [smem:[#allocation5 + $0x1]] }
  0x2a   : > { %895 = vst [vmem:[#allocation2 + $0x48] sm:$0xff] %v3657_v0  ;;  %901 = vst [vmem:[#allocation2 + $0x78] sm:$0xff] %v3657_v0  ;;  %v3959_v3 = vrot.slane %v855_v63, %v3880_v24  ;;  %v3964_v18 = vrot.slane %v855_v63, %v3883_v25  ;;  %v3968_v26 = vrot.slane %v855_v63, %v3895_v29  ;;  %s3478_s13 = sld [smem:[#allocation5 + $0x2]]  ;;  %s3480_s18 = sld [smem:[#allocation5 + $0x3]] }
  0x2b   : > { %902 = vst [vmem:[#allocation2 + $0x80] sm:$0xff] %v3657_v0  ;;  %903 = vst [vmem:[#allocation2 + $0x88] sm:$0xff] %v3657_v0  ;;  %3538 = vmatpush3.bf16.msra.mxu0 %v3599_v20  ;;  %s3506_s19 = sld [smem:[#allocation5 + $0x5]] }
  0x2c   : > { %904 = vst [vmem:[#allocation2 + $0x90] sm:$0xff] %v3657_v0  ;;  %905 = vst [vmem:[#allocation2 + $0x98] sm:$0xff] %v3657_v0  ;;  %3539 = vmatprep.subr.bf16.mxu0 %v3600_v22 }
  0x2d   : > { %906 = vst [vmem:[#allocation2 + $0xa0] sm:$0xff] %v3657_v0  ;;  %907 = vst [vmem:[#allocation2 + $0xa8] sm:$0xff] %v3657_v0  ;;  %952 = vrot.lane.b32.xlu1 %v3804_v8, %s3659_s16  ;;  %950 = vrot.lane.b32.xlu0 %v3795_v5, %s3659_s16 }
  0x2e   : > { %908 = vst [vmem:[#allocation2 + $0xb0] sm:$0xff] %v3657_v0  ;;  %909 = vst [vmem:[#allocation2 + $0xb8] sm:$0xff] %v3657_v0  ;;  %v1061_v30 = vld [vmem:[#allocation2 + $0x2] sm:$0xff] }
  0x2f   : > { %910 = vst [vmem:[#allocation2 + $0xc0] sm:$0xff] %v3657_v0  ;;  %911 = vst [vmem:[#allocation2 + $0xc8] sm:$0xff] %v3657_v0  ;;  %3540 = vmatpush3.bf16.msra.mxu0 %v3600_v22  ;;  %v1073_v34 = vmul.f32 %v3892_v28, %v1061_v30  ;;  %v1089_v35 = vld [vmem:[#allocation2 + $0x4] sm:$0xff]  ;;  %v1062_v54 = vld [vmem:[#allocation2 + $0x12] sm:$0xff] }
  0x30   : > { %912 = vst [vmem:[#allocation2 + $0xd0] sm:$0xff] %v3657_v0  ;;  %913 = vst [vmem:[#allocation2 + $0xd8] sm:$0xff] %v3657_v0  ;;  %v1101_v39 = vmul.f32 %v3901_v32, %v1089_v35  ;;  %v1117_v40 = vld [vmem:[#allocation2 + $0x6] sm:$0xff]  ;;  %3541 = vmatprep.subr.bf16.mxu0 %v3601_v45  ;;  %v1074_v58 = vmul.f32 %v3892_v28, %v1062_v54  ;;  %v1090_v60 = vld [vmem:[#allocation2 + $0x14] sm:$0xff] }
  0x31   : > { %914 = vst [vmem:[#allocation2 + $0xe0] sm:$0xff] %v3657_v0  ;;  %915 = vst [vmem:[#allocation2 + $0xe8] sm:$0xff] %v3657_v0  ;;  %956 = vrot.lane.b32.xlu1 %v3802_v7, %s3659_s16  ;;  %954 = vrot.lane.b32.xlu0 %v3793_v4, %s3659_s16  ;;  %v1081_v38 = vadd.f32 %v1073_v34, %v3898_v31  ;;  %v1129_v44 = vmul.f32 %v3908_v36, %v1117_v40  ;;  %v1063_v57 = vld [vmem:[#allocation2 + $0x22] sm:$0xff]  ;;  %v1118_v6 = vld [vmem:[#allocation2 + $0x16] sm:$0xff] }
  0x32   : > { %916 = vst [vmem:[#allocation2 + $0xf0] sm:$0xff] %v3657_v0  ;;  %917 = vst [vmem:[#allocation2 + $0xf8] sm:$0xff] %v3657_v0  ;;  %v1214_v62 = vmul.f32 %v3941_v52, %v1063_v57  ;;  %v1082_v1 = vadd.f32 %v1074_v58, %v3898_v31  ;;  %v1102_v2 = vmul.f32 %v3901_v32, %v1090_v60  ;;  %v1091_v13 = vld [vmem:[#allocation2 + $0x24] sm:$0xff]  ;;  %v1231_v60 = vld [vmem:[#allocation2 + $0x33] sm:$0xff] }
  0x33   : > { %2453 = vst.msk [vmem:[#allocation3] sm:$0xff] %vm1006_vm1, %v3657_v0  ;;  %2456 = vst.msk [vmem:[#allocation3 + $0x10] sm:$0xff] %vm1006_vm1, %v3657_v0  ;;  %v1109_v43 = vadd.f32 %v1101_v39, %v1081_v38  ;;  %3542 = vmatpush3.bf16.msra.mxu0 %v3601_v45  ;;  %v1130_v17 = vmul.f32 %v3908_v36, %v1118_v6  ;;  %v1270_v20 = vmul.f32 %v3959_v3, %v1091_v13  ;;  %v1286_v21 = vld [vmem:[#allocation2 + $0x25] sm:$0xff] }
  0x34   : > { %2458 = vst.msk [vmem:[#allocation3 + $0x20] sm:$0xff] %vm1006_vm1, %v3657_v0  ;;  %2460 = vst.msk [vmem:[#allocation3 + $0x30] sm:$0xff] %vm1006_vm1, %v3657_v0  ;;  %3543 = vmatprep.subr.bf16.mxu0 %v3602_v46  ;;  %v1110_v15 = vadd.f32 %v1102_v2, %v1082_v1  ;;  %v1298_v34 = vmul.f32 %v3964_v18, %v1286_v21  ;;  %v3971_v35 = vld [vmem:[#allocation2 + $0x26] sm:$0xff]  ;;  %v3981_v58 = vrot.slane %v855_v63, %v3911_v37  ;;  %v1120_v21 = vld [vmem:[#allocation2 + $0x36] sm:$0xff] }
  0x35   : > { %2462 = vst.msk [vmem:[#allocation3 + $0x40] sm:$0xff] %vm1006_vm1, %v3657_v0  ;;  %2464 = vst.msk [vmem:[#allocation3 + $0x50] sm:$0xff] %vm1006_vm1, %v3657_v0  ;;  %976 = vrot.lane.b32.xlu1 %v3804_v8, %s3660_s17  ;;  %974 = vrot.lane.b32.xlu0 %v3795_v5, %s3660_s17  ;;  %v1137_v50 = vadd.f32 %v1129_v44, %v1109_v43  ;;  %v1064_v43 = vld [vmem:[#allocation2 + $0x32] sm:$0xff]  ;;  %v3975_v44 = vrot.slane %v855_v63, %v3904_v33 }
  0x36   : > { %2466 = vst.msk [vmem:[#allocation3 + $0x60] sm:$0xff] %vm1006_vm1, %v3657_v0  ;;  %2468 = vst.msk [vmem:[#allocation3 + $0x70] sm:$0xff] %vm1006_vm1, %v3657_v0  ;;  %v1138_v22 = vadd.f32 %v1130_v17, %v1110_v15  ;;  %v1383_v17 = vmul.f32 %v3981_v58, %v1064_v43 }
  0x37   : > { %2470 = vst.msk [vmem:[#allocation3 + $0x80] sm:$0xff] %vm1006_vm1, %v3657_v0  ;;  %2472 = vst.msk [vmem:[#allocation3 + $0x90] sm:$0xff] %vm1006_vm1, %v3657_v0  ;;  %v1165_v55 = vadd.f32 %v3929_v47, %v1137_v50  ;;  %3544 = vmatpush3.bf16.msra.mxu0 %v3602_v46  ;;  %v1326_v46 = vmul.f32 %v3968_v26, %v3971_v35 }
  0x38   : > { %2474 = vst.msk [vmem:[#allocation3 + $0xa0] sm:$0xff] %vm1006_vm1, %v3657_v0  ;;  %2476 = vst.msk [vmem:[#allocation3 + $0xb0] sm:$0xff] %vm1006_vm1, %v3657_v0  ;;  %3545 = vmatprep.subr.bf16.mxu0 %v3603_v51  ;;  %v1230_v0 = vld [vmem:[#allocation2 + $0x23] sm:$0xff]  ;;  %v1166_v40 = vadd.f32 %v3929_v47, %v1138_v22  ;;  %v1075_v22 = vmul.f32 %v3892_v28, %v1063_v57 }
  0x39   : > { %980 = vrot.lane.b32.xlu1 %v3802_v7, %s3660_s17  ;;  %978 = vrot.lane.b32.xlu0 %v3793_v4, %s3660_s17  ;;  %6112 = vst [vmem:[#allocation8_spill] sm:$0xff] %v3852_v16  ;;  %6113 = vst [vmem:[#allocation9_spill] sm:$0xff] %v3877_v23  ;;  %v1194_v61 = vadd.f32 %v1186_v56, %v1165_v55  ;;  %v1242_v10 = vmul.f32 %v3950_v59, %v1230_v0 }
  0x3a   : > { %6114 = vst [vmem:[#allocation10_spill] sm:$0xff] %v3880_v24  ;;  %6115 = vst [vmem:[#allocation11_spill] sm:$0xff] %v3883_v25  ;;  %v1195_v54 = vadd.f32 %v1186_v56, %v1166_v40  ;;  %v1215_v55 = vmul.f32 %v3941_v52, %v1064_v43  ;;  %v1076_v0 = vmul.f32 %v3892_v28, %v1064_v43 }
  0x3b   : > { %6116 = vst [vmem:[#allocation12_spill] sm:$0xff] %v3889_v27  ;;  %6117 = vst [vmem:[#allocation13_spill] sm:$0xff] %v3892_v28  ;;  %3546 = vmatpush3.bf16.msra.mxu0 %v3603_v51  ;;  %v1222_v9 = vadd.f32 %v1214_v62, %v1194_v61  ;;  %v3984_v62 = vmul.f32 0.0, %v3975_v44  ;;  %v3989_v56 = vrot.slane %v855_v63, %v3919_v42 }
  0x3c   : > { %6118 = vst [vmem:[#allocation14_spill] sm:$0xff] %v3895_v29  ;;  %6119 = vst [vmem:[#allocation15_spill] sm:$0xff] %v3901_v32  ;;  %v1223_v6 = vadd.f32 %v1215_v55, %v1195_v54  ;;  %v1132_v43 = vmul.f32 %v3908_v36, %v1120_v21  ;;  %v4003_v23 = vrot.slane %v855_v63, %v3944_v53 }
  0x3d   : > { %936 = vrot.lane.b32.xlu1 %v3828_v11, %s3658_s15  ;;  %934 = vrot.lane.b32.xlu0 %v3830_v12, %s3658_s15  ;;  %6120 = vst [vmem:[#allocation16_spill] sm:$0xff] %v3904_v33  ;;  %6121 = vst [vmem:[#allocation17_spill] sm:$0xff] %v3908_v36  ;;  %v1250_v19 = vadd.f32 %v1242_v10, %v1222_v9  ;;  %v1243_v9 = vmul.f32 %v3950_v59, %v1231_v60  ;;  %v1092_v10 = vld [vmem:[#allocation2 + $0x34] sm:$0xff] }
  0x3e   : > { %6122 = vst [vmem:[#allocation18_spill] sm:$0xff] %v3911_v37  ;;  %6123 = vst [vmem:[#allocation19_spill] sm:$0xff] %v3916_v41  ;;  %v1411_v55 = vmul.f32 %v3989_v56, %v1231_v60 }
  0x3f   : > { %6124 = vst [vmem:[#allocation20_spill] sm:$0xff] %v3919_v42  ;;  %6125 = vst [vmem:[#allocation21_spill] sm:$0xff] %v3932_v48  ;;  %v1278_v30 = vadd.f32 %v1270_v20, %v1250_v19  ;;  %v1084_v19 = vadd.f32 %v1076_v0, %v3898_v31  ;;  %v1104_v20 = vmul.f32 %v3901_v32, %v1092_v10 }
  0x40   : > { %6126 = vst [vmem:[#allocation22_spill] sm:$0xff] %v3935_v49  ;;  %6127 = vst [vmem:[#allocation23_spill] sm:$0xff] %v3941_v52  ;;  %v1251_v40 = vadd.f32 %v1243_v9, %v1223_v6  ;;  %v4000_v0 = vrot.slane %v855_v63, %v3935_v49  ;;  %v1083_v9 = vadd.f32 %v1075_v22, %v3898_v31 }
  0x41   : > { %960 = vrot.lane.b32.xlu1 %v3828_v11, %s3659_s16  ;;  %958 = vrot.lane.b32.xlu0 %v3830_v12, %s3659_s16  ;;  %6128 = vst [vmem:[#allocation24_spill] sm:$0xff] %v3944_v53  ;;  %6129 = vst [vmem:[#allocation25_spill] sm:$0xff] %v3950_v59  ;;  %v1306_v45 = vadd.f32 %v1298_v34, %v1278_v30 }
  0x42   : > { %6130 = vst [vmem:[#allocation26_spill] sm:$0xff] %v3959_v3  ;;  %6131 = vst [vmem:[#allocation27_spill] sm:$0xff] %v3964_v18  ;;  %v1439_v31 = vmul.f32 %v4000_v0, %v1092_v10 }
  0x43   : > { %6132 = vst [vmem:[#allocation28_spill] sm:$0xff] %v3968_v26  ;;  %v1334_v61 = vadd.f32 %v1326_v46, %v1306_v45  ;;  %6133 = vst [vmem:[#allocation29_spill] sm:$0xff] %v3989_v56  ;;  %v1271_v45 = vmul.f32 %v3959_v3, %v1092_v10  ;;  %v1287_v46 = vld [vmem:[#allocation2 + $0x35] sm:$0xff]  ;;  %v1131_v10 = vmul.f32 %v3908_v36, %v3971_v35 }
  0x44   : > { %6134 = vst [vmem:[#allocation30_spill] sm:$0xff] %v4000_v0  ;;  %6135 = vst [vmem:[#allocation31_spill] sm:$0xff] %v4003_v23 }
  0x45   : > { %984 = vrot.lane.b32.xlu1 %v3828_v11, %s3660_s17  ;;  %982 = vrot.lane.b32.xlu0 %v3830_v12, %s3660_s17  ;;  %v1362_v15 = vadd.f32 %v3984_v62, %v1334_v61  ;;  %v1112_v61 = vadd.f32 %v1104_v20, %v1084_v19  ;;  %v1279_v20 = vadd.f32 %v1271_v45, %v1251_v40 }
  0x47   : > { %v1391_v54 = vadd.f32 %v1383_v17, %v1362_v15  ;;  %v1103_v15 = vmul.f32 %v3901_v32, %v1091_v13 }
  0x49   : > { %938 = vrot.lane.b32.xlu0 %v3845_v14, %s3658_s15  ;;  %962 = vrot.lane.b32.xlu1 %v3845_v14, %s3659_s16  ;;  %v1111_v40 = vadd.f32 %v1103_v15, %v1083_v9 }
  0x4b   : > { %v1139_v35 = vadd.f32 %v1131_v10, %v1111_v40 }
  0x4d   : > { %986 = vrot.lane.b32.xlu0 %v3845_v14, %s3660_s17  ;;  %940 = vrot.lane.b32.xlu1 %v3852_v16, %s3658_s15  ;;  %v1167_v10 = vadd.f32 %v3929_v47, %v1139_v35 }
  0x51   : > { %964 = vrot.lane.b32.xlu0 %v3852_v16, %s3659_s16  ;;  %988 = vrot.lane.b32.xlu1 %v3852_v16, %s3660_s17  ;;  %v1299_v16 = vmul.f32 %v3964_v18, %v1287_v46 }
  0x97   : > { %v931_v38 = vpop.permute.xlu1 %930  ;;  %v927_v39 = vpop.permute.xlu0 %926 }
  0x98   : > { %v998_v57 = vsel %vm441_vm0, %v3795_v5, %v927_v39  ;;  %v856_v5 = vld [vmem:[%s5979_s2 + $0x10] sm:$0xff] }
  0x9b   : > { %v933_v50 = vpop.permute.xlu1 %932  ;;  %v929_v51 = vpop.permute.xlu0 %928 }
  0x9c   : > { %v999_v6 = vsel %vm441_vm0, %v3804_v8, %v929_v51  ;;  %v1419_v8 = vadd.f32 %v1411_v55, %v1391_v54  ;;  %v1140_v51 = vadd.f32 %v1132_v43, %v1112_v61  ;;  %v1001_v22 = vsel %vm441_vm0, %v3802_v7, %v933_v50 }
  0x9d   : > { %v1307_v55 = vadd.f32 %v1299_v16, %v1279_v20  ;;  %v1327_v61 = vmul.f32 %v3968_v26, %v1120_v21  ;;  %v4063_v20 = vrot.slane %v856_v5, %v3911_v37 }
  0x9e   : > { %v1168_v16 = vadd.f32 %v3929_v47, %v1140_v51  ;;  %v4074_v51 = vld [vmem:[%s5979_s2 + $0x18] sm:$0xff] }
  0x9f   : > { %v953_v1 = vpop.permute.xlu1 %952  ;;  %v951_v2 = vpop.permute.xlu0 %950  ;;  %v1335_v50 = vadd.f32 %v1327_v61, %v1307_v55  ;;  %6143 = vst [vmem:[#allocation39_spill] sm:$0xff] %v4063_v20  ;;  %6144 = vst [vmem:[#allocation40_spill] sm:$0xff] %v4074_v51  ;;  %v4101_v47 = vrot.slane %v4074_v51, %v3895_v29 }
  0xa0   : > { %v1008_v60 = vsel %vm1006_vm1, %v999_v6, %v953_v1  ;;  %v1007_v17 = vsel %vm1006_vm1, %v998_v57, %v951_v2  ;;  %v4025_v1 = vrot.slane %v856_v5, %v3880_v24  ;;  %v1000_v2 = vsel %vm441_vm0, %v3793_v4, %v931_v38 }
  0xa1   : > { %v1447_v6 = vadd.f32 %v1439_v31, %v1419_v8  ;;  %v4049_v38 = vrot.slane %v856_v5, %v3883_v25  ;;  %v1363_v61 = vadd.f32 %v3984_v62, %v1335_v50  ;;  %6150 = vst [vmem:[#allocation46_spill] sm:$0xff] %v4101_v47  ;;  %v4109_v50 = vrot.slane %v4074_v51, %v3904_v33 }
  0xa2   : > { %6137 = vst [vmem:[#allocation33_spill] sm:$0xff] %v4025_v1 }
  0xa3   : > { %v957_v30 = vpop.permute.xlu1 %956  ;;  %v955_v34 = vpop.permute.xlu0 %954  ;;  %6140 = vst [vmem:[#allocation36_spill] sm:$0xff] %v4049_v38  ;;  %6151 = vst [vmem:[#allocation47_spill] sm:$0xff] %v4109_v50 }
  0xa4   : > { %v1010_v45 = vsel %vm1006_vm1, %v1001_v22, %v957_v30  ;;  %v1009_v54 = vsel %vm1006_vm1, %v1000_v2, %v955_v34  ;;  %v4052_v30 = vrot.slane %v856_v5, %v3895_v29  ;;  %v4055_v34 = vrot.slane %v856_v5, %v3904_v33 }
  0xa5   : > { %v4080_v2 = vrot.slane %v856_v5, %v3935_v49  ;;  %v4083_v22 = vrot.slane %v856_v5, %v3944_v53  ;;  %v4097_v53 = vrot.slane %v4074_v51, %v3883_v25 }
  0xa6   : > { %6141 = vst [vmem:[#allocation37_spill] sm:$0xff] %v4052_v30  ;;  %6142 = vst [vmem:[#allocation38_spill] sm:$0xff] %v4055_v34 }
  0xa7   : > { %v977_v19 = vpop.permute.xlu1 %976  ;;  %v975_v63 = vpop.permute.xlu0 %974  ;;  %6146 = vst [vmem:[#allocation42_spill] sm:$0xff] %v4080_v2  ;;  %6147 = vst [vmem:[#allocation43_spill] sm:$0xff] %v4083_v22 }
  0xa8   : > { %v4018_v39 = vsel %vm1015_vm2, %v1008_v60, %v977_v19  ;;  %v4022_v13 = vsel %vm1015_vm2, %v1007_v17, %v975_v63  ;;  %v1467_v60 = vmul.f32 %v4003_v23, %v1287_v46  ;;  %v1495_v17 = vmul.f32 %v4025_v1, %v1120_v21  ;;  %6149 = vst [vmem:[#allocation45_spill] sm:$0xff] %v4097_v53 }
  0xa9   : > { %6136 = vst [vmem:[#allocation32_spill] sm:$0xff] %v4018_v39  ;;  %1026 = vst [vmem:[#allocation2 + $0x54] sm:$0xff] %v4018_v39  ;;  %v4077_v21 = vrot.slane %v856_v5, %v3919_v42  ;;  %v1106_v35 = vmul.f32 %v3901_v32, %v4018_v39  ;;  %v1440_v53 = vmul.f32 %v4000_v0, %v4022_v13 }
  0xaa   : > { %1025 = vst [vmem:[#allocation2 + $0x44] sm:$0xff] %v4022_v13  ;;  %v1475_v15 = vadd.f32 %v1467_v60, %v1447_v6  ;;  %v4136_v49 = vmul.f32 %v4063_v20, %v4022_v13 }
  0xab   : > { %v981_v43 = vpop.permute.xlu1 %980  ;;  %v979_v57 = vpop.permute.xlu0 %978  ;;  %6145 = vst [vmem:[#allocation41_spill] sm:$0xff] %v4077_v21 }
  0xac   : > { %v4040_v4 = vsel %vm1015_vm2, %v1010_v45, %v981_v43  ;;  %v4043_v7 = vsel %vm1015_vm2, %v1009_v54, %v979_v57  ;;  %v4093_v43 = vrot.slane %v4074_v51, %v3880_v24  ;;  %v1503_v6 = vadd.f32 %v1495_v17, %v1475_v15 }
  0xad   : > { %6138 = vst [vmem:[#allocation34_spill] sm:$0xff] %v4040_v4  ;;  %6139 = vst [vmem:[#allocation35_spill] sm:$0xff] %v4043_v7  ;;  %v1273_v15 = vmul.f32 %v3959_v3, %v4018_v39  ;;  %v4115_v17 = vmul.f32 %v4063_v20, %v4018_v39 }
  0xae   : > { %1028 = vst [vmem:[#allocation2 + $0x74] sm:$0xff] %v4040_v4  ;;  %1027 = vst [vmem:[#allocation2 + $0x64] sm:$0xff] %v4043_v7 }
  0xaf   : > { %v935_v19 = vpop.permute.xlu0 %934  ;;  %v937_v45 = vpop.permute.xlu1 %936  ;;  %6148 = vst [vmem:[#allocation44_spill] sm:$0xff] %v4093_v43  ;;  %6152 = vst [vmem:[#allocation48_spill] sm:$0xff] %v4115_v17 }
  0xb0   : > { %v4057_v46 = vld [vmem:[#allocation2 + $0x50] sm:$0xff]  ;;  %v4129_v29 = vld [vmem:[#allocation2 + $0x58] sm:$0xff] }
  0xb1   : > { %v4059_v9 = vld [vmem:[#allocation2 + $0x52] sm:$0xff]  ;;  %v1050_v63 = vmul.f32 %v3889_v27, %v4057_v46  ;;  %v1189_v31 = vmul.f32 %v3932_v48, %v4057_v46  ;;  %v1037_v60 = vld [vmem:[#allocation2 + $0x40] sm:$0xff]  ;;  %6154 = vst [vmem:[#allocation50_spill] sm:$0xff] %v4129_v29  ;;  %v4175_v42 = vld [vmem:[#allocation2 + $0x48] sm:$0xff] }
  0xb2   : > { %v1078_v8 = vmul.f32 %v3892_v28, %v4059_v9  ;;  %v4085_v40 = vld [vmem:[#allocation2 + $0x53] sm:$0xff]  ;;  %v1217_v55 = vmul.f32 %v3941_v52, %v4059_v9  ;;  %v1065_v5 = vld [vmem:[#allocation2 + $0x42] sm:$0xff]  ;;  %v1049_v50 = vmul.f32 %v3889_v27, %v1037_v60 }
  0xb3   : > { %v1197_v54 = vadd.f32 %v1189_v31, %v1168_v16  ;;  %v1245_v16 = vmul.f32 %v3950_v59, %v4085_v40  ;;  %v4121_v31 = vpop.permute.xlu0 %958  ;;  %v1077_v47 = vmul.f32 %v3892_v28, %v1065_v5  ;;  %v4131_v25 = vld [vmem:[#allocation2 + $0x55] sm:$0xff]  ;;  %v1232_v27 = vld [vmem:[#allocation2 + $0x43] sm:$0xff] }
  0xb4   : > { %v1086_v57 = vadd.f32 %v1078_v8, %v1050_v63  ;;  %v1105_v63 = vmul.f32 %v3901_v32, %v4022_v13  ;;  %v1272_v8 = vmul.f32 %v3959_v3, %v4022_v13  ;;  %v1188_v32 = vmul.f32 %v3932_v48, %v1037_v60  ;;  %v4158_v0 = vld [vmem:[#allocation2 + $0x46] sm:$0xff] }
  0xb5   : > { %v1225_v62 = vadd.f32 %v1217_v55, %v1197_v54  ;;  %v4123_v54 = vld [vmem:[#allocation2 + $0x56] sm:$0xff]  ;;  %v1085_v28 = vadd.f32 %v1077_v47, %v1049_v50  ;;  %v4154_v13 = vsel %vm441_vm0, %v3830_v12, %v935_v19  ;;  %v1216_v50 = vmul.f32 %v3941_v52, %v1065_v5  ;;  %v1288_v43 = vld [vmem:[#allocation2 + $0x45] sm:$0xff] }
  0xb6   : > { %6153 = vst [vmem:[#allocation49_spill] sm:$0xff] %v4123_v54  ;;  %v1114_v33 = vadd.f32 %v1106_v35, %v1086_v57  ;;  %v4146_v57 = vsel %vm441_vm0, %v3828_v11, %v937_v45  ;;  %v4150_v35 = vmul.f32 %v3959_v3, %v4043_v7  ;;  %v1134_v20 = vmul.f32 %v3908_v36, %v4123_v54 }
  0xb7   : > { %v1253_v55 = vadd.f32 %v1245_v16, %v1225_v62  ;;  %v4140_v62 = vmul.f32 %v3959_v3, %v4040_v4  ;;  %v4142_v16 = vpop.permute.xlu1 %960  ;;  %v1196_v47 = vadd.f32 %v1188_v32, %v1167_v10  ;;  %v1162_v11 = vmul.f32 %v3916_v41, %v4129_v29 }
  0xb8   : > { %v1301_v45 = vmul.f32 %v3964_v18, %v4131_v25  ;;  %v1113_v3 = vadd.f32 %v1105_v63, %v1085_v28  ;;  %v1384_v7 = vmul.f32 %v3981_v58, %v1065_v5  ;;  %v1142_v12 = vadd.f32 %v1134_v20, %v1114_v33 }
  0xb9   : > { %v1281_v4 = vadd.f32 %v1273_v15, %v1253_v55  ;;  %v1224_v19 = vadd.f32 %v1216_v50, %v1196_v47  ;;  %v1244_v39 = vmul.f32 %v3950_v59, %v1232_v27  ;;  %v1523_v15 = vmul.f32 %v4049_v38, %v1037_v60  ;;  %v4168_v55 = vpop.permute.xlu0 %982 }
  0xba   : > { %v1329_v32 = vmul.f32 %v3968_v26, %v4123_v54  ;;  %v1133_v10 = vmul.f32 %v3908_v36, %v4158_v0  ;;  %v1392_v24 = vadd.f32 %v1384_v7, %v1363_v61  ;;  %v1412_v28 = vmul.f32 %v3989_v56, %v1232_v27  ;;  %v4184_v7 = vld [vmem:[#allocation2 + $0x70] sm:$0xff] }
  0xbb   : > { %v1309_v63 = vadd.f32 %v1301_v45, %v1281_v4  ;;  %v1252_v33 = vadd.f32 %v1244_v39, %v1224_v19  ;;  %v1531_v20 = vadd.f32 %v1523_v15, %v1503_v6  ;;  %v1551_v47 = vmul.f32 %v4052_v30, %v1065_v5  ;;  %v985_v60 = vpop.permute.xlu1 %984 }
  0xbc   : > { %v1357_v50 = vmul.f32 %v3975_v44, %v4129_v29  ;;  %v4182_v54 = vmul.f32 %v3981_v58, %v4059_v9  ;;  %v1141_v36 = vadd.f32 %v1133_v10, %v1113_v3  ;;  %v1420_v17 = vadd.f32 %v1412_v28, %v1392_v24  ;;  %v4193_v3 = vld [vmem:[#allocation2 + $0x60] sm:$0xff]  ;;  %v4199_v28 = vld [vmem:[#allocation2 + $0x72] sm:$0xff] }
  0xbd   : > { %v1170_v61 = vadd.f32 %v1162_v11, %v1142_v12  ;;  %v1280_v4 = vadd.f32 %v1272_v8, %v1252_v33  ;;  %v1300_v45 = vmul.f32 %v3964_v18, %v1288_v43  ;;  %v1559_v39 = vadd.f32 %v1551_v47, %v1531_v20  ;;  %v939_v6 = vpop.permute.xlu0 %938  ;;  %v4207_v20 = vld [vmem:[#allocation2 + $0x62] sm:$0xff] }
  0xbe   : > { %v1161_v5 = vmul.f32 %v3916_v41, %v4175_v42  ;;  %v1448_v19 = vadd.f32 %v1440_v53, %v1420_v17  ;;  %v1468_v15 = vmul.f32 %v4003_v23, %v1288_v43  ;;  %v1579_v29 = vmul.f32 %v4055_v34, %v1232_v27  ;;  %v4201_v27 = vld [vmem:[#allocation2 + $0x73] sm:$0xff] }
  0xbf   : > { %v1337_v22 = vadd.f32 %v1329_v32, %v1309_v63  ;;  %v1308_v51 = vadd.f32 %v1300_v45, %v1280_v4  ;;  %v1328_v24 = vmul.f32 %v3968_v26, %v4158_v0  ;;  %v1191_v8 = vmul.f32 %v3932_v48, %v4184_v7  ;;  %v963_v11 = vpop.permute.xlu1 %962  ;;  %v4213_v45 = vld [vmem:[#allocation2 + $0x63] sm:$0xff] }
  0xc0   : > { %v1169_v12 = vadd.f32 %v1161_v5, %v1141_v36  ;;  %v1476_v10 = vadd.f32 %v1468_v15, %v1448_v19  ;;  %v1496_v53 = vmul.f32 %v4025_v1, %v4158_v0  ;;  %v1587_v17 = vadd.f32 %v1579_v29, %v1559_v39 }
  0xc1   : > { %v1524_v32 = vmul.f32 %v4049_v38, %v4057_v46  ;;  %v1552_v63 = vmul.f32 %v4052_v30, %v4059_v9  ;;  %v1336_v33 = vadd.f32 %v1328_v24, %v1308_v51  ;;  %v1199_v47 = vadd.f32 %v1191_v8, %v1170_v61  ;;  %v987_v19 = vpop.permute.xlu0 %986 }
  0xc2   : > { %v1580_v36 = vmul.f32 %v4055_v34, %v4085_v40  ;;  %v1356_v29 = vmul.f32 %v3975_v44, %v4175_v42  ;;  %v1504_v4 = vadd.f32 %v1496_v53, %v1476_v10  ;;  %v1190_v39 = vmul.f32 %v3932_v48, %v4193_v3 }
  0xc3   : > { %v1365_v46 = vadd.f32 %v1357_v50, %v1337_v22  ;;  %v1635_v5 = vmul.f32 %v4077_v21, %v1288_v43  ;;  %v1219_v51 = vmul.f32 %v3941_v52, %v4199_v28  ;;  %v1247_v61 = vmul.f32 %v3950_v59, %v4201_v27  ;;  %v941_v15 = vpop.permute.xlu1 %940 }
  0xc4   : > { %v1532_v24 = vadd.f32 %v1524_v32, %v1504_v4  ;;  %v1615_v8 = vadd.f32 %v4136_v49, %v1587_v17  ;;  %v1218_v10 = vmul.f32 %v3941_v52, %v4207_v20  ;;  %v1198_v53 = vadd.f32 %v1190_v39, %v1169_v12 }
  0xc5   : > { %v1364_v41 = vadd.f32 %v1356_v29, %v1336_v33  ;;  %v1246_v22 = vmul.f32 %v3950_v59, %v4213_v45  ;;  %v1227_v43 = vadd.f32 %v1219_v51, %v1199_v47  ;;  %v1012_v50 = vsel %vm1006_vm1, %v4146_v57, %v4142_v16  ;;  %v965_v57 = vpop.permute.xlu0 %964 }
  0xc6   : > { %v1560_v34 = vadd.f32 %v1552_v63, %v1532_v24  ;;  %v1226_v48 = vadd.f32 %v1218_v10, %v1198_v53  ;;  %v1011_v32 = vsel %vm1006_vm1, %v4154_v13, %v4121_v31  ;;  %v4234_v49 = vsel %vm1015_vm2, %v1012_v50, %v985_v60  ;;  %v6155_v13 = vld [vmem:[#allocation8_spill] sm:$0xff]  ;;  %v6167_v50 = vld [vmem:[#allocation49_spill] sm:$0xff] }
  0xc7   : > { %v1663_v12 = vmul.f32 %v4080_v2, %v4158_v0  ;;  %v1386_v17 = vmul.f32 %v3981_v58, %v4207_v20  ;;  %v1255_v33 = vadd.f32 %v1247_v61, %v1227_v43  ;;  %1030 = vst [vmem:[#allocation2 + $0x94] sm:$0xff] %v4234_v49  ;;  %v4243_v16 = vsel %vm1015_vm2, %v1011_v32, %v4168_v55  ;;  %v989_v39 = vpop.permute.xlu1 %988  ;;  %v6163_v10 = vld [vmem:[#allocation20_spill] sm:$0xff] }
  0xc8   : > { %v1643_v63 = vadd.f32 %v1635_v5, %v1615_v8  ;;  %v1254_v47 = vadd.f32 %v1246_v22, %v1226_v48  ;;  %1029 = vst [vmem:[#allocation2 + $0x84] sm:$0xff] %v4243_v16  ;;  %v1004_v31 = vsel %vm441_vm0, %v3845_v14, %v939_v6  ;;  %v1005_v0 = vsel %vm441_vm0, %v6155_v13, %v941_v15  ;;  %v858_v14 = vld [vmem:[%s5979_s2 + $0x20] sm:$0xff]  ;;  %v6165_v22 = vld [vmem:[#allocation10_spill] sm:$0xff] }
  0xc9   : > { %v1393_v60 = vadd.f32 %v4182_v54, %v1364_v41  ;;  %v1394_v29 = vadd.f32 %v1386_v17, %v1365_v46  ;;  %v4252_v4 = vadd.f32 %v4140_v62, %v1255_v33  ;;  %v1013_v55 = vsel %vm1006_vm1, %v1004_v31, %v963_v11  ;;  %v6160_v46 = vld [vmem:[#allocation43_spill] sm:$0xff]  ;;  %v6168_v33 = vld [vmem:[#allocation44_spill] sm:$0xff] }
  0xca   : > { %v1282_v5 = vadd.f32 %v4150_v35, %v1254_v47  ;;  %v4257_v48 = vsel %vm1015_vm2, %v1013_v55, %v987_v19  ;;  %v1014_v51 = vsel %vm1006_vm1, %v1005_v0, %v965_v57  ;;  %v1588_v6 = vadd.f32 %v1580_v36, %v1560_v34  ;;  %v6158_v35 = vld [vmem:[#allocation40_spill] sm:$0xff]  ;;  %v6171_v31 = vld [vmem:[#allocation35_spill] sm:$0xff]  ;;  %v6172_v0 = vld [vmem:[#allocation22_spill] sm:$0xff] }
  0xcb   : > { %6156 = vst [vmem:[#allocation8_spill] sm:$0xff] %v4252_v4  ;;  %6157 = vst [vmem:[#allocation51_spill] sm:$0xff] %v4257_v48  ;;  %v1413_v41 = vmul.f32 %v3989_v56, %v4085_v40  ;;  %v1636_v54 = vmul.f32 %v4077_v21, %v4131_v25  ;;  %v1414_v62 = vmul.f32 %v3989_v56, %v4213_v45  ;;  %v6162_v36 = vld [vmem:[#allocation48_spill] sm:$0xff] }
  0xcc   : > { %1031 = vst [vmem:[#allocation2 + $0xa4] sm:$0xff] %v4257_v48  ;;  %v4272_v11 = vrot.slane %v6158_v35, %v3911_v37  ;;  %v1691_v61 = vmul.f32 %v6160_v46, %v4175_v42  ;;  %v4277_v34 = vsel %vm1015_vm2, %v1014_v51, %v989_v39  ;;  %v1616_v19 = vadd.f32 %v6162_v36, %v1588_v6  ;;  %v4304_v39 = vld [vmem:[#allocation2 + $0x65] sm:$0xff] }
  0xcd   : > { %6161 = vst [vmem:[#allocation52_spill] sm:$0xff] %v4277_v34  ;;  %v1671_v15 = vadd.f32 %v1663_v12, %v1643_v63  ;;  %v1421_v24 = vadd.f32 %v1413_v41, %v1393_v60  ;;  %v1422_v8 = vadd.f32 %v1414_v62, %v1394_v29  ;;  %1032 = vst [vmem:[#allocation2 + $0xb4] sm:$0xff] %v4277_v34  ;;  %v6169_v12 = vld [vmem:[#allocation32_spill] sm:$0xff]  ;;  %v6170_v63 = vld [vmem:[#allocation30_spill] sm:$0xff] }
  0xce   : > { %6159 = vst [vmem:[#allocation40_spill] sm:$0xff] %v4272_v11  ;;  %v4283_v53 = vrot.slane %v6158_v35, %v6163_v10  ;;  %v4286_v43 = vrot.slane %v858_v14, %v6165_v22  ;;  %v1664_v42 = vmul.f32 %v4080_v2, %v6167_v50  ;;  %v1644_v32 = vadd.f32 %v1636_v54, %v1616_v19  ;;  %v6174_v29 = vld [vmem:[#allocation24_spill] sm:$0xff]  ;;  %v6175_v41 = vld [vmem:[#allocation11_spill] sm:$0xff]  ;;  %v6176_v54 = vld [vmem:[#allocation14_spill] sm:$0xff] }
  0xcf   : > { %v1699_v17 = vadd.f32 %v1691_v61, %v1671_v15  ;;  %v1720_v57 = vmul.f32 %v6168_v33, %v4059_v9  ;;  %v1441_v47 = vmul.f32 %v6170_v63, %v6169_v12  ;;  %v1442_v13 = vmul.f32 %v6170_v63, %v6171_v31  ;;  %v6177_v19 = vld [vmem:[#allocation16_spill] sm:$0xff] }
  0xd0   : > { %6164 = vst [vmem:[#allocation48_spill] sm:$0xff] %v4283_v53  ;;  %6166 = vst [vmem:[#allocation53_spill] sm:$0xff] %v4286_v43  ;;  %v4298_v60 = vrot.slane %v6158_v35, %v6172_v0  ;;  %v4302_v55 = vrot.slane %v6158_v35, %v6174_v29  ;;  %v1672_v51 = vadd.f32 %v1664_v42, %v1644_v32  ;;  %v6180_v35 = vld [vmem:[#allocation50_spill] sm:$0xff]  ;;  %v6181_v42 = vld [vmem:[#allocation45_spill] sm:$0xff] }
  0xd1   : > { %v1728_v6 = vadd.f32 %v1720_v57, %v1699_v17  ;;  %v4307_v9 = vrot.slane %v858_v14, %v6175_v41  ;;  %v4310_v62 = vrot.slane %v858_v14, %v6176_v54  ;;  %v1449_v61 = vadd.f32 %v1441_v47, %v1421_v24  ;;  %v6183_v47 = vld [vmem:[#allocation46_spill] sm:$0xff] }
  0xd2   : > { %6173 = vst [vmem:[#allocation49_spill] sm:$0xff] %v4298_v60  ;;  %v1450_v36 = vadd.f32 %v1442_v13, %v1422_v8  ;;  %v4313_v15 = vrot.slane %v858_v14, %v6177_v19  ;;  %v4316_v22 = vrot.slane %v858_v14, %v6172_v0  ;;  %v1692_v59 = vmul.f32 %v6160_v46, %v6180_v35  ;;  %v4337_v0 = vld [vmem:[#allocation2 + $0x66] sm:$0xff] }
  0xd3   : > { %v1748_v32 = vmul.f32 %v6181_v42, %v4085_v40  ;;  %v4323_v17 = vrot.slane %v858_v14, %v3911_v37  ;;  %v4326_v57 = vrot.slane %v858_v14, %v6163_v10  ;;  %v1469_v24 = vmul.f32 %v4003_v23, %v4131_v25 }
  0xd4   : > { %6178 = vst [vmem:[#allocation32_spill] sm:$0xff] %v4313_v15  ;;  %6179 = vst [vmem:[#allocation35_spill] sm:$0xff] %v4316_v22  ;;  %v1470_v8 = vmul.f32 %v4003_v23, %v4304_v39  ;;  %v1776_v13 = vmul.f32 %v6183_v47, %v6169_v12  ;;  %v4335_v35 = vrot.slane %v858_v14, %v6174_v29  ;;  %v6185_v12 = vld [vmem:[#allocation34_spill] sm:$0xff] }
  0xd5   : > { %6182 = vst [vmem:[#allocation50_spill] sm:$0xff] %v4326_v57  ;;  %v1700_v40 = vadd.f32 %v1692_v59, %v1672_v51  ;;  %v1756_v37 = vadd.f32 %v1748_v32, %v1728_v6  ;;  %v1777_v10 = vmul.f32 %v6183_v47, %v6171_v31  ;;  %v4343_v19 = vmul.f32 %v4286_v43, %v6171_v31  ;;  %v6186_v51 = vld [vmem:[#allocation39_spill] sm:$0xff] }
  0xd6   : > { %6184 = vst [vmem:[#allocation54_spill] sm:$0xff] %v4335_v35  ;;  %v1477_v54 = vadd.f32 %v1469_v24, %v1449_v61  ;;  %v1302_v41 = vmul.f32 %v3964_v18, %v4304_v39  ;;  %v1478_v52 = vadd.f32 %v1470_v8, %v1450_v36  ;;  %v4349_v14 = vmul.f32 %v4286_v43, %v6185_v12  ;;  %v6189_v43 = vld [vmem:[#allocation47_spill] sm:$0xff] }
  0xd7   : > { %v1721_v59 = vmul.f32 %v6168_v33, %v4207_v20  ;;  %v4355_v6 = vmul.f32 %v6186_v51, %v6171_v31  ;;  %v4359_v32 = vmul.f32 %v6186_v51, %v6185_v12  ;;  %v4363_v61 = vmul.f32 %v6183_v47, %v6185_v12 }
  0xd8   : > { %v1497_v36 = vmul.f32 %v4025_v1, %v6167_v50  ;;  %v1498_v24 = vmul.f32 %v4025_v1, %v4337_v0  ;;  %v1310_v8 = vadd.f32 %v1302_v41, %v1282_v5  ;;  %v4371_v29 = vmul.f32 %v6170_v63, %v6185_v12  ;;  %v4382_v5 = vld [vmem:[#allocation2 + $0x68] sm:$0xff] }
  0xd9   : > { %6187 = vst [vmem:[#allocation34_spill] sm:$0xff] %v4363_v61  ;;  %v1729_v31 = vadd.f32 %v1721_v59, %v1700_v40  ;;  %v1749_v34 = vmul.f32 %v6181_v42, %v4213_v45  ;;  %v1784_v51 = vadd.f32 %v1776_v13, %v1756_v37  ;;  %v1804_v23 = vmul.f32 %v6189_v43, %v4131_v25  ;;  %v4386_v40 = vld [vmem:[#allocation2 + $0x76] sm:$0xff] }
  0xda   : > { %6188 = vst [vmem:[#allocation55_spill] sm:$0xff] %v4371_v29  ;;  %v1505_v4 = vadd.f32 %v1497_v36, %v1477_v54  ;;  %v1330_v18 = vmul.f32 %v3968_v26, %v4337_v0  ;;  %v1506_v61 = vadd.f32 %v1498_v24, %v1478_v52  ;;  %v4380_v1 = vmul.f32 0.0, %v4323_v17  ;;  %v4408_v29 = vld [vmem:[#allocation2 + $0x90] sm:$0xff] }
  0xdb   : > { %v1387_v41 = vmul.f32 %v3981_v58, %v4199_v28  ;;  %v1757_v12 = vadd.f32 %v1749_v34, %v1729_v31  ;;  %v1812_v37 = vadd.f32 %v1804_v23, %v1784_v51  ;;  %v1832_v25 = vmul.f32 %v4272_v11, %v6167_v50 }
  0xdc   : > { %6190 = vst [vmem:[#allocation56_spill] sm:$0xff] %v4380_v1  ;;  %v4392_v54 = vmul.f32 %v3989_v56, %v4201_v27  ;;  %v1526_v52 = vmul.f32 %v4049_v38, %v4184_v7  ;;  %v1525_v13 = vmul.f32 %v4049_v38, %v4193_v3  ;;  %v1338_v59 = vadd.f32 %v1330_v18, %v1310_v8  ;;  %v6191_v1 = vld [vmem:[#allocation17_spill] sm:$0xff] }
  0xdd   : > { %v1785_v36 = vadd.f32 %v1777_v10, %v1757_v12  ;;  %v1805_v24 = vmul.f32 %v6189_v43, %v4304_v39  ;;  %v1840_v34 = vadd.f32 %v1832_v25, %v1812_v37  ;;  %v1861_v23 = vmul.f32 %v4283_v53, %v4193_v3  ;;  %v4422_v25 = vld [vmem:[#allocation2 + $0x80] sm:$0xff] }
  0xde   : > { %v1358_v50 = vmul.f32 %v3975_v44, %v4382_v5  ;;  %v1533_v51 = vadd.f32 %v1525_v13, %v1505_v4  ;;  %v1534_v31 = vadd.f32 %v1526_v52, %v1506_v61  ;;  %v4406_v56 = vmul.f32 %v6191_v1, %v4386_v40 }
  0xdf   : > { %v1813_v18 = vadd.f32 %v1805_v24, %v1785_v36  ;;  %v1833_v10 = vmul.f32 %v4272_v11, %v4337_v0  ;;  %v1869_v8 = vadd.f32 %v1861_v23, %v1840_v34  ;;  %v1889_v12 = vmul.f32 %v4298_v60, %v4207_v20  ;;  %v6194_v24 = vld [vmem:[#allocation21_spill] sm:$0xff] }
  0xe0   : > { %6192 = vst [vmem:[#allocation57_spill] sm:$0xff] %v4406_v56  ;;  %v1366_v3 = vadd.f32 %v1358_v50, %v1338_v59  ;;  %v4416_v37 = vmul.f32 %v6170_v63, %v4257_v48  ;;  %v1862_v4 = vmul.f32 %v4283_v53, %v4184_v7  ;;  %v1553_v61 = vmul.f32 %v4052_v30, %v4207_v20  ;;  %v6196_v20 = vld [vmem:[#allocation38_spill] sm:$0xff] }
  0xe1   : > { %v1841_v52 = vadd.f32 %v1833_v10, %v1813_v18  ;;  %v1897_v13 = vadd.f32 %v1889_v12, %v1869_v8  ;;  %v1917_v36 = vmul.f32 %v4302_v55, %v4213_v45  ;;  %v1554_v59 = vmul.f32 %v4052_v30, %v4199_v28 }
  0xe2   : > { %6193 = vst [vmem:[#allocation58_spill] sm:$0xff] %v4416_v37  ;;  %v4430_v34 = vmul.f32 %v6194_v24, %v4408_v29  ;;  %v1890_v7 = vmul.f32 %v4298_v60, %v4199_v28  ;;  %v1561_v23 = vadd.f32 %v1553_v61, %v1533_v51  ;;  %v1581_v50 = vmul.f32 %v6196_v20, %v4213_v45  ;;  %v4436_v37 = vld [vmem:[#allocation2 + $0xa2] sm:$0xff]  ;;  %v4446_v51 = vld [vmem:[#allocation2 + $0x75] sm:$0xff] }
  0xe3   : > { %v1870_v18 = vadd.f32 %v1862_v4, %v1841_v52  ;;  %v1925_v10 = vadd.f32 %v1917_v36, %v1897_v13  ;;  %v1562_v8 = vadd.f32 %v1554_v59, %v1534_v31  ;;  %v1582_v12 = vmul.f32 %v6196_v20, %v4201_v27 }
  0xe4   : > { %6195 = vst [vmem:[#allocation21_spill] sm:$0xff] %v4430_v34  ;;  %v1395_v56 = vadd.f32 %v1387_v41, %v1366_v3  ;;  %v4442_v1 = vmul.f32 %v6194_v24, %v4422_v25  ;;  %v1918_v34 = vmul.f32 %v4302_v55, %v4201_v27  ;;  %v1589_v61 = vadd.f32 %v1581_v50, %v1561_v23 }
  0xe5   : > { %v1898_v45 = vadd.f32 %v1890_v7, %v1870_v18  ;;  %v1953_v48 = vadd.f32 %v4343_v19, %v1925_v10  ;;  %v1973_v31 = vmul.f32 %v4307_v9, %v4304_v39  ;;  %v1590_v4 = vadd.f32 %v1582_v12, %v1562_v8  ;;  %v4463_v7 = vld [vmem:[#allocation2 + $0x78] sm:$0xff] }
  0xe6   : > { %6197 = vst [vmem:[#allocation59_spill] sm:$0xff] %v4442_v1  ;;  %v4453_v41 = vmul.f32 %v3981_v58, %v4436_v37  ;;  %v2001_v3 = vmul.f32 %v4310_v62, %v4337_v0  ;;  %v1617_v52 = vadd.f32 %v4355_v6, %v1589_v61  ;;  %v1637_v13 = vmul.f32 %v4077_v21, %v4304_v39  ;;  %v4471_v39 = vld [vmem:[#allocation2 + $0x82] sm:$0xff] }
  0xe7   : > { %v1926_v36 = vadd.f32 %v1918_v34, %v1898_v45  ;;  %v1981_v59 = vadd.f32 %v1973_v31, %v1953_v48  ;;  %v1618_v19 = vadd.f32 %v4359_v32, %v1590_v4  ;;  %v1638_v24 = vmul.f32 %v4446_v51, %v4077_v21 }
  0xe8   : > { %6198 = vst [vmem:[#allocation60_spill] sm:$0xff] %v4453_v41  ;;  %v1974_v23 = vmul.f32 %v4307_v9, %v4446_v51  ;;  %v2029_v50 = vmul.f32 %v4313_v15, %v4382_v5  ;;  %v1645_v18 = vadd.f32 %v1637_v13, %v1617_v52  ;;  %v1665_v6 = vmul.f32 %v4080_v2, %v4337_v0 }
  0xe9   : > { %v1954_v48 = vadd.f32 %v4349_v14, %v1926_v36  ;;  %v2009_v32 = vadd.f32 %v2001_v3, %v1981_v59  ;;  %v1646_v34 = vadd.f32 %v1638_v24, %v1618_v19  ;;  %v1666_v10 = vmul.f32 %v4080_v2, %v4386_v40  ;;  %v4490_v59 = vld [vmem:[#allocation2 + $0x83] sm:$0xff]  ;;  %v4492_v19 = vld [vmem:[#allocation2 + $0x92] sm:$0xff] }
  0xea   : > { %v2002_v8 = vmul.f32 %v4310_v62, %v4386_v40  ;;  %v2058_v12 = vmul.f32 %v4323_v17, %v4422_v25  ;;  %v1673_v61 = vadd.f32 %v1665_v6, %v1645_v18  ;;  %v1693_v45 = vmul.f32 %v6160_v46, %v4382_v5 }
  0xeb   : > { %v1982_v0 = vadd.f32 %v1974_v23, %v1954_v48  ;;  %v2037_v31 = vadd.f32 %v2029_v50, %v2009_v32  ;;  %v1674_v4 = vadd.f32 %v1666_v10, %v1646_v34  ;;  %v1694_v14 = vmul.f32 %v6160_v46, %v4463_v7  ;;  %v4502_v10 = vld [vmem:[#allocation2 + $0x86] sm:$0xff] }
  0xec   : > { %v2030_v3 = vmul.f32 %v4313_v15, %v4463_v7  ;;  %v2086_v52 = vmul.f32 %v4326_v57, %v4471_v39  ;;  %v1701_v13 = vadd.f32 %v1693_v45, %v1673_v61  ;;  %v1722_v36 = vmul.f32 %v6168_v33, %v4199_v28 }
  0xed   : > { %v2010_v5 = vadd.f32 %v2002_v8, %v1982_v0  ;;  %v2066_v24 = vadd.f32 %v2058_v12, %v2037_v31  ;;  %v1702_v23 = vadd.f32 %v1694_v14, %v1674_v4  ;;  %v1723_v50 = vmul.f32 %v6168_v33, %v4471_v39  ;;  %v4504_v8 = vld [vmem:[#allocation2 + $0x96] sm:$0xff]  ;;  %v4512_v0 = vld [vmem:[%s5979_s2 + $0x28] ss:$0 sm:$0xff] }
  0xee   : > { %v2059_v18 = vmul.f32 %v4323_v17, %v4408_v29  ;;  %v2114_v6 = vmul.f32 %v4316_v22, %v4243_v16  ;;  %v1730_v48 = vadd.f32 %v1722_v36, %v1701_v13  ;;  %v1750_v28 = vmul.f32 %v6181_v42, %v4201_v27  ;;  %6199 = vst [vmem:[#allocation61_spill] sm:$0xff] %v4512_v0  ;;  %v4514_v31 = vld [vmem:[#allocation2 + $0x85] sm:$0xff]  ;;  %v4522_v36 = vld [vmem:[#allocation2 + $0x98] sm:$0xff] }
  0xef   : > { %v2038_v32 = vadd.f32 %v2030_v3, %v2010_v5  ;;  %v2094_v34 = vadd.f32 %v2086_v52, %v2066_v24  ;;  %v1731_v12 = vadd.f32 %v1723_v50, %v1702_v23  ;;  %v1751_v61 = vmul.f32 %v6181_v42, %v4490_v59  ;;  %v4520_v14 = vld [vmem:[#allocation2 + $0x88] sm:$0xff]  ;;  %v6200_v23 = vld [vmem:[#allocation34_spill] sm:$0xff] }
  0xf0   : > { %v1423_v45 = vadd.f32 %v4392_v54, %v1395_v56  ;;  %v2087_v27 = vmul.f32 %v4326_v57, %v4492_v19  ;;  %v2115_v4 = vmul.f32 %v4316_v22, %v4234_v49  ;;  %v1758_v3 = vadd.f32 %v1750_v28, %v1730_v48 }
  0xf1   : > { %v2067_v52 = vadd.f32 %v2059_v18, %v2038_v32  ;;  %v2122_v13 = vadd.f32 %v2114_v6, %v2094_v34  ;;  %v1759_v56 = vadd.f32 %v1751_v61, %v1731_v12  ;;  %v1779_v54 = vmul.f32 %v6183_v47, %v4243_v16 }
  0xf2   : > { %v2142_v5 = vmul.f32 %v4335_v35, %v4502_v10  ;;  %v2143_v24 = vmul.f32 %v4335_v35, %v4504_v8  ;;  %v1786_v50 = vadd.f32 %v6200_v23, %v1758_v3  ;;  %v1806_v41 = vmul.f32 %v4446_v51, %v6189_v43 }
  0xf3   : > { %v2095_v48 = vadd.f32 %v2087_v27, %v2067_v52  ;;  %v2170_v18 = vmul.f32 %v4512_v0, %v4520_v14  ;;  %v1787_v6 = vadd.f32 %v1779_v54, %v1759_v56  ;;  %v1807_v28 = vmul.f32 %v6189_v43, %v4514_v31 }
  0xf4   : > { %v2171_v32 = vmul.f32 %v4512_v0, %v4522_v36  ;;  %v1814_v34 = vadd.f32 %v1806_v41, %v1786_v50  ;;  %v1834_v12 = vmul.f32 %v4272_v11, %v4386_v40  ;;  %v1835_v61 = vmul.f32 %v4502_v10, %v4272_v11  ;;  %v6201_v41 = vld [vmem:[#allocation27_spill] sm:$0xff] }
  0xf5   : > { %v2123_v3 = vadd.f32 %v2115_v4, %v2095_v48  ;;  %v2150_v23 = vadd.f32 %v2142_v5, %v2122_v13  ;;  %v1815_v27 = vadd.f32 %v1807_v28, %v1787_v6  ;;  %v1863_v52 = vmul.f32 %v4283_v53, %v4422_v25  ;;  %v4553_v13 = vld [vmem:[#allocation2 + $0x93] sm:$0xff]  ;;  %v6202_v6 = vld [vmem:[#allocation8_spill] sm:$0xff] }
  0xf6   : > { %v1842_v56 = vadd.f32 %v1834_v12, %v1814_v34  ;;  %v1864_v54 = vmul.f32 %v4283_v53, %v4408_v29  ;;  %v1891_v1 = vmul.f32 %v4298_v60, %v4471_v39  ;;  %v1303_v50 = vmul.f32 %v4446_v51, %v6201_v41  ;;  %v6203_v12 = vld [vmem:[#allocation55_spill] sm:$0xff] }
  0xf7   : > { %v2151_v43 = vadd.f32 %v2143_v24, %v2123_v3  ;;  %v1843_v47 = vadd.f32 %v1835_v61, %v1815_v27  ;;  %v1892_v4 = vmul.f32 %v4298_v60, %v4492_v19  ;;  %v1919_v5 = vmul.f32 %v4302_v55, %v4490_v59  ;;  %v6204_v61 = vld [vmem:[#allocation31_spill] sm:$0xff] }
  0xf8   : > { %v1871_v48 = vadd.f32 %v1863_v52, %v1842_v56  ;;  %v1311_v28 = vadd.f32 %v1303_v50, %v6202_v6  ;;  %v1331_v34 = vmul.f32 %v3968_v26, %v4386_v40  ;;  %v1451_v53 = vadd.f32 %v6203_v12, %v1423_v45  ;;  %v6205_v26 = vld [vmem:[#allocation33_spill] sm:$0xff] }
  0xf9   : > { %v2178_v11 = vadd.f32 %v2170_v18, %v2150_v23  ;;  %v2179_v41 = vadd.f32 %v2171_v32, %v2151_v43  ;;  %v1872_v24 = vadd.f32 %v1864_v54, %v1843_v47  ;;  %v1471_v3 = vmul.f32 %v4446_v51, %v6204_v61  ;;  %v4569_v18 = vld [vmem:[#allocation2 + $0x95] sm:$0xff]  ;;  %v6206_v47 = vld [vmem:[#allocation53_spill] sm:$0xff] }
  0xfa   : > { %v1899_v27 = vadd.f32 %v1891_v1, %v1871_v48  ;;  %v1920_v60 = vmul.f32 %v4302_v55, %v4553_v13  ;;  %v1339_v42 = vadd.f32 %v1331_v34, %v1311_v28  ;;  %v1359_v52 = vmul.f32 %v3975_v44, %v4463_v7 }
  0xfb   : > { %v2186_v56 = vpack.c.bf16 %v2179_v41, %v2178_v11  ;;  %v1900_v50 = vadd.f32 %v1892_v4, %v1872_v24  ;;  %v1479_v6 = vadd.f32 %v1471_v3, %v1451_v53  ;;  %v1499_v45 = vmul.f32 %v6205_v26, %v4386_v40 }
  0xfc   : > { %v1927_v43 = vadd.f32 %v1919_v5, %v1899_v27  ;;  %v1947_v51 = vmul.f32 %v6206_v47, %v4243_v16  ;;  %v1367_v1 = vadd.f32 %v1359_v52, %v1339_v42  ;;  %v1388_v32 = vmul.f32 %v3981_v58, %v4471_v39  ;;  %v6207_v5 = vld [vmem:[#allocation29_spill] sm:$0xff]  ;;  %v4591_v27 = vld [vmem:[#allocation2 + $0xa0] sm:$0xff] }
  0xfd   : > { %3547 = vmatprep.mubr.bf16.mxu0 %v2186_v56  ;;  %v1928_v23 = vadd.f32 %v1920_v60, %v1900_v50  ;;  %v1948_v11 = vmul.f32 %v6206_v47, %v4234_v49  ;;  %v1507_v54 = vadd.f32 %v1499_v45, %v1479_v6  ;;  %v1527_v53 = vmul.f32 %v4049_v38, %v4422_v25  ;;  %v4597_v45 = vld [vmem:[#allocation2 + $0xb0] sm:$0xff] }
  0xfe   : > { %v1955_v40 = vadd.f32 %v1947_v51, %v1927_v43  ;;  %v1975_v41 = vmul.f32 %v4307_v9, %v4514_v31  ;;  %v1396_v4 = vadd.f32 %v1388_v32, %v1367_v1  ;;  %v1416_v42 = vmul.f32 %v4490_v59, %v6207_v5 }
  0xff   : > { %v1956_v48 = vadd.f32 %v1948_v11, %v1928_v23  ;;  %v1976_v28 = vmul.f32 %v4307_v9, %v4569_v18  ;;  %v1535_v60 = vadd.f32 %v1527_v53, %v1507_v54  ;;  %v1555_v34 = vmul.f32 %v4052_v30, %v4471_v39  ;;  %v6208_v53 = vld [vmem:[#allocation39_spill] sm:$0xff] }
 0x100   : > { %v1983_v12 = vadd.f32 %v1975_v41, %v1955_v40  ;;  %v2003_v25 = vmul.f32 %v4502_v10, %v4310_v62  ;;  %v1424_v24 = vadd.f32 %v1416_v42, %v1396_v4  ;;  %v1444_v3 = vmul.f32 %v6170_v63, %v4243_v16  ;;  %v4607_v41 = vld [vmem:[#allocation2 + $0xb2] sm:$0xff] }
 0x101   : > { %v1984_v52 = vadd.f32 %v1976_v28, %v1956_v48  ;;  %v2004_v56 = vmul.f32 %v4504_v8, %v4310_v62  ;;  %v1563_v50 = vadd.f32 %v1555_v34, %v1535_v60  ;;  %v1583_v6 = vmul.f32 %v4490_v59, %v6196_v20 }
 0x102   : > { %v2011_v43 = vadd.f32 %v2003_v25, %v1983_v12  ;;  %v2031_v51 = vmul.f32 %v4520_v14, %v4313_v15  ;;  %v1452_v1 = vadd.f32 %v1444_v3, %v1424_v24  ;;  %v1472_v32 = vmul.f32 %v6204_v61, %v4514_v31 }
 0x103   : > { %v2012_v23 = vadd.f32 %v2004_v56, %v1984_v52  ;;  %v2032_v11 = vmul.f32 %v4522_v36, %v4313_v15  ;;  %v1591_v54 = vadd.f32 %v1583_v6, %v1563_v50  ;;  %v1611_v40 = vmul.f32 %v6208_v53, %v4243_v16  ;;  %v4621_v56 = vld [vmem:[#allocation2 + $0xa6] sm:$0xff] }
 0x104   : > { %v2039_v4 = vadd.f32 %v2031_v51, %v2011_v43  ;;  %v2060_v42 = vmul.f32 %v4323_v17, %v4591_v27  ;;  %v1480_v48 = vadd.f32 %v1472_v32, %v1452_v1  ;;  %v1500_v28 = vmul.f32 %v4502_v10, %v6205_v26  ;;  %v4627_v51 = vld [vmem:[#allocation2 + $0xb6] sm:$0xff] }
 0x105   : > { %v2040_v60 = vadd.f32 %v2032_v11, %v2012_v23  ;;  %v2061_v34 = vmul.f32 %v4323_v17, %v4597_v45  ;;  %v1619_v12 = vadd.f32 %v1611_v40, %v1591_v54  ;;  %v1639_v25 = vmul.f32 %v4077_v21, %v4514_v31  ;;  %v6209_v32 = vld [vmem:[#allocation51_spill] sm:$0xff]  ;;  %v4633_v54 = vld [vmem:[#allocation2 + $0xa8] sm:$0xff] }
 0x106   : > { %v2068_v24 = vadd.f32 %v2060_v42, %v2039_v4  ;;  %v2088_v16 = vmul.f32 %v4326_v57, %v4436_v37  ;;  %v1508_v3 = vadd.f32 %v1500_v28, %v1480_v48  ;;  %v1528_v52 = vmul.f32 %v4049_v38, %v4408_v29  ;;  %v6210_v4 = vld [vmem:[#allocation52_spill] sm:$0xff] }
 0x107   : > { %v2069_v50 = vadd.f32 %v2061_v34, %v2040_v60  ;;  %v2089_v6 = vmul.f32 %v4326_v57, %v4607_v41  ;;  %v1647_v43 = vadd.f32 %v1639_v25, %v1619_v12  ;;  %v1667_v17 = vmul.f32 %v4502_v10, %v4080_v2  ;;  %v4639_v60 = vld [vmem:[#allocation2 + $0xb8] sm:$0xff] }
 0x108   : > { %v2096_v1 = vadd.f32 %v2088_v16, %v2068_v24  ;;  %v2116_v23 = vmul.f32 %v4316_v22, %v6209_v32  ;;  %v1536_v11 = vadd.f32 %v1528_v52, %v1508_v3  ;;  %v1556_v29 = vmul.f32 %v4052_v30, %v4492_v19  ;;  %v4645_v16 = vld [vmem:[#allocation2 + $0xa3] sm:$0xff] }
 0x109   : > { %v2097_v40 = vadd.f32 %v2089_v6, %v2069_v50  ;;  %v2117_v42 = vmul.f32 %v4316_v22, %v6210_v4  ;;  %v1675_v48 = vadd.f32 %v1667_v17, %v1647_v43  ;;  %v1695_v28 = vmul.f32 %v4520_v14, %v6160_v46  ;;  %v4651_v43 = vld [vmem:[#allocation2 + $0xa5] sm:$0xff] }
 0x10a   : > { %v2124_v34 = vadd.f32 %v2116_v23, %v2096_v1  ;;  %v2144_v12 = vmul.f32 %v4335_v35, %v4621_v56  ;;  %v1564_v25 = vadd.f32 %v1556_v29, %v1536_v11  ;;  %v1584_v24 = vmul.f32 %v4553_v13, %v6196_v20  ;;  %v6211_v20 = vld [vmem:[#allocation45_spill] sm:$0xff] }
 0x10b   : > { %v2125_v3 = vadd.f32 %v2117_v42, %v2097_v40  ;;  %v2145_v52 = vmul.f32 %v4335_v35, %v4627_v51  ;;  %v1703_v50 = vadd.f32 %v1695_v28, %v1675_v48  ;;  %v1724_v6 = vmul.f32 %v6168_v33, %v4492_v19  ;;  %v1039_v28 = vld [vmem:[#allocation2 + $0x60] sm:$0xff] }
 0x10c   : > { %v2152_v17 = vadd.f32 %v2144_v12, %v2124_v34  ;;  %v2172_v1 = vmul.f32 %v4512_v0, %v4633_v54  ;;  %v1592_v23 = vadd.f32 %v1584_v24, %v1564_v25  ;;  %v1612_v11 = vmul.f32 %v6208_v53, %v4234_v49  ;;  %v1040_v24 = vld [vmem:[#allocation2 + $0x70] sm:$0xff]  ;;  %v1067_v53 = vld [vmem:[#allocation2 + $0x62] sm:$0xff] }
 0x10d   : > { %v2153_v29 = vadd.f32 %v2145_v52, %v2125_v3  ;;  %v2173_v40 = vmul.f32 %v4512_v0, %v4639_v60  ;;  %v1732_v42 = vadd.f32 %v1724_v6, %v1703_v50  ;;  %v1752_v48 = vmul.f32 %v4553_v13, %v6211_v20  ;;  %v6214_v6 = vld [vmem:[#allocation46_spill] sm:$0xff] }
 0x10e   : > { %v4663_v30 = vmul.f32 %v6207_v5, %v4645_v16  ;;  %v2180_v34 = vadd.f32 %v2172_v1, %v2152_v17  ;;  %v1620_v12 = vadd.f32 %v1612_v11, %v1592_v23  ;;  %v1640_v25 = vmul.f32 %v4077_v21, %v4569_v18  ;;  %v1068_v0 = vld [vmem:[#allocation2 + $0x72] sm:$0xff]  ;;  %v6216_v11 = vld [vmem:[#allocation12_spill] sm:$0xff] }
 0x10f   : > { %v4669_v3 = vmul.f32 %v6204_v61, %v4651_v43  ;;  %v2181_v52 = vadd.f32 %v2173_v40, %v2153_v29  ;;  %v1760_v50 = vadd.f32 %v1752_v48, %v1732_v42  ;;  %v1780_v38 = vmul.f32 %v6214_v6, %v4234_v49  ;;  %v6215_v1 = vld [vmem:[#allocation47_spill] sm:$0xff]  ;;  %v6217_v29 = vld [vmem:[#allocation13_spill] sm:$0xff] }
 0x110   : > { %6212 = vst [vmem:[#allocation34_spill] sm:$0xff] %v4663_v30  ;;  %v1648_v63 = vadd.f32 %v1640_v25, %v1620_v12  ;;  %v1668_v17 = vmul.f32 %v4504_v8, %v4080_v2  ;;  %v1808_v23 = vmul.f32 %v6215_v1, %v4569_v18  ;;  %v1051_v21 = vmul.f32 %v6216_v11, %v1039_v28  ;;  %v1095_v30 = vld [vmem:[#allocation2 + $0x64] sm:$0xff]  ;;  %v1096_v42 = vld [vmem:[#allocation2 + $0x74] sm:$0xff] }
 0x111   : > { %6213 = vst [vmem:[#allocation8_spill] sm:$0xff] %v4669_v3  ;;  %v2187_v5 = vpack.c.bf16 %v2181_v52, %v2180_v34  ;;  %v1788_v35 = vadd.f32 %v1780_v38, %v1760_v50  ;;  %v1052_v3 = vmul.f32 %v6216_v11, %v1040_v24  ;;  %v1079_v40 = vmul.f32 %v6217_v29, %v1067_v53  ;;  %v1123_v2 = vld [vmem:[#allocation2 + $0x66] sm:$0xff]  ;;  %v6220_v52 = vld [vmem:[#allocation15_spill] sm:$0xff] }
 0x112   : > { %v4682_v49 = vmul.f32 %v6205_v26, %v4621_v56  ;;  %v1676_v48 = vadd.f32 %v1668_v17, %v1648_v63  ;;  %v1696_v12 = vmul.f32 %v4522_v36, %v6160_v46  ;;  %v1080_v25 = vmul.f32 %v6217_v29, %v1068_v0  ;;  %v6219_v34 = vld [vmem:[#allocation40_spill] sm:$0xff]  ;;  %v1151_v17 = vld [vmem:[#allocation2 + $0x68] sm:$0xff] }
 0x113   : > { %3548 = vmatmul.mubr.bf16.vlgmr.msra.gmra.mrb[0].mxu0 %v2187_v5  ;;  %v1816_v28 = vadd.f32 %v1808_v23, %v1788_v35  ;;  %v1836_v38 = vmul.f32 %v4504_v8, %v6219_v34  ;;  %v1087_v24 = vadd.f32 %v1079_v40, %v1051_v21  ;;  %v1107_v53 = vmul.f32 %v6220_v52, %v1095_v30  ;;  %v6221_v0 = vld [vmem:[#allocation48_spill] sm:$0xff]  ;;  %v6222_v35 = vld [vmem:[#allocation17_spill] sm:$0xff] }
 0x114   : > { %6218 = vst [vmem:[#allocation55_spill] sm:$0xff] %v4682_v49  ;;  %v1725_v50 = vmul.f32 %v6168_v33, %v4436_v37  ;;  %v1704_v11 = vadd.f32 %v1696_v12, %v1676_v48  ;;  %v1088_v49 = vadd.f32 %v1080_v25, %v1052_v3  ;;  %v1108_v63 = vmul.f32 %v6220_v52, %v1096_v42  ;;  %v6223_v3 = vld [vmem:[#allocation49_spill] sm:$0xff]  ;;  %v6224_v25 = vld [vmem:[#allocation19_spill] sm:$0xff] }
 0x115   : > { %v1844_v46 = vadd.f32 %v1836_v38, %v1816_v28  ;;  %v1865_v29 = vmul.f32 %v6221_v0, %v4591_v27  ;;  %v1115_v5 = vadd.f32 %v1107_v53, %v1087_v24  ;;  %v1135_v23 = vmul.f32 %v6222_v35, %v1123_v2  ;;  %v6225_v2 = vld [vmem:[#allocation57_spill] sm:$0xff] }
 0x116   : > { %v1753_v21 = vmul.f32 %v6211_v20, %v4645_v16  ;;  %v1733_v40 = vadd.f32 %v1725_v50, %v1704_v11  ;;  %v1781_v30 = vmul.f32 %v6214_v6, %v6209_v32  ;;  %v1116_v33 = vadd.f32 %v1108_v63, %v1088_v49  ;;  %v4708_v50 = vld [vmem:[#allocation2 + $0xb3] sm:$0xff] }
 0x117   : > { %v1873_v48 = vadd.f32 %v1865_v29, %v1844_v46  ;;  %v1893_v42 = vmul.f32 %v6223_v3, %v4436_v37  ;;  %v1143_v12 = vadd.f32 %v1135_v23, %v1115_v5  ;;  %v1163_v28 = vmul.f32 %v6224_v25, %v1151_v17  ;;  %v6226_v23 = vld [vmem:[#allocation59_spill] sm:$0xff] }
 0x118   : > { %v1761_v38 = vadd.f32 %v1753_v21, %v1733_v40  ;;  %v1809_v24 = vmul.f32 %v6215_v1, %v4651_v43  ;;  %v1144_v52 = vadd.f32 %v6225_v2, %v1116_v33  ;;  %v1164_v53 = vmul.f32 %v6224_v25, %v4463_v7  ;;  %v6227_v40 = vld [vmem:[#allocation23_spill] sm:$0xff] }
 0x119   : > { %v1837_v46 = vmul.f32 %v6219_v34, %v4621_v56  ;;  %v1901_v49 = vadd.f32 %v1893_v42, %v1873_v48  ;;  %v1921_v11 = vmul.f32 %v4302_v55, %v4645_v16  ;;  %v1171_v63 = vadd.f32 %v1163_v28, %v1143_v12  ;;  %v6228_v12 = vld [vmem:[#allocation21_spill] sm:$0xff]  ;;  %v4728_v2 = vld [vmem:[#allocation2 + $0xb5] sm:$0xff] }
 0x11a   : > { %v1789_v17 = vadd.f32 %v1781_v30, %v1761_v38  ;;  %v1866_v29 = vmul.f32 %v6221_v0, %v4597_v45  ;;  %v1894_v33 = vmul.f32 %v6223_v3, %v4607_v41  ;;  %v1172_v5 = vadd.f32 %v1164_v53, %v1144_v52  ;;  %v1264_v38 = vld [vmem:[#allocation2 + $0x84] sm:$0xff] }
 0x11b   : > { %v1929_v35 = vadd.f32 %v1921_v11, %v1901_v49  ;;  %v1949_v7 = vmul.f32 %v6206_v47, %v6209_v32  ;;  %v1200_v21 = vadd.f32 %v6226_v23, %v1171_v63  ;;  %v1220_v48 = vmul.f32 %v6227_v40, %v4471_v39  ;;  %v6229_v11 = vld [vmem:[#allocation25_spill] sm:$0xff] }
 0x11c   : > { %v1817_v42 = vadd.f32 %v1809_v24, %v1789_v17  ;;  %v1922_v30 = vmul.f32 %v4302_v55, %v4708_v50  ;;  %v1201_v25 = vadd.f32 %v6228_v12, %v1172_v5  ;;  %v1221_v28 = vmul.f32 %v6227_v40, %v4492_v19  ;;  %v1265_v24 = vld [vmem:[#allocation2 + $0x94] sm:$0xff] }
 0x11d   : > { %v1957_v52 = vadd.f32 %v1949_v7, %v1929_v35  ;;  %v1977_v53 = vmul.f32 %v4307_v9, %v4651_v43  ;;  %v1228_v49 = vadd.f32 %v1220_v48, %v1200_v21  ;;  %v1248_v39 = vmul.f32 %v4490_v59, %v6229_v11  ;;  %v6230_v40 = vld [vmem:[#allocation26_spill] sm:$0xff] }
 0x11e   : > { %v1845_v63 = vadd.f32 %v1837_v46, %v1817_v42  ;;  %v1950_v17 = vmul.f32 %v6206_v47, %v6210_v4  ;;  %v1229_v5 = vadd.f32 %v1221_v28, %v1201_v25  ;;  %v1249_v19 = vmul.f32 %v4553_v13, %v6229_v11 }
 0x11f   : > { %v1985_v23 = vadd.f32 %v1977_v53, %v1957_v52  ;;  %v2005_v35 = vmul.f32 %v4310_v62, %v4621_v56  ;;  %v1256_v7 = vadd.f32 %v1248_v39, %v1228_v49  ;;  %v1276_v12 = vmul.f32 %v6230_v40, %v1264_v38  ;;  %v6231_v52 = vld [vmem:[#allocation27_spill] sm:$0xff]  ;;  %v4750_v38 = vld [vmem:[#allocation2 + $0xc2] sm:$0xff] }
 0x120   : > { %v1874_v21 = vadd.f32 %v1866_v29, %v1845_v63  ;;  %v1978_v59 = vmul.f32 %v4307_v9, %v4728_v2  ;;  %v1257_v48 = vadd.f32 %v1249_v19, %v1229_v5  ;;  %v1277_v46 = vmul.f32 %v6230_v40, %v1265_v24 }
 0x121   : > { %v2013_v42 = vadd.f32 %v2005_v35, %v1985_v23  ;;  %v2033_v25 = vmul.f32 %v4313_v15, %v4633_v54  ;;  %v1284_v28 = vadd.f32 %v1276_v12, %v1256_v7  ;;  %v1304_v53 = vmul.f32 %v6231_v52, %v4514_v31  ;;  %v6232_v23 = vld [vmem:[#allocation28_spill] sm:$0xff] }
 0x122   : > { %v1902_v11 = vadd.f32 %v1894_v33, %v1874_v21  ;;  %v2006_v49 = vmul.f32 %v4310_v62, %v4627_v51  ;;  %v1285_v29 = vadd.f32 %v1277_v46, %v1257_v48  ;;  %v1305_v39 = vmul.f32 %v6231_v52, %v4569_v18  ;;  %v4760_v33 = vld [vmem:[#allocation2 + $0xd2] sm:$0xff]  ;;  %v6233_v18 = vld [vmem:[#allocation56_spill] sm:$0xff] }
 0x123   : > { %v2041_v63 = vadd.f32 %v2033_v25, %v2013_v42  ;;  %v2090_v5 = vmul.f32 %v4326_v57, %v4750_v38  ;;  %v1312_v19 = vadd.f32 %v1304_v53, %v1284_v28  ;;  %v1332_v35 = vmul.f32 %v4502_v10, %v6232_v23  ;;  %v1377_v21 = vld [vmem:[#allocation2 + $0x92] sm:$0xff]  ;;  %v4767_v42 = vld [vmem:[#allocation2 + $0xc4] sm:$0xff] }
 0x124   : > { %v1930_v7 = vadd.f32 %v1922_v30, %v1902_v11  ;;  %v2034_v31 = vmul.f32 %v4313_v15, %v4639_v60  ;;  %v1313_v40 = vadd.f32 %v1305_v39, %v1285_v29  ;;  %v1333_v12 = vmul.f32 %v4504_v8, %v6232_v23  ;;  %v4771_v28 = vld [vmem:[#allocation2 + $0xd4] sm:$0xff] }
 0x125   : > { %v2070_v48 = vadd.f32 %v6233_v18, %v2041_v63  ;;  %v2091_v46 = vmul.f32 %v4326_v57, %v4760_v33  ;;  %v1340_v25 = vadd.f32 %v1332_v35, %v1312_v19  ;;  %v1360_v10 = vmul.f32 %v4520_v14, %v3975_v44  ;;  %v1461_v29 = vld [vmem:[#allocation2 + $0x95] sm:$0xff]  ;;  %v4779_v19 = vld [vmem:[#allocation2 + $0xc6] sm:$0xff] }
 0x126   : > { %v1958_v30 = vadd.f32 %v1950_v17, %v1930_v7  ;;  %v2118_v52 = vmul.f32 %v4316_v22, %v4767_v42  ;;  %v1341_v53 = vadd.f32 %v1333_v12, %v1313_v40  ;;  %v1361_v11 = vmul.f32 %v4522_v36, %v3975_v44  ;;  %v4781_v14 = vld [vmem:[#allocation2 + $0xd6] sm:$0xff]  ;;  %v6236_v12 = vld [vmem:[#allocation29_spill] sm:$0xff] }
 0x127   : > { %v2098_v39 = vadd.f32 %v2090_v5, %v2070_v48  ;;  %v2119_v63 = vmul.f32 %v4316_v22, %v4771_v28  ;;  %6234 = vst [vmem:[#allocation31_spill] sm:$0xff] %v4781_v14  ;;  %v1368_v17 = vadd.f32 %v1360_v10, %v1340_v25  ;;  %v1389_v23 = vmul.f32 %v3981_v58, %v1377_v21  ;;  %v6235_v7 = vld [vmem:[#allocation54_spill] sm:$0xff]  ;;  %v4794_v10 = vld [vmem:[%s3788_s14] sm:$0xff] }
 0x128   : > { %v1986_v35 = vadd.f32 %v1978_v59, %v1958_v30  ;;  %v2146_v40 = vmul.f32 %v6235_v7, %v4779_v19  ;;  %v2147_v44 = vmul.f32 %v6235_v7, %v4781_v14  ;;  %v1369_v36 = vadd.f32 %v1361_v11, %v1341_v53  ;;  %v6237_v22 = vld [vmem:[#allocation30_spill] sm:$0xff]  ;;  %v6238_v59 = vld [vmem:[#allocation60_spill] sm:$0xff]  ;;  %6239 = vst [vmem:[#allocation33_spill] sm:$0xff] %v4794_v10  ;;  %v4799_v7 = vld [vmem:[%s3788_s14 + $0x8] sm:$0xff] }
 0x129   : > { %v1397_v5 = vadd.f32 %v1389_v23, %v1368_v17  ;;  %v1417_v48 = vmul.f32 %v4553_v13, %v6236_v12  ;;  %v1445_v57 = vmul.f32 %v6237_v22, %v1265_v24  ;;  %v1473_v25 = vmul.f32 %v6204_v61, %v1461_v29  ;;  %6240 = vst [vmem:[#allocation53_spill] sm:$0xff] %v4799_v7  ;;  %v4804_v22 = vld [vmem:[%s3788_s14 + $0x10] sm:$0xff]  ;;  %v4809_v24 = vld [vmem:[%s3788_s14 + $0x18] sm:$0xff] }
 0x12a   : > { %v2014_v58 = vadd.f32 %v2006_v49, %v1986_v35  ;;  %v1398_v21 = vadd.f32 %v6238_v59, %v1369_v36  ;;  %v442_v30 = vsel %vm441_vm0, %v4794_v10, inf  ;;  %v443_v53 = vsel %vm441_vm0, %v4799_v7, inf  ;;  %6241 = vst [vmem:[#allocation51_spill] sm:$0xff] %v4804_v22  ;;  %6242 = vst [vmem:[#allocation52_spill] sm:$0xff] %v4809_v24  ;;  %v6243_v17 = vld [vmem:[#allocation34_spill] sm:$0xff]  ;;  %v4815_v35 = vld [vmem:[%s3788_s14 + $0x20] sm:$0xff] }
 0x12b   : > { %v2126_v13 = vadd.f32 %v2118_v52, %v2098_v39  ;;  %v1425_v11 = vadd.f32 %v1417_v48, %v1397_v5  ;;  %v444_v61 = vsel %vm441_vm0, %v4804_v22, inf  ;;  %v445_v49 = vsel %vm441_vm0, %v4809_v24, inf  ;;  %6244 = vst [vmem:[#allocation45_spill] sm:$0xff] %v4815_v35  ;;  %v3617_v39 = vld [vmem:[%s3788_s14 + $0x28] sm:$0xff]  ;;  %v6245_v24 = vld [vmem:[#allocation58_spill] sm:$0xff] }
 0x12c   : > { %v2042_v29 = vadd.f32 %v2034_v31, %v2014_v58  ;;  %v1426_v23 = vadd.f32 %v6243_v17, %v1398_v21  ;;  %v446_v52 = vsel %vm441_vm0, %v4815_v35, inf  ;;  %v448_v36 = vsel %vm441_vm0, %v3617_v39, inf  ;;  %v3618_v58 = vld [vmem:[%s3788_s14 + $0x30] sm:$0xff]  ;;  %v3619_v17 = vld [vmem:[%s3788_s14 + $0x38] sm:$0xff] }
 0x12d   : > { %v1453_v5 = vadd.f32 %v1445_v57, %v1425_v11  ;;  %v1501_v12 = vmul.f32 %v4504_v8, %v6205_v26  ;;  %v447_v48 = vmin.f32 %v442_v30, %v446_v52  ;;  %v449_v59 = vmin.f32 %v443_v53, %v448_v36  ;;  %v4829_v14 = vld [vmem:[#allocation2 + $0x30] sm:$0xff]  ;;  %v6246_v26 = vld [vmem:[#allocation61_spill] sm:$0xff]  ;;  %v6247_v30 = vld [vmem:[#allocation8_spill] sm:$0xff] }
 0x12e   : > { %v2071_v10 = vadd.f32 %v6233_v18, %v2042_v29  ;;  %v1454_v31 = vadd.f32 %v6245_v24, %v1426_v23  ;;  %v450_v21 = vsel %vm441_vm0, %v3618_v58, inf  ;;  %v452_v22 = vsel %vm441_vm0, %v3619_v17, inf  ;;  %v6248_v24 = vld [vmem:[#allocation36_spill] sm:$0xff]  ;;  %v6253_v17 = vld [vmem:[#allocation41_spill] sm:$0xff]  ;;  %2463 = vst.msk [vmem:[#allocation3 + $0x48] sm:$0xf] %vm2454_vm3, %v4829_v14 }
 0x12f   : > { %v1481_v35 = vadd.f32 %v1473_v25, %v1453_v5  ;;  %v451_v7 = vmin.f32 %v444_v61, %v450_v21  ;;  %v453_v15 = vmin.f32 %v445_v49, %v452_v22  ;;  %v454_v39 = vmin.f32 %v447_v48, %v449_v59  ;;  %v6249_v61 = vld [vmem:[#allocation55_spill] sm:$0xff]  ;;  %2455 = vst.msk [vmem:[#allocation3 + $0x8] sm:$0xf] %vm2454_vm3, %v4829_v14 }
 0x130   : > { %v2099_v57 = vadd.f32 %v2091_v46, %v2071_v10  ;;  %v2154_v11 = vadd.f32 %v2146_v40, %v2126_v13  ;;  %v4833_v8 = vmul.f32 %v4829_v14, %v6246_v26  ;;  %v1482_v53 = vadd.f32 %v6247_v30, %v1454_v31  ;;  %v6250_v40 = vld [vmem:[#allocation37_spill] sm:$0xff]  ;;  %v6254_v26 = vld [vmem:[#allocation42_spill] sm:$0xff]  ;;  %2457 = vst.msk [vmem:[#allocation3 + $0x18] sm:$0xf] %vm2454_vm3, %v4829_v14 }
 0x131   : > { %v1529_v29 = vmul.f32 %v6248_v24, %v4591_v27  ;;  %v1509_v23 = vadd.f32 %v1501_v12, %v1481_v35  ;;  %v455_v52 = vmin.f32 %v451_v7, %v453_v15  ;;  %v1530_v25 = vmul.f32 %v6248_v24, %v4597_v45  ;;  %v6251_v15 = vld [vmem:[#allocation38_spill] sm:$0xff]  ;;  %v6252_v12 = vld [vmem:[#allocation39_spill] sm:$0xff]  ;;  %2459 = vst.msk [vmem:[#allocation3 + $0x28] sm:$0xf] %vm2454_vm3, %v4829_v14 }
 0x132   : > { %v2127_v22 = vadd.f32 %v2119_v63, %v2099_v57  ;;  %v1510_v46 = vadd.f32 %v6249_v61, %v1482_v53  ;;  %v1557_v10 = vmul.f32 %v6250_v40, %v4436_v37  ;;  %v1558_v36 = vmul.f32 %v6250_v40, %v4607_v41  ;;  %2461 = vst.msk [vmem:[#allocation3 + $0x38] sm:$0xf] %vm2454_vm3, %v4829_v14 }
 0x133   : > { %v1537_v13 = vadd.f32 %v1529_v29, %v1509_v23  ;;  %v456_v49 = vmin.f32 %v454_v39, %v455_v52  ;;  %v2182_v48 = vadd.f32 %v4833_v8, %v2154_v11  ;;  %v1585_v7 = vmul.f32 %v6251_v15, %v4645_v16  ;;  %v6255_v29 = vld [vmem:[#allocation43_spill] sm:$0xff]  ;;  %2465 = vst.msk [vmem:[#allocation3 + $0x58] sm:$0xf] %vm2454_vm3, %v4829_v14 }
 0x134   : > { %v2155_v5 = vadd.f32 %v2147_v44, %v2127_v22  ;;  %v1538_v27 = vadd.f32 %v1530_v25, %v1510_v46  ;;  %v1586_v45 = vmul.f32 %v6251_v15, %v4708_v50  ;;  %v1613_v59 = vmul.f32 %v6252_v12, %v6209_v32  ;;  %v1743_v25 = vld [vmem:[#allocation2 + $0xc3] sm:$0xff]  ;;  %v1826_v15 = vld [vmem:[#allocation2 + $0xb6] sm:$0xff]  ;;  %2467 = vst.msk [vmem:[#allocation3 + $0x68] sm:$0xf] %vm2454_vm3, %v4829_v14 }
 0x135   : > { %v1565_v35 = vadd.f32 %v1557_v10, %v1537_v13  ;;  %457 = vmin.xlane.f32.xlu0 %v456_v49  ;;  %v1614_v44 = vmul.f32 %v6252_v12, %v6210_v4  ;;  %v1641_v16 = vmul.f32 %v6253_v17, %v4651_v43  ;;  %v1642_v57 = vmul.f32 %v6253_v17, %v4728_v2  ;;  %v6256_v2 = vld [vmem:[#allocation44_spill] sm:$0xff] }
 0x136   : > { %v2183_v63 = vadd.f32 %v4833_v8, %v2155_v5  ;;  %v1566_v37 = vadd.f32 %v1558_v36, %v1538_v27  ;;  %v1669_v30 = vmul.f32 %v6254_v26, %v4621_v56  ;;  %v1670_v32 = vmul.f32 %v6254_v26, %v4627_v51  ;;  %v1799_v13 = vld [vmem:[#allocation2 + $0xc5] sm:$0xff]  ;;  %v1798_v36 = vld [vmem:[#allocation2 + $0xb5] sm:$0xff]  ;;  %2469 = vst.msk [vmem:[#allocation3 + $0x78] sm:$0xf] %vm2454_vm3, %v4829_v14 }
 0x137   : > { %v1593_v31 = vadd.f32 %v1585_v7, %v1565_v35  ;;  %v1697_v23 = vmul.f32 %v6255_v29, %v4633_v54  ;;  %v1698_v43 = vmul.f32 %v6255_v29, %v4639_v60  ;;  %v1727_v61 = vmul.f32 %v4750_v38, %v6256_v2  ;;  %2471 = vst.msk [vmem:[#allocation3 + $0x88] sm:$0xf] %vm2454_vm3, %v4829_v14 }
 0x138   : > { %v2188_v58 = vpack.c.bf16 %v2183_v63, %v2182_v48  ;;  %v1594_v21 = vadd.f32 %v1586_v45, %v1566_v37  ;;  %v1726_v56 = vmul.f32 %v6256_v2, %v4607_v41  ;;  %v1755_v51 = vmul.f32 %v6211_v20, %v1743_v25  ;;  %2473 = vst.msk [vmem:[#allocation3 + $0x98] sm:$0xf] %vm2454_vm3, %v4829_v14 }
 0x139   : > { %v1621_v39 = vadd.f32 %v1613_v59, %v1593_v31  ;;  %v1754_v10 = vmul.f32 %v6211_v20, %v4708_v50  ;;  %v1783_v60 = vmul.f32 %v4767_v42, %v6214_v6  ;;  %v1782_v48 = vmul.f32 %v6214_v6, %v6210_v4  ;;  %v1912_v6 = vld [vmem:[#allocation2 + $0xd3] sm:$0xff]  ;;  %2475 = vst.msk [vmem:[#allocation3 + $0xa8] sm:$0xf] %vm2454_vm3, %v4829_v14 }
 0x13a   : > { %3551 = vmatprep.mubr.bf16.mxu0 %v2188_v58  ;;  %v1622_v11 = vadd.f32 %v1614_v44, %v1594_v21  ;;  %v1811_v41 = vmul.f32 %v6215_v1, %v1799_v13  ;;  %v1810_v35 = vmul.f32 %v6215_v1, %v1798_v36  ;;  %v1839_v20 = vmul.f32 %v4779_v19, %v6219_v34 }
 0x13b   : > { %v1649_v53 = vadd.f32 %v1641_v16, %v1621_v39  ;;  %v1838_v63 = vmul.f32 %v6219_v34, %v1826_v15  ;;  %v1867_v37 = vmul.f32 %v4829_v14, %v6221_v0  ;;  %v1895_v4 = vmul.f32 %v4750_v38, %v6223_v3  ;;  %v1968_v16 = vld [vmem:[#allocation2 + $0xd5] sm:$0xff]  ;;  %2477 = vst.msk [vmem:[#allocation3 + $0xb8] sm:$0xf] %vm2454_vm3, %v4829_v14 }
 0x13c   : > { %v1650_v24 = vadd.f32 %v1642_v57, %v1622_v11  ;;  %v1896_v1 = vmul.f32 %v4760_v33, %v6223_v3  ;;  %v1923_v58 = vmul.f32 %v4302_v55, %v1743_v25  ;;  %v1924_v17 = vmul.f32 %v4302_v55, %v1912_v6  ;;  %v3604_v6 = vld [vmem:[%s5984_s7] sm:$0xff]   ;;  %472 = vst.msk [vmem:[#allocation4 + $0x28] sm:$0x3] %vm467_vm4, %v4829_v14 }
 0x13d   : > { %v1677_v52 = vadd.f32 %v1669_v30, %v1649_v53  ;;  %v1951_v0 = vmul.f32 %v4767_v42, %v6206_v47  ;;  %v1952_v38 = vmul.f32 %v4771_v28, %v6206_v47  ;;  %v1979_v11 = vmul.f32 %v4307_v9, %v1799_v13  ;;  %v6257_v53 = vld [vmem:[#allocation31_spill] sm:$0xff]  ;;  %v2080_v47 = vld [vmem:[#allocation2 + $0xe2] sm:$0xff]  ;;  %3555 = vmatprep.subr.bf16.mxu1 %v3604_v6 }
 0x13e   : > { %v1678_v22 = vadd.f32 %v1670_v32, %v1650_v24  ;;  %v1980_v3 = vmul.f32 %v4307_v9, %v1968_v16  ;;  %v2007_v30 = vmul.f32 %v4779_v19, %v4310_v62  ;;  %v2008_v32 = vmul.f32 %v6257_v53, %v4310_v62  ;;  %v6258_v24 = vld [vmem:[#allocation32_spill] sm:$0xff]  ;;  %v6259_v9 = vld [vmem:[#allocation50_spill] sm:$0xff]  ;;  %3556 = vmatpush3.bf16.msra.mxu1 %v3604_v6 }
 0x13f   : > { %v1705_v46 = vadd.f32 %v1697_v23, %v1677_v52  ;;  %v2035_v29 = vmul.f32 %v4829_v14, %v6258_v24  ;;  %v2081_v52 = vld [vmem:[#allocation2 + $0xf2] sm:$0xff]  ;;  %v2092_v2 = vmul.f32 %v6259_v9, %v2080_v47  ;;  %v2571_v53 = vld [vmem:[#allocation3 + $0x3] sm:$0xff]  ;;  %474 = vst.msk [vmem:[#allocation4 + $0x38] sm:$0x3] %vm467_vm4, %v4829_v14  ;;  %476 = vst.msk [vmem:[#allocation4 + $0x48] sm:$0x3] %vm467_vm4, %v4829_v14 }
 0x140   : > { %v1706_v40 = vadd.f32 %v1698_v43, %v1678_v22  ;;  %v2108_v43 = vld [vmem:[#allocation2 + $0xe4] sm:$0xff]  ;;  %v2093_v19 = vmul.f32 %v6259_v9, %v2081_v52  ;;  %v4979_v9 = vld [vmem:[%s5982_s5] ss:$0 sm:$0xff]  ;;  %468 = vst.msk [vmem:[#allocation4 + $0x8] sm:$0x3] %vm467_vm4, %v4829_v14 }
 0x141   : > { %v1734_v54 = vadd.f32 %v1726_v56, %v1705_v46  ;;  %v2136_v46 = vld [vmem:[#allocation2 + $0xe6] sm:$0xff]  ;;  %470 = vst.msk [vmem:[#allocation4 + $0x18] sm:$0x3] %vm467_vm4, %v4829_v14  ;;  %478 = vst.msk [vmem:[#allocation4 + $0x58] sm:$0x3] %vm467_vm4, %v4829_v14 }
 0x142   : > { %v1735_v49 = vadd.f32 %v1727_v61, %v1706_v40  ;;  %v2109_v61 = vld [vmem:[#allocation2 + $0xf4] sm:$0xff]  ;;  %v6267_v47 = vld [vmem:[#allocation20_spill] sm:$0xff]  ;;  %480 = vst.msk [vmem:[#allocation4 + $0x68] sm:$0x3] %vm467_vm4, %v4829_v14  ;;  %482 = vst.msk [vmem:[#allocation4 + $0x78] sm:$0x3] %vm467_vm4, %v4829_v14 }
 0x143   : > { %v1762_v5 = vadd.f32 %v1754_v10, %v1734_v54  ;;  %v6260_v40 = vld [vmem:[#allocation35_spill] sm:$0xff]  ;;  %484 = vst.msk [vmem:[#allocation4 + $0x88] sm:$0x3] %vm467_vm4, %v4829_v14  ;;  %486 = vst.msk [vmem:[#allocation4 + $0x98] sm:$0x3] %vm467_vm4, %v4829_v14  ;;  %v6272_v14 = vld [vmem:[#allocation52_spill] sm:$0xff] }
 0x144   : > { %v1763_v27 = vadd.f32 %v1755_v51, %v1735_v49  ;;  %v2120_v51 = vmul.f32 %v6260_v40, %v2108_v43  ;;  %v2137_v10 = vld [vmem:[#allocation2 + $0xf6] sm:$0xff]  ;;  %v2121_v13 = vmul.f32 %v6260_v40, %v2109_v61  ;;  %v4974_v43 = vld [vmem:[%s5981_s4] ss:$0 sm:$0xff] }
 0x145   : > { %v1790_v7 = vadd.f32 %v1782_v48, %v1762_v5  ;;  %v2516_v61 = vld [vmem:[#allocation3 + $0x11] sm:$0xff] }
 0x146   : > { %v1791_v45 = vadd.f32 %v1783_v60, %v1763_v27  ;;  %v6261_v60 = vld [vmem:[#allocation54_spill] sm:$0xff] }
 0x147   : > { %v1818_v50 = vadd.f32 %v1810_v35, %v1790_v7  ;;  %v2148_v36 = vmul.f32 %v6261_v60, %v2136_v46  ;;  %v2149_v48 = vmul.f32 %v6261_v60, %v2137_v10  ;;  %v4984_v10 = vstv %s3492_s25 }
 0x148   : > { %v1819_v12 = vadd.f32 %v1811_v41, %v1791_v45 }
 0x149   : > { %v1846_v59 = vadd.f32 %v1838_v63, %v1818_v50 }
 0x14a   : > { %v1847_v31 = vadd.f32 %v1839_v20, %v1819_v12 }
 0x14b   : > { %v1875_v44 = vadd.f32 %v1867_v37, %v1846_v59 }
 0x14c   : > { %v1876_v21 = vadd.f32 %v1867_v37, %v1847_v31  ;;  %v6262_v31 = vld [vmem:[#allocation10_spill] sm:$0xff] }
 0x14d   : > { %v1903_v34 = vadd.f32 %v1895_v4, %v1875_v44  ;;  %v4928_v4 = vld [vmem:[%s5983_s6] sm:$0xff]  ;;  %v6263_v44 = vld [vmem:[#allocation11_spill] sm:$0xff] }
 0x14e   : > { %v1904_v39 = vadd.f32 %v1896_v1, %v1876_v21  ;;  %v4935_v1 = vrot.slane %v4928_v4, %v6262_v31  ;;  %v3605_v21 = vld [vmem:[%s5984_s7 + $0x8] sm:$0xff]  }
 0x14f   : > { %v1931_v57 = vadd.f32 %v1923_v58, %v1903_v34  ;;  %v4939_v58 = vrot.slane %v4928_v4, %v6263_v44  ;;  %v2515_v34 = vld [vmem:[#allocation3 + $0x1] sm:$0xff]  ;;  %3557 = vmatprep.subr.bf16.mxu1 %v3605_v21 }
 0x150   : > { %v1932_v26 = vadd.f32 %v1924_v17, %v1904_v39  ;;  %v2487_v17 = vld [vmem:[#allocation3] sm:$0xff]  ;;  %3558 = vmatpush3.bf16.msra.mxu1 %v3605_v21 }
 0x151   : > { %v1959_v33 = vadd.f32 %v1951_v0, %v1931_v57  ;;  %v6264_v0 = vld [vmem:[#allocation14_spill] sm:$0xff]  ;;  %v2499_v39 = vmul.f32 %v4935_v1, %v2487_v17  ;;  %v2543_v57 = vld [vmem:[#allocation3 + $0x2] sm:$0xff] }
 0x152   : > { %v1960_v55 = vadd.f32 %v1952_v38, %v1932_v26  ;;  %v4946_v16 = vrot.slane %v4928_v4, %v6264_v0  ;;  %v2527_v38 = vmul.f32 %v4939_v58, %v2515_v34  ;;  %v3607_v26 = vld [vmem:[%s5984_s7 + $0x18] sm:$0xff]   ;;  %v6269_v17 = vld [vmem:[#allocation24_spill] sm:$0xff] }
 0x153   : > { %v1987_v42 = vadd.f32 %v1979_v11, %v1959_v33  ;;  %v3606_v11 = vld [vmem:[%s5984_s7 + $0x10] sm:$0xff]   ;;  %v5015_v34 = vrot.slane %v4928_v4, %v6269_v17 }
 0x154   : > { %v1988_v23 = vadd.f32 %v1980_v3, %v1960_v55  ;;  %3559 = vmatprep.subr.bf16.mxu1 %v3606_v11  ;;  %v6265_v3 = vld [vmem:[#allocation16_spill] sm:$0xff]  ;;  %v2555_v55 = vmul.f32 %v4946_v16, %v2543_v57 }
 0x155   : > { %v2015_v28 = vadd.f32 %v2007_v30, %v1987_v42  ;;  %v4958_v33 = vrot.slane %v4928_v4, %v6265_v3  ;;  %v2535_v30 = vadd.f32 %v2527_v38, %v2499_v39  ;;  %3560 = vmatpush3.bf16.msra.mxu1 %v3606_v11  ;;  %v2572_v38 = vld [vmem:[#allocation3 + $0x13] sm:$0xff] }
 0x156   : > { %v2016_v25 = vadd.f32 %v2008_v32, %v1988_v23  ;;  %3561 = vmatprep.subr.bf16.mxu1 %v3607_v26  ;;  %v6266_v32 = vld [vmem:[#allocation18_spill] sm:$0xff]  ;;  %v2599_v23 = vld [vmem:[#allocation3 + $0x4] sm:$0xff] }
 0x157   : > { %v2043_v22 = vadd.f32 %v2035_v29, %v2015_v28  ;;  %v4963_v42 = vrot.slane %v4928_v4, %v6266_v32  ;;  %v2563_v24 = vadd.f32 %v2555_v55, %v2535_v30  ;;  %v4968_v28 = vrot.slane %v4928_v4, %v6267_v47 }
 0x158   : > { %v2044_v56 = vadd.f32 %v2035_v29, %v2016_v25  ;;  %v2583_v29 = vmul.f32 %v4958_v33, %v2571_v53  ;;  %v2600_v53 = vld [vmem:[#allocation3 + $0x14] sm:$0xff] }
 0x159   : > { %v2072_v62 = vadd.f32 %v6233_v18, %v2043_v22  ;;  %3562 = vmatpush3.bf16.msra.mxu1 %v3607_v26  ;;  %v2611_v25 = vmul.f32 %v4963_v42, %v2599_v23  ;;  %v2488_v22 = vld [vmem:[#allocation3 + $0x10] sm:$0xff]  ;;  %v2584_v26 = vmul.f32 %v4958_v33, %v2572_v38 }
 0x15a   : > { %v2073_v54 = vadd.f32 %v6233_v18, %v2044_v56  ;;  %v2591_v52 = vadd.f32 %v2583_v29, %v2563_v24 }
 0x15b   : > { %v2100_v49 = vadd.f32 %v2092_v2, %v2072_v62  ;;  %v2640_v62 = vmul.f32 %v4968_v28, %v2488_v22 }
 0x15c   : > { %v2101_v5 = vadd.f32 %v2093_v19, %v2073_v54  ;;  %v2619_v46 = vadd.f32 %v2611_v25, %v2591_v52  ;;  %v4986_v54 = vstv %s3493_s26  ;;  %v2612_v52 = vmul.f32 %v4963_v42, %v2600_v53 }
 0x15d   : > { %v2128_v27 = vadd.f32 %v2120_v51, %v2100_v49 }
 0x15e   : > { %v2129_v41 = vadd.f32 %v2121_v13, %v2101_v5  ;;  %v6268_v13 = vld [vmem:[#allocation22_spill] sm:$0xff] }
 0x15f   : > { %v2156_v15 = vadd.f32 %v2148_v36, %v2128_v27  ;;  %v4990_v49 = vrot.slane %v4928_v4, %v6268_v13  ;;  %v2528_v27 = vmul.f32 %v4939_v58, %v2516_v61 }
 0x160   : > { %v2157_v7 = vadd.f32 %v2149_v48, %v2129_v41  ;;  %v2500_v48 = vmul.f32 %v4935_v1, %v2488_v22 }
 0x161   : > { %v2184_v35 = vadd.f32 %v4833_v8, %v2156_v15 }
 0x162   : > { %v2185_v45 = vadd.f32 %v4833_v8, %v2157_v7  ;;  %v2544_v7 = vld [vmem:[#allocation3 + $0x12] sm:$0xff]  ;;  %v2536_v6 = vadd.f32 %v2528_v27, %v2500_v48 }
 0x163   : > { %v2556_v21 = vmul.f32 %v4946_v16, %v2544_v7  ;;  %v2696_v55 = vmul.f32 %v5015_v34, %v2544_v7 }
 0x164   : > { %v2189_v20 = vpack.c.bf16 %v2185_v45, %v2184_v35 }
 0x165   : > { %v2564_v4 = vadd.f32 %v2556_v21, %v2536_v6 }
 0x166   : > { %3552 = vmatmul.mubr.bf16.gmra.mrb[4].mxu0 %v2189_v20 }
 0x167   : > { %v2592_v23 = vadd.f32 %v2584_v26, %v2564_v4 }
 0x1c2   : > { %v458_v18 = vpop.xlane.xlu0 %457 }
 0x1c3   : > { %v459_v8 = vrot.slane %v458_v18, 4 }
 0x1c5   : > { %v460_v50 = vmin.f32 %v458_v18, %v459_v8  ;;  %v2648_v18 = vadd.f32 %v2640_v62, %v2619_v46 }
 0x1c7   : > { %v461_v63 = vrot.slane %v460_v50, 2 }
 0x1c9   : > { %v462_v37 = vmin.f32 %v460_v50, %v461_v63 }
 0x1cb   : > { %v463_v12 = vrot.slane %v462_v37, 1 }
 0x1cd   : > { %v464_v59 = vmin.f32 %v462_v37, %v463_v12  ;;  %v2668_v37 = vmul.f32 %v4990_v49, %v2516_v61 }
 0x1cf   : > { %3571 = vpush %v464_v59  ;;  %v5010_v59 = vld [vmem:[%s5983_s6 + $0x8] sm:$0xff]  ;;  %v2676_v30 = vadd.f32 %v2668_v37, %v2648_v18 }
 0x1d0   : > { %v5025_v11 = vrot.slane %v5010_v59, %v6262_v31  ;;  %v5036_v22 = vrot.slane %v5010_v59, %v6263_v44  ;;  %v5055_v7 = vrot.slane %v5010_v59, %v6266_v32  ;;  %v5074_v26 = vrot.slane %v5010_v59, %v6268_v13 }
 0x1d1   : > { %v2704_v25 = vadd.f32 %v2696_v55, %v2676_v30 }
 0x1d2   : > { %v2724_v29 = vmul.f32 %v5025_v11, %v2572_v38  ;;  %v2752_v62 = vmul.f32 %v5036_v22, %v2600_v53 }
 0x1d4   : > { %v2732_v46 = vadd.f32 %v2724_v29, %v2704_v25 }
 0x1d6   : > { %v2760_v27 = vadd.f32 %v2752_v62, %v2732_v46  ;;  %v5093_v46 = vrot.slane %v5010_v59, %v6269_v17 }
 0x1e6   : > { %v3549_v2 = vpop.f32.mrb[0].mxu0 }
 0x1e7   : > { %v2311_v56 = vmul.f32 %v3549_v2, %v4974_v43  ;;  %v2272_v19 = vpop.f32.mrb[1].mxu0 }
 0x1e8   : > { %v2309_v40 = vmul.f32 %v4974_v43, %v2272_v19  ;;  %v3550_v51 = vpop.f32.mrb[2].mxu0 }
 0x1e9   : > { %v2325_v60 = vadd.f32 %v4979_v9, %v2311_v56  ;;  %v2312_v36 = vmul.f32 %v3550_v51, %v4974_v43  ;;  %v2275_v5 = vpop.f32.mrb[3].mxu0  ;;  %v2620_v56 = vadd.f32 %v2612_v52, %v2592_v23  ;;  %v5084_v52 = vld [vmem:[%s5983_s6 + $0x10] sm:$0xff] }
 0x1ea   : > { %v2323_v41 = vadd.f32 %v4979_v9, %v2309_v40  ;;  %v2310_v15 = vmul.f32 %v4974_v43, %v2275_v5 }
 0x1eb   : > { %v2433_v35 = vmax.f32 %v2325_v60, 0.0  ;;  %v2326_v45 = vadd.f32 %v4979_v9, %v2312_v36  ;;  %v2335_v20 = vmul.f32 %v4984_v10, %v2325_v60  ;;  %v2385_v57 = vmul.f32 %v4986_v54, %v2325_v60 }
 0x1ec   : > { %v2431_v8 = vmax.f32 %v2323_v41, 0.0  ;;  %v5001_v50 = vadd.f32 %v4979_v9, %v2310_v15  ;;  %v2383_v63 = vmul.f32 %v4986_v54, %v2323_v41  ;;  %v2333_v24 = vmul.f32 %v4984_v10, %v2323_v41 }
 0x1ed   : > { %2481 = vst.msk [vmem:[#allocation3 + $0x42] sm:$0xff] %vm1006_vm1, %v2433_v35  ;;  %v2434_v12 = vmax.f32 %v2326_v45, 0.0  ;;  %2353 = vrot.lane.b32.xlu1 %v2335_v20, %s3659_s16  ;;  %v2336_v61 = vmul.f32 %v4984_v10, %v2326_v45  ;;  %v2386_v51 = vmul.f32 %v4986_v54, %v2326_v45  ;;  %v5045_v60 = vrot.slane %v5010_v59, %v6264_v0 }
 0x1ee   : > { %2479 = vst.msk [vmem:[#allocation3 + $0x22] sm:$0xff] %vm1006_vm1, %v2431_v8  ;;  %v2432_v39 = vmax.f32 %v5001_v50, 0.0  ;;  %2399 = vrot.lane.b32.xlu0 %v2383_v63, %s3658_s15  ;;  %v5051_v41 = vrot.slane %v5010_v59, %v6265_v3  ;;  %v2334_v35 = vmul.f32 %v4984_v10, %v5001_v50  ;;  %v2384_v4 = vmul.f32 %v4986_v54, %v5001_v50 }
 0x1ef   : > { %2482 = vst.msk [vmem:[#allocation3 + $0x52] sm:$0xff] %vm1006_vm1, %v2434_v12  ;;  %v5065_v12 = vrot.slane %v5010_v59, %v6267_v47 }
 0x1f0   : > { %2480 = vst.msk [vmem:[#allocation3 + $0x32] sm:$0xff] %vm1006_vm1, %v2432_v39 }
 0x1f1   : > { %2403 = vrot.lane.b32.xlu1 %v2385_v57, %s3658_s15 }
 0x1f5   : > { %2349 = vrot.lane.b32.xlu1 %v2333_v24, %s3659_s16  ;;  %v2489_v2 = vld [vmem:[#allocation3 + $0x20] sm:$0xff] }
 0x1f6   : > { %v2641_v19 = vmul.f32 %v4968_v28, %v2489_v2  ;;  %v2517_v40 = vld [vmem:[#allocation3 + $0x21] sm:$0xff]  ;;  %v2780_v18 = vmul.f32 %v5045_v60, %v2489_v2  ;;  %v2501_v8 = vmul.f32 %v4935_v1, %v2489_v2 }
 0x1f7   : > { %v2545_v36 = vld [vmem:[#allocation3 + $0x22] sm:$0xff]  ;;  %v2669_v48 = vmul.f32 %v4990_v49, %v2517_v40  ;;  %v2529_v63 = vmul.f32 %v4939_v58, %v2517_v40  ;;  %v2808_v38 = vmul.f32 %v5051_v41, %v2517_v40  ;;  %v2490_v57 = vld [vmem:[#allocation3 + $0x30] sm:$0xff] }
 0x1f8   : > { %v2649_v5 = vadd.f32 %v2641_v19, %v2620_v56  ;;  %v2573_v15 = vld [vmem:[#allocation3 + $0x23] sm:$0xff]  ;;  %v2697_v20 = vmul.f32 %v5015_v34, %v2545_v36  ;;  %v2788_v39 = vadd.f32 %v2780_v18, %v2760_v27  ;;  %v2836_v24 = vmul.f32 %v5055_v7, %v2545_v36  ;;  %v5078_v23 = vld [vmem:[#allocation3 + $0x31] sm:$0xff] }
 0x1f9   : > { %2355 = vrot.lane.b32.xlu1 %v2336_v61, %s3659_s16  ;;  %v2601_v37 = vld [vmem:[#allocation3 + $0x24] sm:$0xff]  ;;  %v2725_v21 = vmul.f32 %v5025_v11, %v2573_v15  ;;  %v2537_v29 = vadd.f32 %v2529_v63, %v2501_v8  ;;  %v2781_v25 = vmul.f32 %v5045_v60, %v2490_v57  ;;  %v2864_v61 = vmul.f32 %v5065_v12, %v2573_v15  ;;  %v5089_v19 = vld [vmem:[#allocation3 + $0x32] sm:$0xff] }
 0x1fa   : > { %v2677_v45 = vadd.f32 %v2669_v48, %v2649_v5  ;;  %v2753_v55 = vmul.f32 %v5036_v22, %v2601_v37  ;;  %v2816_v53 = vadd.f32 %v2808_v38, %v2788_v39  ;;  %v2557_v56 = vmul.f32 %v4946_v16, %v2545_v36  ;;  %v5098_v27 = vld [vmem:[#allocation3 + $0x33] sm:$0xff] }
 0x1fb   : > { %v2809_v40 = vmul.f32 %v5051_v41, %v5078_v23  ;;  %v2892_v5 = vmul.f32 %v5074_v26, %v2601_v37  ;;  %v2585_v18 = vmul.f32 %v4958_v33, %v2573_v15  ;;  %v5108_v8 = vld [vmem:[#allocation3 + $0x34] sm:$0xff]  ;;  %v5112_v63 = vrot.slane %v5084_v52, %v6263_v44 }
 0x1fc   : > { %v2705_v6 = vadd.f32 %v2697_v20, %v2677_v45  ;;  %v2844_v2 = vadd.f32 %v2836_v24, %v2816_v53  ;;  %v2565_v48 = vadd.f32 %v2557_v56, %v2537_v29  ;;  %v2837_v45 = vmul.f32 %v5055_v7, %v5089_v19 }
 0x1fd   : > { %2405 = vrot.lane.b32.xlu1 %v2386_v51, %s3658_s15  ;;  %v2921_v20 = vmul.f32 %v5093_v46, %v2490_v57  ;;  %v5122_v15 = vrot.slane %v5084_v52, %v6264_v0  ;;  %v2893_v53 = vmul.f32 %v5074_v26, %v5108_v8  ;;  %v2977_v29 = vmul.f32 %v5112_v63, %v5089_v19 }
 0x1fe   : > { %v2733_v30 = vadd.f32 %v2725_v21, %v2705_v6  ;;  %v2872_v51 = vadd.f32 %v2864_v61, %v2844_v2  ;;  %v2865_v21 = vmul.f32 %v5065_v12, %v5098_v27  ;;  %v5133_v2 = vrot.slane %v5084_v52, %v6265_v3 }
 0x1ff   : > { %v5137_v0 = vrot.slane %v5084_v52, %v6266_v32  ;;  %v2530_v3 = vmul.f32 %v4939_v58, %v5078_v23 }
 0x200   : > { %v2761_v50 = vadd.f32 %v2753_v55, %v2733_v30  ;;  %v2900_v59 = vadd.f32 %v2892_v5, %v2872_v51  ;;  %v2593_v30 = vadd.f32 %v2585_v18, %v2565_v48  ;;  %v5143_v51 = vld [vmem:[#allocation3 + $0x42] sm:$0xff]  ;;  %v5150_v5 = vrot.slane %v5084_v52, %v6267_v47  ;;  %s3572_s26 = spop %3571 }
 0x201   : > { %2351 = vrot.lane.b32.xlu1 %v2334_v35, %s3659_s16  ;;  %v5102_v35 = vrot.slane %v5084_v52, %v6262_v31  ;;  %v2642_v18 = vmul.f32 %v4968_v28, %v2490_v57 }
 0x202   : > { %v2789_v62 = vadd.f32 %v2781_v25, %v2761_v50  ;;  %v2929_v39 = vadd.f32 %v2921_v20, %v2900_v59  ;;  %v5128_v50 = vld [vmem:[#allocation3 + $0x41] sm:$0xff]  ;;  %v2613_v25 = vmul.f32 %v4963_v42, %v2601_v37  ;;  %v2502_v37 = vmul.f32 %v4935_v1, %v2490_v57 }
 0x203   : > { %v2949_v38 = vmul.f32 %v5102_v35, %v5078_v23  ;;  %v3033_v59 = vmul.f32 %v5133_v2, %v5108_v8  ;;  %v5156_v20 = vld [vmem:[#allocation3 + $0x43] sm:$0xff] }
 0x204   : > { %v2817_v36 = vadd.f32 %v2809_v40, %v2789_v62  ;;  %v3005_v40 = vmul.f32 %v5122_v15, %v5098_v27  ;;  %v2621_v32 = vadd.f32 %v2613_v25, %v2593_v30  ;;  %v2538_v30 = vadd.f32 %v2530_v3, %v2502_v37  ;;  %v5181_v3 = vld [vmem:[#allocation3 + $0x51] sm:$0xff] }
 0x205   : > { %2401 = vrot.lane.b32.xlu1 %v2384_v4, %s3658_s15  ;;  %v5118_v4 = vld [vmem:[#allocation3 + $0x40] sm:$0xff]  ;;  %v2957_v24 = vadd.f32 %v2949_v38, %v2929_v39  ;;  %v3006_v57 = vmul.f32 %v5122_v15, %v5156_v20  ;;  %v3090_v25 = vmul.f32 %v5150_v5, %v5128_v50 }
 0x206   : > { %v2845_v6 = vadd.f32 %v2837_v45, %v2817_v36  ;;  %v2922_v56 = vmul.f32 %v5093_v46, %v5118_v4  ;;  %v2950_v36 = vmul.f32 %v5102_v35, %v5128_v50  ;;  %v3062_v47 = vmul.f32 %v5137_v0, %v5118_v4  ;;  %v5163_v38 = vld [vmem:[#allocation3 + $0x44] sm:$0xff] }
 0x207   : > { %v2985_v62 = vadd.f32 %v2977_v29, %v2957_v24 }
 0x208   : > { %v2873_v55 = vadd.f32 %v2865_v21, %v2845_v6  ;;  %v2978_v21 = vmul.f32 %v5112_v63, %v5143_v51 }
 0x209   : > { %v3013_v45 = vadd.f32 %v3005_v40, %v2985_v62  ;;  %v2670_v62 = vmul.f32 %v4990_v49, %v5078_v23  ;;  %v5191_v23 = vld [vmem:[#allocation3 + $0x52] sm:$0xff] }
 0x20a   : > { %v2901_v61 = vadd.f32 %v2893_v53, %v2873_v55  ;;  %v5167_v55 = vrot.slane %v5084_v52, %v6268_v13  ;;  %v2650_v53 = vadd.f32 %v2642_v18, %v2621_v32  ;;  %v3034_v13 = vmul.f32 %v5133_v2, %v5163_v38 }
 0x20b   : > { %v3041_v39 = vadd.f32 %v3033_v59, %v3013_v45  ;;  %v5189_v18 = vrot.slane %v5084_v52, %v6269_v17 }
 0x20c   : > { %v2930_v48 = vadd.f32 %v2922_v56, %v2901_v61  ;;  %v5173_v61 = vld [vmem:[#allocation3 + $0x50] sm:$0xff]  ;;  %v2558_v56 = vmul.f32 %v4946_v16, %v5089_v19  ;;  %v3118_v59 = vmul.f32 %v5167_v55, %v5143_v51  ;;  %v3119_v17 = vmul.f32 %v5167_v55, %v5191_v23 }
 0x20d   : > { %v3070_v29 = vadd.f32 %v3062_v47, %v3041_v39  ;;  %v3063_v45 = vmul.f32 %v5137_v0, %v5173_v61  ;;  %v3091_v47 = vmul.f32 %v5150_v5, %v5181_v3  ;;  %v3146_v52 = vmul.f32 %v5189_v18, %v5156_v20 }
 0x20e   : > { %v2958_v6 = vadd.f32 %v2950_v36, %v2930_v48  ;;  %v2566_v32 = vadd.f32 %v2558_v56, %v2538_v30  ;;  %v2678_v48 = vadd.f32 %v2670_v62, %v2650_v53  ;;  %v5199_v53 = vld [vmem:[#allocation3 + $0x53] sm:$0xff]  ;;  %v2726_v62 = vmul.f32 %v5025_v11, %v5098_v27 }
 0x20f   : > { %v3098_v37 = vadd.f32 %v3090_v25, %v3070_v29  ;;  %v5205_v25 = vld [vmem:[#allocation3 + $0x54] sm:$0xff] }
 0x210   : > { %v2986_v24 = vadd.f32 %v2978_v21, %v2958_v6  ;;  %v2586_v6 = vmul.f32 %v4958_v33, %v5098_v27  ;;  %v2698_v21 = vmul.f32 %v5015_v34, %v5089_v19  ;;  %v2614_v19 = vmul.f32 %v4963_v42, %v5108_v8  ;;  %v5212_v56 = vld [vmem:[%s5983_s6 + $0x18] ss:$0 sm:$0xff] }
 0x211   : > { %v3126_v30 = vadd.f32 %v3118_v59, %v3098_v37  ;;  %v3175_v59 = vmul.f32 %v5212_v56, %v5205_v25  ;;  %v2754_v27 = vmul.f32 %v5036_v22, %v5108_v8 }
 0x212   : > { %v3014_v40 = vadd.f32 %v3006_v57, %v2986_v24  ;;  %v2594_v24 = vadd.f32 %v2586_v6, %v2566_v32  ;;  %v2706_v57 = vadd.f32 %v2698_v21, %v2678_v48  ;;  %v2643_v6 = vmul.f32 %v4968_v28, %v5118_v4 }
 0x213   : > { %v3154_v37 = vadd.f32 %v3146_v52, %v3126_v30 }
 0x214   : > { %v3042_v36 = vadd.f32 %v3034_v13, %v3014_v40  ;;  %v3147_v13 = vmul.f32 %v5189_v18, %v5199_v53  ;;  %v2622_v32 = vadd.f32 %v2614_v19, %v2594_v24  ;;  %v2734_v48 = vadd.f32 %v2726_v62, %v2706_v57  ;;  %v6271_v19 = vld [vmem:[#allocation51_spill] sm:$0xff] }
 0x215   : > { %v2671_v57 = vmul.f32 %v4990_v49, %v5128_v50 }
 0x216   : > { %v3071_v39 = vadd.f32 %v3063_v45, %v3042_v36  ;;  %v3174_v45 = vmul.f32 %v5212_v56, %v5163_v38  ;;  %v2762_v30 = vadd.f32 %v2754_v27, %v2734_v48  ;;  %v2699_v27 = vmul.f32 %v5015_v34, %v5143_v51 }
 0x218   : > { %v3099_v29 = vadd.f32 %v3091_v47, %v3071_v39  ;;  %v3182_v8 = vadd.f32 %v3174_v45, %v3154_v37  ;;  %v5236_v39 = vstv %s3572_s26  ;;  %v2651_v47 = vadd.f32 %v2643_v6, %v2622_v32  ;;  %s3505_s26 = sld [smem:[#allocation5 + $0x4]] }
 0x219   : > { %v490_v62 = vsub.f32 %v6271_v19, %v5236_v39  ;;  %v2531_v6 = vmul.f32 %v4939_v58, %v5128_v50  ;;  %v2866_v19 = vmul.f32 %v5065_v12, %v5156_v20 }
 0x21a   : > { %v3127_v40 = vadd.f32 %v3119_v17, %v3099_v29  ;;  %v2782_v29 = vmul.f32 %v5045_v60, %v5118_v4  ;;  %v6270_v17 = vld [vmem:[#allocation53_spill] sm:$0xff]  ;;  %v2679_v32 = vadd.f32 %v2671_v57, %v2651_v47  ;;  %v2559_v57 = vmul.f32 %v4946_v16, %v5143_v51 }
 0x21b   : > { %v489_v52 = vsub.f32 %v6270_v17, %v5236_v39  ;;  %499 = vst.msk [vmem:[#allocation4 + $0x31] sm:$0xff] %vm441_vm0, %v490_v62  ;;  %v2587_v62 = vmul.f32 %v4958_v33, %v5156_v20 }
 0x21c   : > { %v3155_v36 = vadd.f32 %v3147_v13, %v3127_v40  ;;  %v491_v40 = vsub.f32 %v6272_v14, %v5236_v39  ;;  %v6273_v13 = vld [vmem:[#allocation33_spill] sm:$0xff]  ;;  %v2790_v48 = vadd.f32 %v2782_v29, %v2762_v30 }
 0x21d   : > { %v488_v37 = vsub.f32 %v6273_v13, %v5236_v39  ;;  %498 = vst.msk [vmem:[#allocation4 + $0x21] sm:$0xff] %vm441_vm0, %v489_v52 }
 0x21e   : > { %v3183_v21 = vadd.f32 %v3175_v59, %v3155_v36  ;;  %v6274_v36 = vld [vmem:[#allocation45_spill] sm:$0xff]  ;;  %v2503_v59 = vmul.f32 %v4935_v1, %v5118_v4  ;;  %500 = vst.msk [vmem:[#allocation4 + $0x41] sm:$0xff] %vm441_vm0, %v491_v40  ;;  %v2727_v4 = vmul.f32 %v5025_v11, %v5156_v20  ;;  %v2811_v20 = vmul.f32 %v5051_v41, %v5181_v3 }
 0x21f   : > { %v492_v45 = vsub.f32 %v6274_v36, %v5236_v39  ;;  %497 = vst.msk [vmem:[#allocation4 + $0x11] sm:$0xff] %vm441_vm0, %v488_v37  ;;  %v2783_v37 = vmul.f32 %v5045_v60, %v5173_v61 }
 0x220   : > { %v3190_v24 = vpack.c.bf16 %v3183_v21, %v3182_v8  ;;  %v2810_v8 = vmul.f32 %v5051_v41, %v5128_v50  ;;  %v2707_v21 = vadd.f32 %v2699_v27, %v2679_v32  ;;  %v2539_v30 = vadd.f32 %v2531_v6, %v2503_v59 }
 0x221   : > { %501 = vst.msk [vmem:[#allocation4 + $0x51] sm:$0xff] %vm441_vm0, %v492_v45  ;;  %v2755_v50 = vmul.f32 %v5036_v22, %v5163_v38  ;;  %v2615_v32 = vmul.f32 %v4963_v42, %v5163_v38 }
 0x222   : > { %3563 = vmatprep.mubr.msk.bf16.mxu1 %vm1006_vm1, %v3190_v24  ;;  %v2818_v47 = vadd.f32 %v2810_v8, %v2790_v48  ;;  %v2838_v24 = vmul.f32 %v5055_v7, %v5143_v51  ;;  %v2735_v29 = vadd.f32 %v2727_v4, %v2707_v21  ;;  %v2567_v52 = vadd.f32 %v2559_v57, %v2539_v30 }
 0x223   : > { %v2894_v51 = vmul.f32 %v5074_v26, %v5163_v38  ;;  %v2923_v8 = vmul.f32 %v5093_v46, %v5173_v61  ;;  %v2504_v21 = vmul.f32 %v4935_v1, %v5173_v61  ;;  %v2644_v38 = vmul.f32 %v4968_v28, %v5173_v61 }
 0x224   : > { %v2846_v17 = vadd.f32 %v2838_v24, %v2818_v47  ;;  %v2763_v14 = vadd.f32 %v2755_v50, %v2735_v29  ;;  %v2595_v13 = vadd.f32 %v2587_v62, %v2567_v52  ;;  %v2532_v47 = vmul.f32 %v4939_v58, %v5181_v3 }
 0x225   : > { %v2839_v62 = vmul.f32 %v5055_v7, %v5191_v23 }
 0x226   : > { %v2874_v40 = vadd.f32 %v2866_v19, %v2846_v17  ;;  %v2791_v48 = vadd.f32 %v2783_v37, %v2763_v14  ;;  %v2623_v59 = vadd.f32 %v2615_v32, %v2595_v13  ;;  %v2951_v37 = vmul.f32 %v5102_v35, %v5181_v3 }
 0x228   : > { %v2902_v36 = vadd.f32 %v2894_v51, %v2874_v40  ;;  %v2819_v17 = vadd.f32 %v2811_v20, %v2791_v48  ;;  %v2652_v14 = vadd.f32 %v2644_v38, %v2623_v59  ;;  %v2540_v51 = vadd.f32 %v2532_v47, %v2504_v21 }
 0x229   : > { %v2979_v21 = vmul.f32 %v5112_v63, %v5191_v23  ;;  %v2700_v47 = vmul.f32 %v5015_v34, %v5191_v23 }
 0x22a   : > { %v2931_v52 = vadd.f32 %v2923_v8, %v2902_v36  ;;  %v2847_v59 = vadd.f32 %v2839_v62, %v2819_v17  ;;  %v2867_v8 = vmul.f32 %v5065_v12, %v5199_v53  ;;  %v2895_v17 = vmul.f32 %v5074_v26, %v5205_v25 }
 0x239   : > { %v3553_v45 = vpop.f32.mrb[4].mxu0 }
 0x23a   : > { %v2315_v6 = vmul.f32 %v3553_v45, %v4974_v43  ;;  %v2288_v27 = vpop.f32.mrb[5].mxu0 }
 0x23b   : > { %v2313_v30 = vmul.f32 %v4974_v43, %v2288_v27  ;;  %v3554_v4 = vpop.f32.mrb[6].mxu0 }
 0x23c   : > { %v2329_v24 = vadd.f32 %v4979_v9, %v2315_v6  ;;  %v2316_v57 = vmul.f32 %v3554_v4, %v4974_v43  ;;  %v2291_v29 = vpop.f32.mrb[7].mxu0  ;;  %v2959_v6 = vadd.f32 %v2951_v37, %v2931_v52  ;;  %v3007_v52 = vmul.f32 %v5122_v15, %v5199_v53 }
 0x23d   : > { %v2327_v50 = vadd.f32 %v4979_v9, %v2313_v30  ;;  %v2314_v19 = vmul.f32 %v4974_v43, %v2291_v29  ;;  %v2672_v43 = vmul.f32 %v4990_v49, %v5181_v3  ;;  %v2875_v30 = vadd.f32 %v2867_v8, %v2847_v59 }
 0x23e   : > { %v2437_v40 = vmax.f32 %v2329_v24, 0.0  ;;  %v2330_v61 = vadd.f32 %v4979_v9, %v2316_v57  ;;  %v2339_v13 = vmul.f32 %v4984_v10, %v2329_v24  ;;  %v2389_v3 = vmul.f32 %v4986_v54, %v2329_v24 }
 0x23f   : > { %v2435_v32 = vmax.f32 %v2327_v50, 0.0  ;;  %v5307_v48 = vadd.f32 %v4979_v9, %v2314_v19  ;;  %v2680_v20 = vadd.f32 %v2672_v43, %v2652_v14  ;;  %v2560_v9 = vmul.f32 %v4946_v16, %v5191_v23 }
 0x240   : > { %2485 = vst.msk [vmem:[#allocation3 + $0x82] sm:$0xff] %vm1006_vm1, %v2437_v40  ;;  %v2438_v36 = vmax.f32 %v2330_v61, 0.0  ;;  %v2390_v45 = vmul.f32 %v4986_v54, %v2330_v61  ;;  %2361 = vrot.lane.b32.xlu1 %v2339_v13, %s3659_s16  ;;  %v2987_v4 = vadd.f32 %v2979_v21, %v2959_v6  ;;  %v2588_v24 = vmul.f32 %v4958_v33, %v5199_v53 }
 0x241   : > { %2483 = vst.msk [vmem:[#allocation3 + $0x62] sm:$0xff] %vm1006_vm1, %v2435_v32  ;;  %v2436_v27 = vmax.f32 %v5307_v48, 0.0  ;;  %v2568_v38 = vadd.f32 %v2560_v9, %v2540_v51  ;;  %v2708_v57 = vadd.f32 %v2700_v47, %v2680_v20  ;;  %v2337_v29 = vmul.f32 %v4984_v10, %v2327_v50 }
 0x242   : > { %2486 = vst.msk [vmem:[#allocation3 + $0x92] sm:$0xff] %vm1006_vm1, %v2438_v36  ;;  %2413 = vrot.lane.b32.xlu0 %v2390_v45, %s3658_s15  ;;  %v2728_v23 = vmul.f32 %v5025_v11, %v5199_v53  ;;  %v2903_v14 = vadd.f32 %v2895_v17, %v2875_v30  ;;  %v3015_v40 = vadd.f32 %v3007_v52, %v2987_v4 }
 0x243   : > { %2484 = vst.msk [vmem:[#allocation3 + $0x72] sm:$0xff] %vm1006_vm1, %v2436_v27  ;;  %v2596_v19 = vadd.f32 %v2588_v24, %v2568_v38  ;;  %v2616_v51 = vmul.f32 %v4963_v42, %v5205_v25  ;;  %v2387_v32 = vmul.f32 %v4986_v54, %v2327_v50  ;;  %v3035_v36 = vmul.f32 %v5133_v2, %v5205_v25 }
 0x244   : > { %2411 = vrot.lane.b32.xlu1 %v2389_v3, %s3658_s15  ;;  %v2736_v37 = vadd.f32 %v2728_v23, %v2708_v57  ;;  %v2756_v53 = vmul.f32 %v5036_v22, %v5205_v25  ;;  %v2340_v47 = vmul.f32 %v4984_v10, %v2330_v61  ;;  %v2338_v61 = vmul.f32 %v4984_v10, %v5307_v48 }
 0x245   : > { %v3043_v50 = vadd.f32 %v3035_v36, %v3015_v40  ;;  %v2624_v9 = vadd.f32 %v2616_v51, %v2596_v19  ;;  %v2388_v23 = vmul.f32 %v4986_v54, %v5307_v48 }
 0x246   : > { %v2764_v38 = vadd.f32 %v2756_v53, %v2736_v37 }
 0x247   : > { %v5358_v25 = vld [vmem:[#allocation3 + $0x80] sm:$0xff] }
 0x248   : > { %v2493_v62 = vld [vmem:[#allocation3 + $0x60] sm:$0xff]  ;;  %2357 = vrot.lane.b32.xlu1 %v2337_v29, %s3659_s16 }
 0x249   : > { %v2521_v13 = vld [vmem:[#allocation3 + $0x61] sm:$0xff]  ;;  %v2924_v43 = vmul.f32 %v5093_v46, %v2493_v62  ;;  %v2505_v3 = vmul.f32 %v4935_v1, %v2493_v62  ;;  %v2645_v30 = vmul.f32 %v4968_v28, %v2493_v62  ;;  %v3064_v24 = vmul.f32 %v5137_v0, %v2493_v62 }
 0x24a   : > { %v5345_v45 = vld [vmem:[#allocation3 + $0x62] sm:$0xff]  ;;  %v5349_v59 = vld [vmem:[#allocation3 + $0x70] sm:$0xff]  ;;  %v2952_v20 = vmul.f32 %v5102_v35, %v2521_v13  ;;  %v2533_v8 = vmul.f32 %v4939_v58, %v2521_v13 }
 0x24b   : > { %v5351_v6 = vld [vmem:[#allocation3 + $0x71] sm:$0xff]  ;;  %v2932_v27 = vadd.f32 %v2924_v43, %v2903_v14  ;;  %v2577_v21 = vld [vmem:[#allocation3 + $0x63] sm:$0xff]  ;;  %v2980_v57 = vmul.f32 %v5112_v63, %v5345_v45  ;;  %v2506_v17 = vmul.f32 %v4935_v1, %v5349_v59  ;;  %v3072_v51 = vadd.f32 %v3064_v24, %v3043_v50 }
 0x24c   : > { %2407 = vrot.lane.b32.xlu1 %v2387_v32, %s3658_s15  ;;  %v5364_v29 = vld [vmem:[#allocation3 + $0x64] sm:$0xff]  ;;  %v2534_v52 = vmul.f32 %v4939_v58, %v5351_v6  ;;  %v5374_v19 = vld [vmem:[#allocation3 + $0x72] sm:$0xff]  ;;  %v3008_v37 = vmul.f32 %v5122_v15, %v2577_v21  ;;  %v3092_v1 = vmul.f32 %v5150_v5, %v2521_v13  ;;  %v5383_v58 = vmul.f32 %v4968_v28, %v5358_v25 }
 0x24d   : > { %v2960_v4 = vadd.f32 %v2952_v20, %v2932_v27  ;;  %v5376_v14 = vld [vmem:[#allocation3 + $0x73] sm:$0xff]  ;;  %v2541_v10 = vadd.f32 %v2533_v8, %v2505_v3  ;;  %v2561_v54 = vmul.f32 %v4946_v16, %v5345_v45  ;;  %v2589_v48 = vmul.f32 %v4958_v33, %v2577_v21 }
 0x24e   : > { %v3036_v43 = vmul.f32 %v5133_v2, %v5364_v29  ;;  %v3100_v36 = vadd.f32 %v3092_v1, %v3072_v51  ;;  %v2653_v53 = vadd.f32 %v2645_v30, %v2624_v9  ;;  %v2542_v27 = vadd.f32 %v2534_v52, %v2506_v17 }
 0x24f   : > { %v2988_v40 = vadd.f32 %v2980_v57, %v2960_v4  ;;  %v2562_v20 = vmul.f32 %v4946_v16, %v5374_v19  ;;  %v2590_v50 = vmul.f32 %v4958_v33, %v5376_v14  ;;  %v2673_v3 = vmul.f32 %v4990_v49, %v2521_v13 }
 0x250   : > { %2363 = vrot.lane.b32.xlu1 %v2340_v47, %s3659_s16  ;;  %v3065_v47 = vmul.f32 %v5137_v0, %v5349_v59  ;;  %v3120_v4 = vmul.f32 %v5167_v55, %v5345_v45  ;;  %v2784_v9 = vmul.f32 %v5045_v60, %v2493_v62  ;;  %v2569_v30 = vadd.f32 %v2561_v54, %v2541_v10 }
 0x251   : > { %v3016_v32 = vadd.f32 %v3008_v37, %v2988_v40  ;;  %v3093_v16 = vmul.f32 %v5150_v5, %v5351_v6  ;;  %v2681_v57 = vadd.f32 %v2673_v3, %v2653_v53  ;;  %v2701_v33 = vmul.f32 %v5015_v34, %v5345_v45 }
 0x252   : > { %v3128_v17 = vadd.f32 %v3120_v4, %v3100_v36  ;;  %v2792_v52 = vadd.f32 %v2784_v9, %v2764_v38  ;;  %v2570_v40 = vadd.f32 %v2562_v20, %v2542_v27  ;;  %v3121_v37 = vmul.f32 %v5167_v55, %v5374_v19  ;;  %v5413_v38 = vld [vmem:[#allocation3 + $0x74] sm:$0xff] }
 0x253   : > { %v3044_v8 = vadd.f32 %v3036_v43, %v3016_v32  ;;  %v2709_v51 = vadd.f32 %v2701_v33, %v2681_v57  ;;  %v2729_v62 = vmul.f32 %v5025_v11, %v2577_v21  ;;  %v3148_v10 = vmul.f32 %v5189_v18, %v2577_v21 }
 0x254   : > { %2359 = vrot.lane.b32.xlu1 %v2338_v61, %s3659_s16  ;;  %v2812_v61 = vmul.f32 %v5051_v41, %v2521_v13  ;;  %v2840_v32 = vmul.f32 %v5055_v7, %v5345_v45  ;;  %v2597_v43 = vadd.f32 %v2589_v48, %v2569_v30  ;;  %v3149_v13 = vmul.f32 %v5189_v18, %v5376_v14  ;;  %s5895_s16 = scalar_lea.vmem %s5989_s12, %s3509_s29 }
 0x255   : > { %v3073_v24 = vadd.f32 %v3065_v47, %v3044_v8  ;;  %v2737_v36 = vadd.f32 %v2729_v62, %v2709_v51  ;;  %v2757_v53 = vmul.f32 %v5036_v22, %v5364_v29  ;;  %v3156_v20 = vadd.f32 %v3148_v10, %v3128_v17 }
 0x256   : > { %v2820_v54 = vadd.f32 %v2812_v61, %v2792_v52  ;;  %v2868_v3 = vmul.f32 %v5065_v12, %v2577_v21  ;;  %v2598_v8 = vadd.f32 %v2590_v50, %v2570_v40  ;;  %v3176_v47 = vmul.f32 %v5212_v56, %v5364_v29  ;;  %v2663_v40 = vld [vmem:[#allocation3 + $0x81] sm:$0xff] }
 0x257   : > { %v3101_v1 = vadd.f32 %v3093_v16, %v3073_v24  ;;  %v2765_v45 = vadd.f32 %v2757_v53, %v2737_v36  ;;  %v2785_v48 = vmul.f32 %v5045_v60, %v5349_v59  ;;  %v3177_v9 = vmul.f32 %v5212_v56, %v5413_v38  ;;  %v5444_v36 = vld [vmem:[#allocation3 + $0x82] sm:$0xff] }
 0x258   : > { %2409 = vrot.lane.b32.xlu1 %v2388_v23, %s3658_s15  ;;  %v2848_v23 = vadd.f32 %v2840_v32, %v2820_v54  ;;  %v2896_v16 = vmul.f32 %v5074_v26, %v5364_v29  ;;  %v2617_v57 = vmul.f32 %v4963_v42, %v5364_v29  ;;  %v2618_v21 = vmul.f32 %v4963_v42, %v5413_v38 }
 0x259   : > { %v3129_v27 = vadd.f32 %v3121_v37, %v3101_v1  ;;  %v2793_v50 = vadd.f32 %v2785_v48, %v2765_v45  ;;  %v2813_v33 = vmul.f32 %v5051_v41, %v5351_v6  ;;  %v3184_v24 = vadd.f32 %v3176_v47, %v3156_v20 }
 0x25a   : > { %v2876_v30 = vadd.f32 %v2868_v3, %v2848_v23  ;;  %v2925_v61 = vmul.f32 %v5093_v46, %v5349_v59  ;;  %v2646_v37 = vmul.f32 %v4968_v28, %v5349_v59  ;;  %v2841_v29 = vmul.f32 %v5055_v7, %v5374_v19 }
 0x25b   : > { %v3157_v4 = vadd.f32 %v3149_v13, %v3129_v27  ;;  %v2821_v51 = vadd.f32 %v2813_v33, %v2793_v50  ;;  %v2625_v62 = vadd.f32 %v2617_v57, %v2597_v43  ;;  %v2953_v10 = vmul.f32 %v5102_v35, %v5351_v6 }
 0x25c   : > { %v2904_v52 = vadd.f32 %v2896_v16, %v2876_v30  ;;  %v2626_v54 = vadd.f32 %v2618_v21, %v2598_v8  ;;  %v2869_v13 = vmul.f32 %v5065_v12, %v5376_v14  ;;  %v2674_v28 = vmul.f32 %v4990_v49, %v5351_v6  ;;  %v5455_v8 = vld [vmem:[#allocation3 + $0x83] sm:$0xff] }
 0x25d   : > { %v3185_v17 = vadd.f32 %v3177_v9, %v3157_v4  ;;  %v2849_v32 = vadd.f32 %v2841_v29, %v2821_v51  ;;  %v2654_v53 = vadd.f32 %v2646_v37, %v2625_v62  ;;  %v2981_v43 = vmul.f32 %v5112_v63, %v5374_v19  ;;  %v5465_v30 = vld [vmem:[#allocation3 + $0x84] sm:$0xff] }
 0x25e   : > { %v2933_v1 = vadd.f32 %v2925_v61, %v2904_v52  ;;  %v2655_v27 = vadd.f32 %v5383_v58, %v2626_v54  ;;  %v2675_v20 = vmul.f32 %v4990_v49, %v2663_v40  ;;  %v2897_v3 = vmul.f32 %v5074_v26, %v5413_v38  ;;  %v3055_v52 = vld [vmem:[#allocation3 + $0x90] sm:$0xff] }
 0x25f   : > { %v3191_v42 = vpack.c.bf16 %v3185_v17, %v3184_v24  ;;  %v2877_v23 = vadd.f32 %v2869_v13, %v2849_v32  ;;  %v2682_v47 = vadd.f32 %v2674_v28, %v2654_v53  ;;  %v2702_v6 = vmul.f32 %v5015_v34, %v5374_v19  ;;  %v2774_v24 = vld [vmem:[#allocation3 + $0x80] sm:$0xff] }
 0x260   : > { %v2961_v59 = vadd.f32 %v2953_v10, %v2933_v1  ;;  %v3009_v48 = vmul.f32 %v5122_v15, %v5376_v14  ;;  %v2683_v4 = vadd.f32 %v2675_v20, %v2655_v27  ;;  %v2703_v58 = vmul.f32 %v5444_v36, %v5015_v34  ;;  %v3083_v10 = vld [vmem:[#allocation3 + $0x91] sm:$0xff]  ;;  %v5483_v13 = vld [vmem:[#allocation3 + $0xa0] sm:$0xff] }
 0x261   : > { %3564 = vmatmul.mubr.msk.bf16.vlgmr.msra.gmra.mrb[0].mxu1 %vm1006_vm1, %v3191_v42  ;;  %v2905_v9 = vadd.f32 %v2897_v3, %v2877_v23  ;;  %v2926_v49 = vmul.f32 %v5093_v46, %v5358_v25  ;;  %v2710_v16 = vadd.f32 %v2702_v6, %v2682_v47  ;;  %v2730_v57 = vmul.f32 %v5025_v11, %v5376_v14  ;;  %v2802_v42 = vld [vmem:[#allocation3 + $0x81] sm:$0xff] }
 0x262   : > { %v2989_v45 = vadd.f32 %v2981_v43, %v2961_v59  ;;  %v3037_v19 = vmul.f32 %v5133_v2, %v5413_v38  ;;  %v2711_v50 = vadd.f32 %v2703_v58, %v2683_v4  ;;  %v2731_v33 = vmul.f32 %v5455_v8, %v5025_v11  ;;  %v3111_v43 = vld [vmem:[#allocation3 + $0x92] sm:$0xff]  ;;  %v5490_v23 = vld [vmem:[#allocation3 + $0xa1] sm:$0xff] }
 0x263   : > { %v2934_v34 = vadd.f32 %v2926_v49, %v2905_v9  ;;  %v2954_v17 = vmul.f32 %v5102_v35, %v2663_v40  ;;  %v2738_v61 = vadd.f32 %v2730_v57, %v2710_v16  ;;  %v2758_v37 = vmul.f32 %v5036_v22, %v5413_v38  ;;  %v3139_v4 = vld [vmem:[#allocation3 + $0x93] sm:$0xff] }
 0x264   : > { %v3017_v21 = vadd.f32 %v3009_v48, %v2989_v45  ;;  %v3066_v14 = vmul.f32 %v5137_v0, %v5358_v25  ;;  %v2739_v29 = vadd.f32 %v2731_v33, %v2711_v50  ;;  %v2759_v62 = vmul.f32 %v5465_v30, %v5036_v22 }
 0x265   : > { %v2962_v1 = vadd.f32 %v2954_v17, %v2934_v34  ;;  %v2982_v11 = vmul.f32 %v5112_v63, %v5444_v36  ;;  %v2766_v54 = vadd.f32 %v2758_v37, %v2738_v61  ;;  %v2786_v32 = vmul.f32 %v5045_v60, %v2774_v24  ;;  %v6275_v61 = vld [vmem:[#allocation9_spill] sm:$0xff] }
 0x266   : > { %v3045_v51 = vadd.f32 %v3037_v19, %v3017_v21  ;;  %v3010_v38 = vmul.f32 %v5122_v15, %v5455_v8  ;;  %v2767_v25 = vadd.f32 %v2759_v62, %v2739_v29  ;;  %v2787_v28 = vmul.f32 %v3055_v52, %v5045_v60  ;;  %v3167_v19 = vld [vmem:[#allocation3 + $0x94] sm:$0xff]  ;;  %v2972_v62 = vld [vmem:[#allocation3 + $0xa2] sm:$0xff] }
 0x267   : > { %v2990_v59 = vadd.f32 %v2982_v11, %v2962_v1  ;;  %v3094_v22 = vmul.f32 %v5150_v5, %v2663_v40  ;;  %v2794_v27 = vadd.f32 %v2786_v32, %v2766_v54  ;;  %v2814_v20 = vmul.f32 %v5051_v41, %v2802_v42 }
 0x268   : > { %v3074_v53 = vadd.f32 %v3066_v14, %v3045_v51  ;;  %v3038_v3 = vmul.f32 %v5133_v2, %v5465_v30  ;;  %v2795_v47 = vadd.f32 %v2787_v28, %v2767_v25  ;;  %v2815_v6 = vmul.f32 %v3083_v10, %v5051_v41 }
 0x269   : > { %v2928_v45 = vmul.f32 %v5093_v46, %v5483_v13  ;;  %v3018_v48 = vadd.f32 %v3010_v38, %v2990_v59  ;;  %v2822_v58 = vadd.f32 %v2814_v20, %v2794_v27  ;;  %v2842_v40 = vmul.f32 %v5444_v36, %v5055_v7 }
 0x26a   : > { %v3102_v60 = vadd.f32 %v3094_v22, %v3074_v53  ;;  %v3067_v9 = vmul.f32 %v5137_v0, %v3055_v52  ;;  %v2823_v49 = vadd.f32 %v2815_v6, %v2795_v47  ;;  %v2843_v16 = vmul.f32 %v3111_v43, %v5055_v7  ;;  %v3000_v53 = vld [vmem:[#allocation3 + $0xa3] sm:$0xff] }
 0x26b   : > { %v2956_v57 = vmul.f32 %v5102_v35, %v5490_v23  ;;  %v3046_v21 = vadd.f32 %v3038_v3, %v3018_v48  ;;  %v3122_v41 = vmul.f32 %v5167_v55, %v5444_v36  ;;  %v2850_v50 = vadd.f32 %v2842_v40, %v2822_v58  ;;  %v3028_v3 = vld [vmem:[#allocation3 + $0xa4] sm:$0xff] }
 0x26c   : > { %v2870_v33 = vmul.f32 %v5455_v8, %v5065_v12  ;;  %v3095_v24 = vmul.f32 %v5150_v5, %v3083_v10  ;;  %v2851_v34 = vadd.f32 %v2843_v16, %v2823_v49  ;;  %v2871_v17 = vmul.f32 %v3139_v4, %v5065_v12  ;;  %v3057_v16 = vld [vmem:[#allocation3 + $0xb0] sm:$0xff] }
 0x26d   : > { %v724_v37 = vadd.s32 1, %v6275_v61  ;;  %v3075_v7 = vadd.f32 %v3067_v9, %v3046_v21  ;;  %v3130_v51 = vadd.f32 %v3122_v41, %v3102_v60  ;;  %v2898_v29 = vmul.f32 %v5465_v30, %v5074_v26 }
 0x26e   : > { %v2878_v14 = vadd.f32 %v2870_v33, %v2850_v50  ;;  %v3123_v36 = vmul.f32 %v5167_v55, %v3111_v43  ;;  %v2879_v42 = vadd.f32 %v2871_v17, %v2851_v34  ;;  %v2899_v1 = vmul.f32 %v3167_v19, %v5074_v26  ;;  %v3085_v33 = vld [vmem:[#allocation3 + $0xb1] sm:$0xff] }
 0x26f   : > { %v3479_v11 = vadd.s32 4294967295, %v6275_v61  ;;  %v3103_v54 = vadd.f32 %v3095_v24, %v3075_v7  ;;  %v3150_v12 = vmul.f32 %v5189_v18, %v5455_v8  ;;  %v2927_v38 = vmul.f32 %v3055_v52, %v5093_v46  ;;  %v5539_v24 = vld [vmem:[%s3788_s14 + $0x30] sm:$0xff] }
 0x270   : > { %v2906_v32 = vadd.f32 %v2898_v29, %v2878_v14  ;;  %v3151_v25 = vmul.f32 %v5189_v18, %v3139_v4  ;;  %v2907_v28 = vadd.f32 %v2899_v1, %v2879_v42  ;;  %v2984_v59 = vmul.f32 %v5112_v63, %v2972_v62 }
 0x271   : > { %vm725_vm5 = vcmp.lt.s32.totalorder %v724_v37, 7  ;;  %v3131_v22 = vadd.f32 %v3123_v36, %v3103_v54  ;;  %v3158_v27 = vadd.f32 %v3150_v12, %v3130_v51  ;;  %v2955_v26 = vmul.f32 %v3083_v10, %v5102_v35  ;;  %v3141_v36 = vld [vmem:[#allocation3 + $0xb3] sm:$0xff] }
 0x272   : > { %v2935_v20 = vadd.f32 %v2927_v38, %v2906_v32  ;;  %v3178_v47 = vmul.f32 %v5212_v56, %v5465_v30  ;;  %v2936_v8 = vadd.f32 %v2928_v45, %v2907_v28  ;;  %v3012_v6 = vmul.f32 %v5122_v15, %v3000_v53 }
 0x273   : > { %vm728_vm6 = vcmp.gt.s32.totalorder %v3479_v11, 0  ;;  %v3159_v46 = vadd.f32 %v3151_v25, %v3131_v22  ;;  %v3179_v52 = vmul.f32 %v5212_v56, %v3167_v19  ;;  %v2983_v60 = vmul.f32 %v3111_v43, %v5112_v63  ;;  %v5534_v43 = vld [vmem:[%s3788_s14 + $0x28] sm:$0xff] }
 0x274   : > { %v2963_v48 = vadd.f32 %v2955_v26, %v2935_v20  ;;  %v2964_v58 = vadd.f32 %v2956_v57, %v2936_v8  ;;  %v3040_v40 = vmul.f32 %v5133_v2, %v3028_v3  ;;  %v3068_v35 = vmul.f32 %v5137_v0, %v5483_v13 }
 0x275   : > { %v726_v30 = vsel %vm725_vm5, %v724_v37, 7  ;;  %v3186_v10 = vadd.f32 %v3178_v47, %v3158_v27  ;;  %v3187_v45 = vadd.f32 %v3179_v52, %v3159_v46  ;;  %v3011_v49 = vmul.f32 %v3139_v4, %v5122_v15  ;;  %v5544_v15 = vld [vmem:[%s3788_s14 + $0x38] sm:$0xff] }
 0x276   : > { %v2991_v9 = vadd.f32 %v2983_v60, %v2963_v48  ;;  %v2992_v21 = vadd.f32 %v2984_v59, %v2964_v58  ;;  %v3039_v41 = vmul.f32 %v3167_v19, %v5133_v2  ;;  %v729_v63 = vsel %vm728_vm6, %v3479_v11, 0  ;;  %v3113_v37 = vld [vmem:[#allocation3 + $0xb2] sm:$0xff] }
 0x277   : > { %v493_v57 = vsub.f32 %v5534_v43, %v5236_v39  ;;  %v3192_v13 = vpack.c.bf16 %v3187_v45, %v3186_v10  ;;  %v494_v34 = vsub.f32 %v5539_v24, %v5236_v39  ;;  %v495_v2 = vsub.f32 %v5544_v15, %v5236_v39 }
 0x278   : > { %v3019_v50 = vadd.f32 %v3011_v49, %v2991_v9  ;;  %v3020_v4 = vadd.f32 %v3012_v6, %v2992_v21  ;;  %v3069_v19 = vmul.f32 %v5137_v0, %v3057_v16  ;;  %v3096_v61 = vmul.f32 %v5150_v5, %v5490_v23  ;;  %v3169_v23 = vld [vmem:[#allocation3 + $0xb4] sm:$0xff] }
 0x279   : > { %502 = vst.msk [vmem:[#allocation4 + $0x61] sm:$0xff] %vm441_vm0, %v493_v57  ;;  %3567 = vmatprep.mubr.msk.bf16.mxu1 %vm1006_vm1, %v3192_v13  ;;  %503 = vst.msk [vmem:[#allocation4 + $0x71] sm:$0xff] %vm441_vm0, %v494_v34  ;;  %v3097_v51 = vmul.f32 %v5150_v5, %v3085_v33  ;;  %v730_v14 = vsub.s32 %v726_v30, %v729_v63  ;;  %v3124_v0 = vmul.f32 %v5167_v55, %v2972_v62 }
 0x27a   : > { %v3047_v17 = vadd.f32 %v3039_v41, %v3019_v50  ;;  %504 = vst.msk [vmem:[#allocation4 + $0x81] sm:$0xff] %vm441_vm0, %v495_v2  ;;  %v3048_v7 = vadd.f32 %v3040_v40, %v3020_v4  ;;  %v3125_v1 = vmul.f32 %v5167_v55, %v3113_v37  ;;  %v3152_v54 = vmul.f32 %v5189_v18, %v3000_v53  ;;  %v437_v37 = vld [vmem:[%s5987_s10] sm:$0x3] }
 0x27b   : > { %v3153_v32 = vmul.f32 %v5189_v18, %v3141_v36  ;;  %v5560_v38 = vadd.s32 1, %v730_v14  ;;  %v3180_v62 = vmul.f32 %v5212_v56, %v3028_v3  ;;  %v3181_v22 = vmul.f32 %v5212_v56, %v3169_v23  ;;  %v5578_v56 = vpop.permute.xlu1 %2353 }
 0x27c   : > { %v3076_v29 = vadd.f32 %v3068_v35, %v3047_v17  ;;  %v3077_v42 = vadd.f32 %v3069_v19, %v3048_v7  ;;  %v5619_v14 = vrot.slane %v437_v37, %v6262_v31 }
 0x27d   : > { %v733_v26 = vmul.u32 3, %v5560_v38 }
 0x27e   : > { %v3104_v11 = vadd.f32 %v3096_v61, %v3076_v29  ;;  %v3105_v12 = vadd.f32 %v3097_v51, %v3077_v42  ;;  %v5622_v29 = vrot.slane %v437_v37, %v6263_v44 }
 0x27f   : > { %v735_v40 = vcvt.s32.f32 %v733_v26  ;;  %v5593_v16 = vpop.permute.xlu1 %2403 }
 0x280   : > { %v3132_v25 = vadd.f32 %v3124_v0, %v3104_v11  ;;  %v5562_v28 = vld [vmem:[#allocation4 + $0x60] sm:$0xff]  ;;  %v3133_v59 = vadd.f32 %v3125_v1, %v3105_v12  ;;  %v5575_v8 = vld [vmem:[#allocation4 + $0x70] sm:$0xff] }
 0x281   : > { %v5564_v5 = vld [vmem:[#allocation4 + $0x61] sm:$0xff]  ;;  %v519_v55 = vmax.f32 %v5562_v28, 0.0  ;;  %v5581_v48 = vld [vmem:[#allocation4 + $0x71] sm:$0xff]  ;;  %3608 = vrcp.f32 %v735_v40 }
 0x282   : > { %v5569_v27 = vld [vmem:[#allocation4 + $0x62] sm:$0xff]  ;;  %v3160_v53 = vadd.f32 %v3152_v54, %v3132_v25  ;;  %v551_v18 = vadd.f32 %v5564_v5, %v5562_v28  ;;  %v3161_v20 = vadd.f32 %v3153_v32, %v3133_v59  ;;  %v5585_v30 = vld [vmem:[#allocation4 + $0x72] sm:$0xff]  ;;  %v438_v0 = vld [vmem:[%s5988_s11] sm:$0x3]  ;;  %v5641_v25 = vstv %s3477_s30 }
 0x283   : > { %v543_v47 = vmax.f32 %v519_v55, %v5564_v5  ;;  %v5590_v9 = vld [vmem:[#allocation4 + $0x80] sm:$0xff]  ;;  %v5603_v33 = vpop.permute.xlu1 %2349  ;;  %v5632_v11 = vrot.slane %v438_v0, %v6262_v31  ;;  %v5635_v54 = vrot.slane %v438_v0, %v6263_v44  ;;  %v5643_v59 = vstv %s3478_s13 }
 0x284   : > { %v575_v6 = vadd.f32 %v5569_v27, %v551_v18  ;;  %v3188_v3 = vadd.f32 %v3180_v62, %v3160_v53  ;;  %v3189_v46 = vadd.f32 %v3181_v22, %v3161_v20  ;;  %v5596_v41 = vld [vmem:[#allocation4 + $0x81] sm:$0xff]  ;;  %v5647_v31 = vstv %s3480_s18 }
 0x285   : > { %v567_v52 = vmax.f32 %v543_v47, %v5569_v27  ;;  %v5601_v50 = vld [vmem:[#allocation4 + $0x82] sm:$0xff]  ;;  %v844_v44 = vmul.f32 %v5539_v24, %v5647_v31 }
 0x286   : > { %v599_v60 = vadd.f32 %v5575_v8, %v575_v6  ;;  %v3193_v58 = vpack.c.bf16 %v3189_v46, %v3188_v3  ;;  %v3503_v3 = vld [vmem:[%s5985_s8] ss:$0 sm:$0xff] }
 0x287   : > { %v591_v35 = vmax.f32 %v567_v52, %v5575_v8  ;;  %v5611_v61 = vpop.permute.xlu1 %2355  ;;  %v3504_v46 = vld [vmem:[%s5986_s9] ss:$0 sm:$0xff] }
 0x288   : > { %v623_v10 = vadd.f32 %v5581_v48, %v599_v60  ;;  %3568 = vmatmul.mubr.msk.bf16.gmra.mrb[4].mxu1 %vm1006_vm1, %v3193_v58 }
 0x289   : > { %v615_v45 = vmax.f32 %v591_v35, %v5581_v48  ;;  %v3342_v35 = vstv %s3506_s19 }
 0x28a   : > { %v647_v49 = vadd.f32 %v5585_v30, %v623_v10 }
 0x28b   : > { %v639_v21 = vmax.f32 %v615_v45, %v5585_v30  ;;  %v5607_v4 = vpop.eup %3608  ;;  %v5627_v36 = vpop.permute.xlu1 %2405 }
 0x28c   : > { %v672_v63 = vadd.f32 %v5590_v9, %v647_v49 }
 0x28d   : > { %v664_v57 = vmax.f32 %v639_v21, %v5590_v9 }
 0x28e   : > { %v696_v13 = vadd.f32 %v5596_v41, %v672_v63 }
 0x28f   : > { %v688_v34 = vmax.f32 %v664_v57, %v5596_v41  ;;  %v5639_v32 = vpop.permute.xlu1 %2351 }
 0x290   : > { %v720_v2 = vadd.f32 %v5601_v50, %v696_v13 }
 0x291   : > { %v712_v19 = vmax.f32 %v688_v34, %v5601_v50 }
 0x292   : > { %v752_v17 = vmul.f32 %v5607_v4, %v720_v2 }
 0x293   : > { %v742_v7 = vadd.f32 %v712_v19, %v5236_v39  ;;  %v5649_v55 = vpop.permute.xlu1 %2401 }
 0x294   : > { %v760_v51 = vadd.f32 %v752_v17, %v5236_v39 }
 0x295   : > { %v772_v42 = vmul.f32 %v5619_v14, %v742_v7 }
 0x296   : > { %v805_v1 = vmul.f32 %v5622_v29, %v760_v51 }
 0x297   : > { %v784_v23 = vadd.f32 %v5632_v11, %v772_v42 }
 0x298   : > { %v817_v12 = vadd.f32 %v5635_v54, %v805_v1 }
 0x299   : > { %v793_v62 = vmul.f32 %v5641_v25, %v784_v23 }
 0x29a   : > { %v826_v22 = vmul.f32 %v5643_v59, %v817_v12 }
 0x29c   : > { %v834_v53 = vadd.f32 %v826_v22, %v793_v62 }
 0x29e   : > { %v852_v18 = vadd.f32 %v844_v44, %v834_v53  ;;  %v5677_v44 = vstv %s3505_s26 }
 0x2b2   : > { %v2362_v20 = vpop.permute.xlu1 %2361 }
 0x2b3   : > { %v2379_v26 = vadd.f32 %v2362_v20, %v852_v18 }
 0x2b6   : > { %v2412_v47 = vpop.permute.xlu1 %2411 }
 0x2b7   : > { %v2429_v6 = vadd.f32 %v2412_v47, %v2379_v26 }
 0x334   : > { %v3565_v52 = vpop.f32.mrb[0].mxu1 }
 0x335   : > { %v3303_v60 = vmul.f32 %v3565_v52, %v3503_v3  ;;  %v3264_v58 = vpop.f32.mrb[1].mxu1 }
 0x336   : > { %v3301_v40 = vmul.f32 %v3503_v3, %v3264_v58  ;;  %v3566_v24 = vpop.f32.mrb[2].mxu1  ;;  %v5692_v58 = vld [vmem:[#allocation4 + $0x21] sm:$0xff] }
 0x337   : > { %v5659_v10 = vadd.f32 %v3504_v46, %v3303_v60  ;;  %v3304_v45 = vmul.f32 %v3566_v24, %v3503_v3  ;;  %v3267_v49 = vpop.f32.mrb[3].mxu1  ;;  %v529_v24 = vld [vmem:[#allocation4 + $0x1] sm:$0xff] }
 0x338   : > { %v3302_v21 = vmul.f32 %v3503_v3, %v3267_v49  ;;  %v5661_v63 = vadd.f32 %v3504_v46, %v3301_v40  ;;  %v505_v40 = vld [vmem:[#allocation4] sm:$0xff] }
 0x339   : > { %v5663_v57 = vadd.f32 %v3504_v46, %v3304_v45  ;;  %v3345_v13 = vmul.f32 %v3342_v35, %v5659_v10  ;;  %v5700_v49 = vld [vmem:[#allocation4 + $0x22] sm:$0xff] }
 0x33a   : > { %v5666_v34 = vadd.f32 %v3504_v46, %v3302_v21  ;;  %v3343_v19 = vmul.f32 %v3342_v35, %v5661_v63  ;;  %v5702_v21 = vld [vmem:[#allocation4 + $0x30] sm:$0xff] }
 0x33b   : > { %3363 = vrot.lane.b32.xlu1 %v3345_v13, %s3660_s17  ;;  %v3346_v2 = vmul.f32 %v3342_v35, %v5663_v57  ;;  %v5704_v13 = vld [vmem:[#allocation4 + $0x31] sm:$0xff] }
 0x33c   : > { %v3344_v17 = vmul.f32 %v3342_v35, %v5666_v34 }
 0x33d   : > { %3365 = vrot.lane.b32.xlu0 %v3346_v2, %s3660_s17  ;;  %v513_v2 = vmax.f32 %v505_v40, 0.0 }
 0x33f   : > { %3359 = vrot.lane.b32.xlu1 %v3343_v19, %s3660_s17  ;;  %v545_v19 = vadd.f32 %v529_v24, %v505_v40  ;;  %v5720_v40 = vld [vmem:[#allocation4 + $0x40] sm:$0xff] }
 0x341   : > { %3361 = vrot.lane.b32.xlu0 %v3344_v17, %s3660_s17  ;;  %v553_v17 = vld [vmem:[#allocation4 + $0x2] sm:$0xff] }
 0x35b   : > { %v3569_v37 = vpop.f32.mrb[4].mxu1 }
 0x35c   : > { %v3307_v7 = vmul.f32 %v3569_v37, %v3503_v3  ;;  %v3280_v51 = vpop.f32.mrb[5].mxu1  ;;  %v516_v37 = vmax.f32 %v5702_v21, 0.0 }
 0x35d   : > { %v3305_v0 = vmul.f32 %v3503_v3, %v3280_v51  ;;  %v3570_v42 = vpop.f32.mrb[6].mxu1 }
 0x35e   : > { %v3321_v1 = vadd.f32 %v3504_v46, %v3307_v7  ;;  %v3283_v23 = vpop.f32.mrb[7].mxu1  ;;  %v3308_v62 = vmul.f32 %v3570_v42, %v3503_v3  ;;  %v537_v42 = vmax.f32 %v513_v2, %v529_v24  ;;  %v5723_v24 = vld [vmem:[#allocation4 + $0x12] sm:$0xff] }
 0x35f   : > { %v5675_v12 = vadd.f32 %v3504_v46, %v3305_v0  ;;  %v3306_v22 = vmul.f32 %v3503_v3, %v3283_v23  ;;  %v5690_v3 = vld [vmem:[#allocation4 + $0x20] sm:$0xff]  ;;  %v5711_v0 = vld [vmem:[#allocation4 + $0x32] sm:$0xff] }
 0x360   : > { %v3331_v53 = vmul.f32 %v5677_v44, %v3321_v1  ;;  %v5685_v47 = vadd.f32 %v3504_v46, %v3308_v62  ;;  %v3349_v60 = vmul.f32 %v3342_v35, %v3321_v1  ;;  %v547_v45 = vadd.f32 %v5692_v58, %v5690_v3  ;;  %v5713_v23 = vld [vmem:[#allocation4 + $0x10] sm:$0xff] }
 0x361   : > { %6276 = vst [vmem:[#allocation46_spill] sm:$0xff] %v5675_v12  ;;  %v5680_v18 = vadd.f32 %v3504_v46, %v3306_v22  ;;  %v3347_v20 = vmul.f32 %v3342_v35, %v5675_v12  ;;  %v515_v46 = vmax.f32 %v5690_v3, 0.0  ;;  %v569_v1 = vadd.f32 %v553_v17, %v545_v19  ;;  %v601_v62 = vld [vmem:[#allocation4 + $0x11] sm:$0xff] }
 0x362   : > { %v5683_v26 = vadd.f32 %v3331_v53, %v2429_v6  ;;  %6279 = vst [vmem:[#allocation13_spill] sm:$0xff] %v5685_v47  ;;  %v3350_v6 = vmul.f32 %v3342_v35, %v5685_v47  ;;  %v571_v51 = vadd.f32 %v5700_v49, %v547_v45  ;;  %v540_v22 = vmax.f32 %v516_v37, %v5704_v13 }
 0x363   : > { %6277 = vst [vmem:[#allocation47_spill] sm:$0xff] %v5680_v18  ;;  %3367 = vrot.lane.b32.xlu1 %v3347_v20, %s3660_s17  ;;  %v3348_v52 = vmul.f32 %v3342_v35, %v5680_v18  ;;  %v548_v35 = vadd.f32 %v5704_v13, %v5702_v21  ;;  %v539_v7 = vmax.f32 %v515_v46, %v5692_v58  ;;  %v5742_v18 = vld [vmem:[#allocation4 + $0x42] sm:$0xff] }
 0x364   : > { %6278 = vst [vmem:[#allocation12_spill] sm:$0xff] %v5683_v26  ;;  %v546_v20 = vadd.f32 %v601_v62, %v5713_v23  ;;  %v593_v46 = vadd.f32 %v5713_v23, %v569_v1  ;;  %v538_v45 = vmax.f32 %v5692_v58, %v5690_v3  ;;  %v564_v2 = vmax.f32 %v540_v22, %v5711_v0 }
 0x365   : > { %3369 = vrot.lane.b32.xlu0 %v3348_v52, %s3660_s17  ;;  %v572_v53 = vadd.f32 %v5711_v0, %v548_v35  ;;  %v563_v52 = vmax.f32 %v539_v7, %v5700_v49 }
 0x366   : > { %v570_v37 = vadd.f32 %v5723_v24, %v546_v20  ;;  %v617_v1 = vadd.f32 %v601_v62, %v593_v46  ;;  %v562_v26 = vmax.f32 %v538_v45, %v5700_v49  ;;  %v588_v47 = vmax.f32 %v564_v2, %v5720_v40 }
 0x367   : > { %3371 = vrot.lane.b32.xlu1 %v3349_v60, %s3660_s17  ;;  %v595_v60 = vadd.f32 %v5702_v21, %v571_v51  ;;  %v596_v19 = vadd.f32 %v5720_v40, %v572_v53  ;;  %v587_v35 = vmax.f32 %v563_v52, %v5702_v21  ;;  %v732_v51 = vmul.u32 2, %v5560_v38 }
 0x368   : > { %v594_v53 = vadd.f32 %v570_v37, %v5690_v3  ;;  %v641_v12 = vadd.f32 %v5723_v24, %v617_v1 }
 0x369   : > { %3373 = vrot.lane.b32.xlu0 %v3350_v6, %s3660_s17  ;;  %v561_v6 = vmax.f32 %v537_v42, %v553_v17  ;;  %v619_v7 = vadd.f32 %v5704_v13, %v595_v60  ;;  %v5733_v17 = vld [vmem:[#allocation4 + $0x41] sm:$0xff]  ;;  %v611_v20 = vmax.f32 %v587_v35, %v5704_v13  ;;  %v734_v60 = vcvt.s32.f32 %v732_v51 }
 0x36a   : > { %v620_v22 = vadd.f32 %v5733_v17, %v596_v19  ;;  %v612_v46 = vmax.f32 %v588_v47, %v5733_v17  ;;  %v618_v2 = vadd.f32 %v594_v53, %v5692_v58  ;;  %v5749_v19 = vld [vmem:[#allocation4 + $0x50] sm:$0xff]  ;;  %v666_v51 = vadd.f32 %v641_v12, %v5690_v3 }
 0x36b   : > { %v585_v42 = vmax.f32 %v561_v6, %v5713_v23  ;;  %v643_v52 = vadd.f32 %v5711_v0, %v619_v7  ;;  %v586_v6 = vmax.f32 %v562_v26, %v5702_v21  ;;  %v635_v37 = vmax.f32 %v611_v20, %v5711_v0 }
 0x36c   : > { %v644_v45 = vadd.f32 %v5742_v18, %v620_v22  ;;  %3610 = vrcp.f32 %v734_v60  ;;  %v636_v26 = vmax.f32 %v612_v46, %v5742_v18  ;;  %v642_v1 = vadd.f32 %v618_v2, %v5700_v49  ;;  %v5759_v22 = vld [vmem:[#allocation4 + $0x51] sm:$0xff] }
 0x36d   : > { %v609_v38 = vmax.f32 %v585_v42, %v601_v62  ;;  %v668_v35 = vadd.f32 %v5720_v40, %v643_v52  ;;  %v610_v42 = vmax.f32 %v586_v6, %v5704_v13  ;;  %v660_v53 = vmax.f32 %v635_v37, %v5720_v40 }
 0x36e   : > { %v669_v47 = vadd.f32 %v5749_v19, %v644_v45  ;;  %v690_v60 = vadd.f32 %v666_v51, %v5692_v58  ;;  %v667_v46 = vadd.f32 %v642_v1, %v5702_v21  ;;  %v5769_v45 = vld [vmem:[#allocation4 + $0x52] sm:$0xff] }
 0x36f   : > { %v633_v7 = vmax.f32 %v609_v38, %v5723_v24  ;;  %v692_v20 = vadd.f32 %v5733_v17, %v668_v35  ;;  %v634_v12 = vmax.f32 %v610_v42, %v5711_v0  ;;  %v661_v38 = vmax.f32 %v636_v26, %v5749_v19 }
 0x370   : > { %v693_v6 = vadd.f32 %v5759_v22, %v669_v47  ;;  %v684_v2 = vmax.f32 %v660_v53, %v5733_v17  ;;  %v691_v47 = vadd.f32 %v667_v46, %v5704_v13  ;;  %v5793_v46 = vpop.permute.xlu1 %2357 }
 0x371   : > { %v658_v52 = vmax.f32 %v633_v7, %v5690_v3  ;;  %v716_v37 = vadd.f32 %v5742_v18, %v692_v20  ;;  %v714_v3 = vadd.f32 %v690_v60, %v5700_v49  ;;  %v659_v51 = vmax.f32 %v634_v12, %v601_v62 }
 0x372   : > { %v685_v42 = vmax.f32 %v661_v38, %v5759_v22  ;;  %v717_v26 = vadd.f32 %v5769_v45, %v693_v6  ;;  %v708_v21 = vmax.f32 %v684_v2, %v5742_v18  ;;  %v715_v12 = vadd.f32 %v691_v47, %v5711_v0 }
 0x373   : > { %v682_v35 = vmax.f32 %v658_v52, %v5692_v58  ;;  %v748_v1 = vmul.f32 %v5607_v4, %v716_v37  ;;  %v514_v58 = vmax.f32 %v5713_v23, 0.0  ;;  %v683_v52 = vmax.f32 %v659_v51, %v5723_v24 }
 0x374   : > { %v709_v62 = vmax.f32 %v685_v42, %v5769_v45  ;;  %v749_v60 = vmul.f32 %v5607_v4, %v717_v26  ;;  %v738_v13 = vadd.f32 %v708_v21, %v5236_v39  ;;  %v747_v37 = vmul.f32 %v5607_v4, %v715_v12 }
 0x375   : > { %v706_v53 = vmax.f32 %v682_v35, %v5700_v49  ;;  %v756_v38 = vadd.f32 %v748_v1, %v5236_v39  ;;  %v707_v2 = vmax.f32 %v683_v52, %v514_v58  ;;  %v517_v1 = vmax.f32 %v5720_v40, 0.0 }
 0x376   : > { %v5775_v7 = vpop.eup %3610  ;;  %v739_v23 = vadd.f32 %v709_v62, %v5236_v39  ;;  %v757_v24 = vadd.f32 %v749_v60, %v5236_v39  ;;  %v768_v35 = vmul.f32 %v5619_v14, %v738_v13  ;;  %v755_v21 = vadd.f32 %v747_v37, %v5236_v39 }
 0x377   : > { %v745_v20 = vmul.f32 %v5775_v7, %v714_v3  ;;  %v736_v6 = vadd.f32 %v706_v53, %v5236_v39  ;;  %v801_v0 = vmul.f32 %v5622_v29, %v756_v38  ;;  %v737_v47 = vadd.f32 %v707_v2, %v5236_v39 }
 0x378   : > { %v769_v42 = vmul.f32 %v5619_v14, %v739_v23  ;;  %v802_v26 = vmul.f32 %v5622_v29, %v757_v24  ;;  %v549_v53 = vadd.f32 %v5733_v17, %v5720_v40  ;;  %v780_v58 = vadd.f32 %v5632_v11, %v768_v35 }
 0x379   : > { %v754_v49 = vadd.f32 %v745_v20, %v5236_v39  ;;  %v766_v3 = vmul.f32 %v5619_v14, %v736_v6  ;;  %v5809_v20 = vpop.permute.xlu1 %2407  ;;  %v813_v52 = vadd.f32 %v5635_v54, %v801_v0  ;;  %v550_v12 = vadd.f32 %v5759_v22, %v5749_v19 }
 0x37a   : > { %6280 = vst [vmem:[#allocation40_spill] sm:$0xff] %v5809_v20  ;;  %v781_v13 = vadd.f32 %v5632_v11, %v769_v42  ;;  %v814_v38 = vadd.f32 %v5635_v54, %v802_v26  ;;  %v767_v6 = vmul.f32 %v5619_v14, %v737_v47  ;;  %v800_v40 = vmul.f32 %v5622_v29, %v755_v21  ;;  %v3625_v20 = vld [vmem:[%s3788_s14] sm:$0xff] }
 0x37b   : > { %v799_v51 = vmul.f32 %v5622_v29, %v754_v49  ;;  %v778_v62 = vadd.f32 %v5632_v11, %v766_v3  ;;  %v541_v49 = vmax.f32 %v517_v1, %v5733_v17  ;;  %v573_v23 = vadd.f32 %v5742_v18, %v549_v53 }
 0x37c   : > { %v520_v24 = vmax.f32 %v5575_v8, 0.0  ;;  %v552_v2 = vadd.f32 %v5581_v48, %v5575_v8  ;;  %v789_v37 = vmul.f32 %v5641_v25, %v780_v58  ;;  %v822_v35 = vmul.f32 %v5643_v59, %v813_v52 }
 0x37d   : > { %v811_v60 = vadd.f32 %v5635_v54, %v799_v51  ;;  %v787_v0 = vmul.f32 %v5641_v25, %v778_v62  ;;  %v542_v17 = vmax.f32 %v5769_v45, %v5759_v22  ;;  %v5832_v51 = vpop.permute.xlu1 %2363  ;;  %v574_v42 = vadd.f32 %v5769_v45, %v550_v12 }
 0x37e   : > { %6281 = vst [vmem:[#allocation15_spill] sm:$0xff] %v5832_v51  ;;  %v790_v26 = vmul.f32 %v5641_v25, %v781_v13  ;;  %v823_v47 = vmul.f32 %v5643_v59, %v814_v38  ;;  %v779_v21 = vadd.f32 %v5632_v11, %v767_v6  ;;  %v812_v1 = vadd.f32 %v5635_v54, %v800_v40 }
 0x37f   : > { %v820_v3 = vmul.f32 %v5643_v59, %v811_v60  ;;  %v565_v53 = vmax.f32 %v541_v49, %v5742_v18  ;;  %v597_v58 = vadd.f32 %v5749_v19, %v573_v23  ;;  %v544_v52 = vmax.f32 %v520_v24, %v5581_v48  ;;  %v3624_v60 = vld [vmem:[%s3788_s14 + $0x10] sm:$0xff]  ;;  %v3626_v18 = vld [vmem:[%s3788_s14 + $0x18] sm:$0xff] }
 0x380   : > { %v576_v62 = vadd.f32 %v5585_v30, %v552_v2  ;;  %v840_v12 = vmul.f32 %v3624_v60, %v5647_v31  ;;  %v830_v51 = vadd.f32 %v822_v35, %v789_v37  ;;  %v838_v38 = vmul.f32 %v3625_v20, %v5647_v31 }
 0x381   : > { %v828_v13 = vadd.f32 %v820_v3, %v787_v0  ;;  %v566_v6 = vmax.f32 %v542_v17, %v5562_v28  ;;  %v598_v40 = vadd.f32 %v574_v42, %v5562_v28  ;;  %v841_v49 = vmul.f32 %v3626_v18, %v5647_v31  ;;  %v5857_v0 = vpop.permute.xlu1 %2359 }
 0x382   : > { %v831_v23 = vadd.f32 %v823_v47, %v790_v26  ;;  %v788_v24 = vmul.f32 %v5641_v25, %v779_v21  ;;  %v821_v2 = vmul.f32 %v5643_v59, %v812_v1  ;;  %v589_v60 = vmax.f32 %v565_v53, %v5749_v19  ;;  %6282 = vst [vmem:[#allocation48_spill] sm:$0xff] %v5857_v0  ;;  %v3627_v21 = vld [vmem:[%s3788_s14 + $0x8] sm:$0xff]  ;;  %v2400_v53 = vpop.permute.xlu0 %2399 }
 0x383   : > { %v621_v37 = vadd.f32 %v5759_v22, %v597_v58  ;;  %v568_v35 = vmax.f32 %v544_v52, %v5585_v30  ;;  %v600_v20 = vadd.f32 %v5590_v9, %v576_v62  ;;  %v848_v3 = vadd.f32 %v840_v12, %v830_v51 }
 0x384   : > { %v846_v17 = vadd.f32 %v838_v38, %v828_v13  ;;  %v590_v42 = vmax.f32 %v566_v6, %v5564_v5  ;;  %v622_v26 = vadd.f32 %v598_v40, %v5564_v5  ;;  %v849_v47 = vadd.f32 %v841_v49, %v831_v23 }
 0x385   : > { %v839_v1 = vmul.f32 %v3627_v21, %v5647_v31  ;;  %v829_v18 = vadd.f32 %v821_v2, %v788_v24  ;;  %v613_v58 = vmax.f32 %v589_v60, %v5759_v22  ;;  %v645_v52 = vadd.f32 %v5769_v45, %v621_v37  ;;  %v5873_v40 = vpop.permute.xlu1 %2409  ;;  %v681_v21 = vld [vmem:[#allocation4 + $0x91] sm:$0xff] }
 0x386   : > { %v592_v62 = vmax.f32 %v568_v35, %v5590_v9  ;;  %v624_v0 = vadd.f32 %v5596_v41, %v600_v20  ;;  %v2375_v51 = vadd.f32 %v5578_v56, %v848_v3  ;;  %v3327_v12 = vmul.f32 %v5677_v44, %v5659_v10  ;;  %v5879_v23 = vpop.permute.xlu0 %2413 }
 0x387   : > { %v2373_v13 = vadd.f32 %v5603_v33, %v846_v17  ;;  %v614_v38 = vmax.f32 %v590_v42, %v5569_v27  ;;  %v646_v6 = vadd.f32 %v622_v26, %v5569_v27  ;;  %v2376_v9 = vadd.f32 %v5611_v61, %v849_v47 }
 0x388   : > { %v2425_v22 = vadd.f32 %v5593_v16, %v2375_v51  ;;  %v847_v49 = vadd.f32 %v839_v1, %v829_v18  ;;  %v3328_v56 = vmul.f32 %v5677_v44, %v5663_v57  ;;  %v637_v10 = vmax.f32 %v613_v58, %v5769_v45  ;;  %v657_v16 = vld [vmem:[#allocation4 + $0x90] sm:$0xff] }
 0x389   : > { %v670_v33 = vadd.f32 %v645_v52, %v5562_v28  ;;  %v616_v24 = vmax.f32 %v592_v62, %v5596_v41  ;;  %v648_v2 = vadd.f32 %v5601_v50, %v624_v0  ;;  %v2426_v60 = vadd.f32 %v5627_v36, %v2376_v9 }
 0x38a   : > { %v3335_v37 = vadd.f32 %v3327_v12, %v2425_v22  ;;  %v3325_v61 = vmul.f32 %v5677_v44, %v5661_v63  ;;  %v2423_v35 = vadd.f32 %v2400_v53, %v2373_v13  ;;  %v638_v57 = vmax.f32 %v614_v38, %v5575_v8  ;;  %v705_v12 = vld [vmem:[#allocation4 + $0x92] sm:$0xff] }
 0x38b   : > { %v671_v20 = vadd.f32 %v646_v6, %v5575_v8  ;;  %v2374_v36 = vadd.f32 %v5639_v32, %v847_v49  ;;  %v3336_v0 = vadd.f32 %v3328_v56, %v2426_v60  ;;  %v3326_v63 = vmul.f32 %v5677_v44, %v5666_v34 }
 0x38c   : > { %v662_v3 = vmax.f32 %v637_v10, %v5562_v28  ;;  %v694_v8 = vadd.f32 %v670_v33, %v5564_v5  ;;  %v640_v17 = vmax.f32 %v616_v24, %v5601_v50  ;;  %v673_v42 = vadd.f32 %v657_v16, %v648_v2 }
 0x38d   : > { %v2424_v47 = vadd.f32 %v5649_v55, %v2374_v36  ;;  %v3333_v1 = vadd.f32 %v3325_v61, %v2423_v35  ;;  %v663_v18 = vmax.f32 %v638_v57, %v5581_v48  ;;  %v695_v34 = vadd.f32 %v671_v20, %v5581_v48 }
 0x38e   : > { %v686_v58 = vmax.f32 %v662_v3, %v5564_v5  ;;  %v718_v55 = vadd.f32 %v694_v8, %v5569_v27  ;;  %v665_v52 = vmax.f32 %v640_v17, %v657_v16  ;;  %v697_v62 = vadd.f32 %v681_v21, %v673_v42  ;;  %v3628_v42 = vld [vmem:[%s3788_s14 + $0x20] sm:$0xff] }
 0x38f   : > { %v3334_v50 = vadd.f32 %v3326_v63, %v2424_v47  ;;  %v687_v38 = vmax.f32 %v663_v18, %v5585_v30  ;;  %v518_v48 = vmax.f32 %v5749_v19, 0.0  ;;  %v719_v6 = vadd.f32 %v695_v34, %v5585_v30 }
 0x390   : > { %v710_v22 = vmax.f32 %v686_v58, %v5569_v27  ;;  %v750_v5 = vmul.f32 %v5607_v4, %v718_v55  ;;  %v689_v9 = vmax.f32 %v665_v52, %v681_v21  ;;  %v721_v49 = vadd.f32 %v705_v12, %v697_v62  ;;  %v6285_v58 = vld [vmem:[#allocation48_spill] sm:$0xff]  ;;  %v6287_v62 = vld [vmem:[#allocation15_spill] sm:$0xff] }
 0x391   : > { %v711_v56 = vmax.f32 %v687_v38, %v518_v48  ;;  %v751_v10 = vmul.f32 %v5607_v4, %v719_v6  ;;  %v843_v21 = vmul.f32 %v5534_v43, %v5647_v31  ;;  %v6286_v43 = vld [vmem:[#allocation47_spill] sm:$0xff]  ;;  %v6288_v38 = vld [vmem:[#allocation13_spill] sm:$0xff] }
 0x392   : > { %v740_v33 = vadd.f32 %v710_v22, %v5236_v39  ;;  %v758_v24 = vadd.f32 %v750_v5, %v5236_v39  ;;  %v713_v2 = vmax.f32 %v689_v9, %v705_v12  ;;  %v753_v19 = vmul.f32 %v5775_v7, %v721_v49  ;;  %v6289_v49 = vld [vmem:[#allocation12_spill] sm:$0xff] }
 0x393   : > { %v741_v30 = vadd.f32 %v711_v56, %v5236_v39  ;;  %v759_v60 = vadd.f32 %v751_v10, %v5236_v39  ;;  %v3330_v52 = vmul.f32 %v5677_v44, %v6286_v43  ;;  %v3332_v48 = vmul.f32 %v5677_v44, %v6288_v38 }
 0x394   : > { %v770_v27 = vmul.f32 %v5619_v14, %v740_v33  ;;  %v803_v16 = vmul.f32 %v5622_v29, %v758_v24  ;;  %v761_v4 = vadd.f32 %v753_v19, %v5236_v39 }
 0x395   : > { %v771_v61 = vmul.f32 %v5619_v14, %v741_v30  ;;  %v804_v35 = vmul.f32 %v5622_v29, %v759_v60 }
 0x396   : > { %v782_v57 = vadd.f32 %v5632_v11, %v770_v27  ;;  %v815_v7 = vadd.f32 %v5635_v54, %v803_v16 }
 0x397   : > { %v783_v36 = vadd.f32 %v5632_v11, %v771_v61 }
 0x399   : > { %v792_v8 = vmul.f32 %v5641_v25, %v783_v36 }
 0x3ad   : > { %v3364_v41 = vpop.permute.xlu1 %3363 }
 0x3ae   : > { %v3385_v45 = vadd.f32 %v3364_v41, %v3335_v37  ;;  %v743_v37 = vadd.f32 %v713_v2, %v5236_v39  ;;  %v806_v41 = vmul.f32 %v5622_v29, %v761_v4  ;;  %v824_v39 = vmul.f32 %v5643_v59, %v815_v7 }
 0x3af   : > { %v3366_v26 = vpop.permute.xlu0 %3365 }
 0x3b0   : > { %3393 = vst.msk [vmem:[%s5895_s16 + $0x10] sm:$0xff] %vm441_vm0, %v3385_v45  ;;  %v3386_v32 = vadd.f32 %v3366_v26, %v3336_v0  ;;  %v773_v20 = vmul.f32 %v5619_v14, %v743_v37  ;;  %v816_v45 = vadd.f32 %v5635_v54, %v804_v35  ;;  %v791_v0 = vmul.f32 %v5641_v25, %v782_v57 }
 0x3b1   : > { %v3360_v28 = vpop.permute.xlu1 %3359  ;;  %v818_v3 = vadd.f32 %v5635_v54, %v806_v41  ;;  %v842_v14 = vmul.f32 %v3628_v42, %v5647_v31 }
 0x3b2   : > { %3394 = vst.msk [vmem:[%s5895_s16 + $0x18] sm:$0xff] %vm441_vm0, %v3386_v32  ;;  %v3383_v53 = vadd.f32 %v3360_v28, %v3333_v1  ;;  %v785_v63 = vadd.f32 %v5632_v11, %v773_v20  ;;  %v825_v17 = vmul.f32 %v5643_v59, %v816_v45  ;;  %v832_v29 = vadd.f32 %v824_v39, %v791_v0 }
 0x3b3   : > { %v3362_v51 = vpop.permute.xlu0 %3361  ;;  %v827_v47 = vmul.f32 %v5643_v59, %v818_v3  ;;  %v845_v11 = vmul.f32 %v5544_v15, %v5647_v31 }
 0x3b4   : > { %3391 = vst.msk [vmem:[%s5895_s16] sm:$0xff] %vm441_vm0, %v3383_v53  ;;  %v3384_v13 = vadd.f32 %v3362_v51, %v3334_v50  ;;  %v794_v26 = vmul.f32 %v5641_v25, %v785_v63  ;;  %v833_v32 = vadd.f32 %v825_v17, %v792_v8  ;;  %v850_v1 = vadd.f32 %v842_v14, %v832_v29  ;;  %v6283_v53 = vld [vmem:[#allocation46_spill] sm:$0xff]  ;;  %v6284_v25 = vld [vmem:[#allocation40_spill] sm:$0xff] }
 0x3b5   : > { %v3329_v50 = vmul.f32 %v5677_v44, %v6283_v53 }
 0x3b6   : > { %3392 = vst.msk [vmem:[%s5895_s16 + $0x8] sm:$0xff] %vm441_vm0, %v3384_v13  ;;  %v835_v54 = vadd.f32 %v827_v47, %v794_v26  ;;  %v851_v18 = vadd.f32 %v843_v21, %v833_v32  ;;  %v2377_v34 = vadd.f32 %v5793_v46, %v850_v1 }
 0x3b8   : > { %v853_v28 = vadd.f32 %v845_v11, %v835_v54  ;;  %v2427_v59 = vadd.f32 %v6284_v25, %v2377_v34  ;;  %v2378_v55 = vadd.f32 %v6285_v58, %v851_v18 }
 0x3ba   : > { %v2380_v51 = vadd.f32 %v6287_v62, %v853_v28  ;;  %v2428_v15 = vadd.f32 %v5873_v40, %v2378_v55  ;;  %v3337_v31 = vadd.f32 %v3329_v50, %v2427_v59 }
 0x3bc   : > { %v3338_v13 = vadd.f32 %v3330_v52, %v2428_v15  ;;  %v2430_v22 = vadd.f32 %v5879_v23, %v2380_v51 }
 0x3be   : > { %v3340_v40 = vadd.f32 %v3332_v48, %v2430_v22 }
 0x3d5   : > { %v3368_v46 = vpop.permute.xlu1 %3367 }
 0x3d6   : > { %v3387_v12 = vadd.f32 %v3368_v46, %v3337_v31 }
 0x3d7   : > { %v3370_v6 = vpop.permute.xlu0 %3369 }
 0x3d8   : > { %3395 = vst.msk [vmem:[%s5895_s16 + $0x20] sm:$0xff] %vm441_vm0, %v3387_v12  ;;  %v3388_v5 = vadd.f32 %v3370_v6, %v3338_v13 }
 0x3d9   : > { %v3372_v9 = vpop.permute.xlu1 %3371 }
 0x3da   : > { %3396 = vst.msk [vmem:[%s5895_s16 + $0x28] sm:$0xff] %vm441_vm0, %v3388_v5  ;;  %v3389_v56 = vadd.f32 %v3372_v9, %v6289_v49 }
 0x3db   : > { %v3374_v10 = vpop.permute.xlu0 %3373 }
 0x3dc   : > { %3397 = vst.msk [vmem:[%s5895_s16 + $0x30] sm:$0xff] %vm441_vm0, %v3389_v56  ;;  %v3390_v33 = vadd.f32 %v3374_v10, %v3340_v40 }
 0x3de   : > { %3398 = vst.msk [vmem:[%s5895_s16 + $0x38] sm:$0xff] %vm441_vm0, %v3390_v33 }
 0x3df PF: > { %s23_s21 = sadd.s32 1, %s3654_s21  }
 0x3e0   : > { %p20_p1 = scmp.ge.s32.totalorder %s23_s21, 4  }
 0x3e2   :  { %22 = sbr.rel (!%p20_p1) target bundleno = 1 (0x1), region = 115 }
 0x3e9   :  { %3420 = vsyncpa [#allocation6], 1 }
 0x3ea   :  { %3422 = vsyncpa [#allocation6 + $0x1], 1 }

</bundles_post_ra>
